<compile_context>
chip_gen: v7x
topology: tpu7x:2x2x1
jax: 0.10.0
libtpu: 0.0.40
codegen_flags: <defaults>
</compile_context>

<pallas_src>
import math

import jax
import jax.numpy as jnp
from jax.experimental import pallas as pl
from jax.experimental.pallas import tpu as pltpu


def _double_conv_kernel(x_ref, w1_ref, b1_ref, w2_ref, b2_ref, o_ref,
                        xpad_ref, hpad_ref):
    # x_ref   : (1, H, W, Cin)        input tile (one batch element, NHWC)
    # w1_ref  : (3, 3, Cin, Cmid)     conv1 weights (HWIO)
    # b1_ref  : (1, Cmid)             conv1 bias
    # w2_ref  : (3, 3, Cmid, Cout)    conv2 weights (HWIO)
    # b2_ref  : (1, Cout)             conv2 bias
    # o_ref   : (1, H, W, Cout)       output tile
    # xpad_ref: (H+2, W+2, Cin)  VMEM zero-halo'd input scratch
    # hpad_ref: (H+2, W+2, Cmid) VMEM zero-halo'd intermediate scratch
    H, W, Cout = o_ref.shape[1], o_ref.shape[2], o_ref.shape[3]
    Cmid = hpad_ref.shape[2]

    def conv3x3_bias_relu(src_ref, w_ref, b_ref, cout):
        # src_ref holds zero-padded (H+2, W+2, Cin_local) activations in VMEM.
        xp = src_ref[...]
        # Bias folded into the accumulator init (f32), hoisted out of the loop.
        acc = jnp.broadcast_to(
            b_ref[0][None, None, :].astype(jnp.float32), (H, W, cout))
        # 3x3 'same' conv = 9 shifted (H, W, Cin) x (Cin, Cout) MXU contractions.
        for kh in range(3):
            for kw in range(3):
                patch = xp[kh:kh + H, kw:kw + W, :]            # (H, W, Cin)
                acc = acc + jax.lax.dot_general(
                    patch, w_ref[kh, kw],
                    dimension_numbers=(((2,), (0,)), ((), ())),
                    preferred_element_type=jnp.float32)
        return jnp.maximum(acc, 0.0)                           # ReLU

    # ---- in-kernel 'same' padding of the input (no host-side jnp.pad) ----
    xpad_ref[...] = jnp.zeros_like(xpad_ref)
    xpad_ref[1:H + 1, 1:W + 1, :] = x_ref[0].astype(jnp.float32)

    # ---- conv1 + bias + ReLU (Dropout2d eval mode == identity) ----
    h = conv3x3_bias_relu(xpad_ref, w1_ref, b1_ref, Cmid)

    # ---- intermediate stays in VMEM: write it into its own zero halo ----
    hpad_ref[...] = jnp.zeros_like(hpad_ref)
    hpad_ref[1:H + 1, 1:W + 1, :] = h

    # ---- conv2 + bias + ReLU (Dropout2d eval mode == identity) ----
    y = conv3x3_bias_relu(hpad_ref, w2_ref, b2_ref, Cout)
    o_ref[0] = y.astype(o_ref.dtype)


def double_conv_fused_nhwc(x_nhwc, w1, b1, w2, b2):
    """Fused conv3x3+ReLU -> conv3x3+ReLU. x_nhwc: (N,H,W,Cin); w: HWIO."""
    N, H, W, Cin = x_nhwc.shape
    Cmid = w1.shape[3]
    Cout = w2.shape[3]

    return pl.pallas_call(
        _double_conv_kernel,
        out_shape=jax.ShapeDtypeStruct((N, H, W, Cout), x_nhwc.dtype),
        grid=(N,),
        in_specs=[
            pl.BlockSpec((1, H, W, Cin), lambda n: (n, 0, 0, 0)),
            pl.BlockSpec((3, 3, Cin, Cmid), lambda n: (0, 0, 0, 0)),
            pl.BlockSpec((1, Cmid), lambda n: (0, 0)),
            pl.BlockSpec((3, 3, Cmid, Cout), lambda n: (0, 0, 0, 0)),
            pl.BlockSpec((1, Cout), lambda n: (0, 0)),
        ],
        out_specs=pl.BlockSpec((1, H, W, Cout), lambda n: (n, 0, 0, 0)),
        scratch_shapes=[
            pltpu.VMEM((H + 2, W + 2, Cin), jnp.float32),
            pltpu.VMEM((H + 2, W + 2, Cmid), jnp.float32),
        ],
        compiler_params=pltpu.CompilerParams(
            dimension_semantics=("parallel",),      # batch split across TCs (v7x)
            vmem_limit_bytes=48 * 1024 * 1024,      # <= v7x 64 MiB physical VMEM
        ),
    )(x_nhwc, w1, b1.reshape(1, Cmid), w2, b2.reshape(1, Cout))


def init_double_conv_params(key, input_channels, output_channels, dtype=jnp.float32):
    """Deterministic init mirroring nn.Conv2d default (kaiming-uniform-ish)."""
    k1, k2, k3, k4 = jax.random.split(key, 4)

    def conv_init(kw_key, kb_key, cin, cout):
        fan_in = cin * 3 * 3
        bound = 1.0 / math.sqrt(fan_in)
        w = jax.random.uniform(kw_key, (3, 3, cin, cout), dtype,
                               minval=-bound, maxval=bound)
        b = jax.random.uniform(kb_key, (cout,), dtype, minval=-bound, maxval=bound)
        return w, b

    w1, b1 = conv_init(k1, k2, input_channels, output_channels)
    w2, b2 = conv_init(k3, k4, output_channels, output_channels)
    return {"w1": w1, "b1": b1, "w2": w2, "b2": b2}


def double_conv_forward(params, x_nchw):
    """DoubleConv.forward. Input/output NCHW to match PyTorch."""
    x = jnp.transpose(x_nchw, (0, 2, 3, 1))                     # NCHW -> NHWC
    y = double_conv_fused_nhwc(x, params["w1"], params["b1"],
                               params["w2"], params["b2"])
    return jnp.transpose(y, (0, 3, 1, 2))                       # NHWC -> NCHW


def double_conv_reference(params, x_nchw):
    """Pure-JAX reference (XLA conv) for correctness checking."""
    x = jnp.transpose(x_nchw, (0, 2, 3, 1)).astype(jnp.float32)

    def conv_relu(h, w, b):
        dn = jax.lax.conv_dimension_numbers(h.shape, w.shape,
                                            ("NHWC", "HWIO", "NHWC"))
        out = jax.lax.conv_general_dilated(h, w, (1, 1), "SAME",
                                           dimension_numbers=dn)
        return jnp.maximum(out + b[None, None, None, :], 0.0)

    y = conv_relu(conv_relu(x, params["w1"], params["b1"]),
                  params["w2"], params["b2"])
    return jnp.transpose(y, (0, 3, 1, 2))


if __name__ == "__main__":
    key = jax.random.PRNGKey(0)
    k_x, k_p = jax.random.split(key)

    N, Cin, H, W = 2, 4, 16, 16
    Cout = 8

    x = jax.random.normal(k_x, (N, Cin, H, W), jnp.float32)     # NCHW like PyTorch
    params = init_double_conv_params(k_p, Cin, Cout)

    fwd = jax.jit(double_conv_forward)
    out = jax.block_until_ready(fwd(params, x))

    assert out.shape == (N, Cout, H, W), out.shape
    assert bool(jnp.all(out >= 0.0))                            # ReLU output

    ref = jax.block_until_ready(double_conv_reference(params, x))
    max_err = float(jnp.max(jnp.abs(out - ref)))
    assert bool(jnp.allclose(out, ref, rtol=1e-4, atol=1e-4)), max_err

    print("KERNEL_OK")
</pallas_src>

<mosaic_0001>
module attributes {stable_mosaic.version = 11 : i64} {
  func.func @_double_conv_kernel(%arg0: i32, %arg1: memref<1x16x16x4xf32, #tpu.memory_space<vmem>>, %arg2: memref<3x3x4x8xf32, #tpu.memory_space<vmem>>, %arg3: memref<1x8xf32, #tpu.memory_space<vmem>>, %arg4: memref<3x3x8x8xf32, #tpu.memory_space<vmem>>, %arg5: memref<1x8xf32, #tpu.memory_space<vmem>>, %arg6: memref<1x16x16x8xf32, #tpu.memory_space<vmem>>, %arg7: memref<18x18x4xf32, #tpu.memory_space<vmem>>, %arg8: memref<18x18x8xf32, #tpu.memory_space<vmem>>) attributes {dimension_semantics = [#tpu.dimension_semantics<parallel>], iteration_bounds = array<i64: 2>, scalar_prefetch = 0 : i64, scratch_operands = 2 : i64, tpu.core_type = #tpu.core_type<tc>, window_params = [{transform_indices = @transform_0, window_bounds = array<i64: 1, 16, 16, 4>}, {pipeline_mode = #tpu.pipeline_mode<synchronous>, transform_indices = @transform_1, window_bounds = array<i64: 3, 3, 4, 8>}, {pipeline_mode = #tpu.pipeline_mode<synchronous>, transform_indices = @transform_2, window_bounds = array<i64: 1, 8>}, {pipeline_mode = #tpu.pipeline_mode<synchronous>, transform_indices = @transform_3, window_bounds = array<i64: 3, 3, 8, 8>}, {pipeline_mode = #tpu.pipeline_mode<synchronous>, transform_indices = @transform_4, window_bounds = array<i64: 1, 8>}, {transform_indices = @transform_5, window_bounds = array<i64: 1, 16, 16, 8>}]} {
    %cst = arith.constant 0.000000e+00 : f32
    %0 = vector.broadcast %cst : f32 to vector<18x18x4xf32>
    %c0 = arith.constant 0 : index
    %c0_0 = arith.constant 0 : index
    %c0_1 = arith.constant 0 : index
    %1 = vector.load %arg7[%c0, %c0_0, %c0_1] : memref<18x18x4xf32, #tpu.memory_space<vmem>>, vector<18x18x4xf32>
    tpu.vector_store %arg7[%c0, %c0_0, %c0_1], %0 {strides = array<i32>} : memref<18x18x4xf32, #tpu.memory_space<vmem>>, vector<18x18x4xf32>,
    %c0_2 = arith.constant 0 : index
    %c0_3 = arith.constant 0 : index
    %c0_4 = arith.constant 0 : index
    %c0_5 = arith.constant 0 : index
    %2 = vector.load %arg1[%c0_2, %c0_3, %c0_4, %c0_5] : memref<1x16x16x4xf32, #tpu.memory_space<vmem>>, vector<1x16x16x4xf32>
    %3 = vector.shape_cast %2 : vector<1x16x16x4xf32> to vector<16x16x4xf32>
    %c1 = arith.constant 1 : index
    %c1_6 = arith.constant 1 : index
    %c0_7 = arith.constant 0 : index
    %4 = vector.load %arg7[%c1, %c1_6, %c0_7] : memref<18x18x4xf32, #tpu.memory_space<vmem>>, vector<16x16x4xf32>
    tpu.vector_store %arg7[%c1, %c1_6, %c0_7], %3 {strides = array<i32>} : memref<18x18x4xf32, #tpu.memory_space<vmem>>, vector<16x16x4xf32>,
    %c0_8 = arith.constant 0 : index
    %c0_9 = arith.constant 0 : index
    %c0_10 = arith.constant 0 : index
    %5 = vector.load %arg7[%c0_8, %c0_9, %c0_10] : memref<18x18x4xf32, #tpu.memory_space<vmem>>, vector<18x18x4xf32>
    %c0_11 = arith.constant 0 : index
    %c0_12 = arith.constant 0 : index
    %6 = vector.load %arg3[%c0_11, %c0_12] : memref<1x8xf32, #tpu.memory_space<vmem>>, vector<1x8xf32>
    %7 = vector.shape_cast %6 : vector<1x8xf32> to vector<8xf32>
    %8 = vector.shape_cast %7 : vector<8xf32> to vector<1x1x8xf32>
    %9 = vector.shape_cast %8 : vector<1x1x8xf32> to vector<1x1x8xf32>
    %10 = vector.broadcast %9 : vector<1x1x8xf32> to vector<16x16x8xf32>
    %11 = vector.extract_strided_slice %5 {offsets = [0, 0, 0], sizes = [16, 16, 4], strides = [1, 1, 1]} : vector<18x18x4xf32> to vector<16x16x4xf32>
    %c0_13 = arith.constant 0 : index
    %c0_14 = arith.constant 0 : index
    %c0_15 = arith.constant 0 : index
    %c0_16 = arith.constant 0 : index
    %12 = vector.load %arg2[%c0_13, %c0_14, %c0_15, %c0_16] : memref<3x3x4x8xf32, #tpu.memory_space<vmem>>, vector<1x1x4x8xf32>
    %13 = vector.shape_cast %12 : vector<1x1x4x8xf32> to vector<4x8xf32>
    %cst_17 = arith.constant dense<0.000000e+00> : vector<16x16x8xf32>
    %14 = tpu.matmul %11, %13, %cst_17 {dimension_numbers = #tpu.dot_dimension_numbers<[2], [0], [0, 1], [1], [0, 0, 0, 1, 1, 1], [], []>} : vector<16x16x4xf32>, vector<4x8xf32>, vector<16x16x8xf32> -> vector<16x16x8xf32>
    %15 = arith.addf %10, %14 : vector<16x16x8xf32>
    %16 = vector.extract_strided_slice %5 {offsets = [0, 1, 0], sizes = [16, 16, 4], strides = [1, 1, 1]} : vector<18x18x4xf32> to vector<16x16x4xf32>
    %c0_18 = arith.constant 0 : index
    %c1_19 = arith.constant 1 : index
    %c0_20 = arith.constant 0 : index
    %c0_21 = arith.constant 0 : index
    %17 = vector.load %arg2[%c0_18, %c1_19, %c0_20, %c0_21] : memref<3x3x4x8xf32, #tpu.memory_space<vmem>>, vector<1x1x4x8xf32>
    %18 = vector.shape_cast %17 : vector<1x1x4x8xf32> to vector<4x8xf32>
    %cst_22 = arith.constant dense<0.000000e+00> : vector<16x16x8xf32>
    %19 = tpu.matmul %16, %18, %cst_22 {dimension_numbers = #tpu.dot_dimension_numbers<[2], [0], [0, 1], [1], [0, 0, 0, 1, 1, 1], [], []>} : vector<16x16x4xf32>, vector<4x8xf32>, vector<16x16x8xf32> -> vector<16x16x8xf32>
    %20 = arith.addf %15, %19 : vector<16x16x8xf32>
    %21 = vector.extract_strided_slice %5 {offsets = [0, 2, 0], sizes = [16, 16, 4], strides = [1, 1, 1]} : vector<18x18x4xf32> to vector<16x16x4xf32>
    %c0_23 = arith.constant 0 : index
    %c2 = arith.constant 2 : index
    %c0_24 = arith.constant 0 : index
    %c0_25 = arith.constant 0 : index
    %22 = vector.load %arg2[%c0_23, %c2, %c0_24, %c0_25] : memref<3x3x4x8xf32, #tpu.memory_space<vmem>>, vector<1x1x4x8xf32>
    %23 = vector.shape_cast %22 : vector<1x1x4x8xf32> to vector<4x8xf32>
    %cst_26 = arith.constant dense<0.000000e+00> : vector<16x16x8xf32>
    %24 = tpu.matmul %21, %23, %cst_26 {dimension_numbers = #tpu.dot_dimension_numbers<[2], [0], [0, 1], [1], [0, 0, 0, 1, 1, 1], [], []>} : vector<16x16x4xf32>, vector<4x8xf32>, vector<16x16x8xf32> -> vector<16x16x8xf32>
    %25 = arith.addf %20, %24 : vector<16x16x8xf32>
    %26 = vector.extract_strided_slice %5 {offsets = [1, 0, 0], sizes = [16, 16, 4], strides = [1, 1, 1]} : vector<18x18x4xf32> to vector<16x16x4xf32>
    %c1_27 = arith.constant 1 : index
    %c0_28 = arith.constant 0 : index
    %c0_29 = arith.constant 0 : index
    %c0_30 = arith.constant 0 : index
    %27 = vector.load %arg2[%c1_27, %c0_28, %c0_29, %c0_30] : memref<3x3x4x8xf32, #tpu.memory_space<vmem>>, vector<1x1x4x8xf32>
    %28 = vector.shape_cast %27 : vector<1x1x4x8xf32> to vector<4x8xf32>
    %cst_31 = arith.constant dense<0.000000e+00> : vector<16x16x8xf32>
    %29 = tpu.matmul %26, %28, %cst_31 {dimension_numbers = #tpu.dot_dimension_numbers<[2], [0], [0, 1], [1], [0, 0, 0, 1, 1, 1], [], []>} : vector<16x16x4xf32>, vector<4x8xf32>, vector<16x16x8xf32> -> vector<16x16x8xf32>
    %30 = arith.addf %25, %29 : vector<16x16x8xf32>
    %31 = vector.extract_strided_slice %5 {offsets = [1, 1, 0], sizes = [16, 16, 4], strides = [1, 1, 1]} : vector<18x18x4xf32> to vector<16x16x4xf32>
    %c1_32 = arith.constant 1 : index
    %c1_33 = arith.constant 1 : index
    %c0_34 = arith.constant 0 : index
    %c0_35 = arith.constant 0 : index
    %32 = vector.load %arg2[%c1_32, %c1_33, %c0_34, %c0_35] : memref<3x3x4x8xf32, #tpu.memory_space<vmem>>, vector<1x1x4x8xf32>
    %33 = vector.shape_cast %32 : vector<1x1x4x8xf32> to vector<4x8xf32>
    %cst_36 = arith.constant dense<0.000000e+00> : vector<16x16x8xf32>
    %34 = tpu.matmul %31, %33, %cst_36 {dimension_numbers = #tpu.dot_dimension_numbers<[2], [0], [0, 1], [1], [0, 0, 0, 1, 1, 1], [], []>} : vector<16x16x4xf32>, vector<4x8xf32>, vector<16x16x8xf32> -> vector<16x16x8xf32>
    %35 = arith.addf %30, %34 : vector<16x16x8xf32>
    %36 = vector.extract_strided_slice %5 {offsets = [1, 2, 0], sizes = [16, 16, 4], strides = [1, 1, 1]} : vector<18x18x4xf32> to vector<16x16x4xf32>
    %c1_37 = arith.constant 1 : index
    %c2_38 = arith.constant 2 : index
    %c0_39 = arith.constant 0 : index
    %c0_40 = arith.constant 0 : index
    %37 = vector.load %arg2[%c1_37, %c2_38, %c0_39, %c0_40] : memref<3x3x4x8xf32, #tpu.memory_space<vmem>>, vector<1x1x4x8xf32>
    %38 = vector.shape_cast %37 : vector<1x1x4x8xf32> to vector<4x8xf32>
    %cst_41 = arith.constant dense<0.000000e+00> : vector<16x16x8xf32>
    %39 = tpu.matmul %36, %38, %cst_41 {dimension_numbers = #tpu.dot_dimension_numbers<[2], [0], [0, 1], [1], [0, 0, 0, 1, 1, 1], [], []>} : vector<16x16x4xf32>, vector<4x8xf32>, vector<16x16x8xf32> -> vector<16x16x8xf32>
    %40 = arith.addf %35, %39 : vector<16x16x8xf32>
    %41 = vector.extract_strided_slice %5 {offsets = [2, 0, 0], sizes = [16, 16, 4], strides = [1, 1, 1]} : vector<18x18x4xf32> to vector<16x16x4xf32>
    %c2_42 = arith.constant 2 : index
    %c0_43 = arith.constant 0 : index
    %c0_44 = arith.constant 0 : index
    %c0_45 = arith.constant 0 : index
    %42 = vector.load %arg2[%c2_42, %c0_43, %c0_44, %c0_45] : memref<3x3x4x8xf32, #tpu.memory_space<vmem>>, vector<1x1x4x8xf32>
    %43 = vector.shape_cast %42 : vector<1x1x4x8xf32> to vector<4x8xf32>
    %cst_46 = arith.constant dense<0.000000e+00> : vector<16x16x8xf32>
    %44 = tpu.matmul %41, %43, %cst_46 {dimension_numbers = #tpu.dot_dimension_numbers<[2], [0], [0, 1], [1], [0, 0, 0, 1, 1, 1], [], []>} : vector<16x16x4xf32>, vector<4x8xf32>, vector<16x16x8xf32> -> vector<16x16x8xf32>
    %45 = arith.addf %40, %44 : vector<16x16x8xf32>
    %46 = vector.extract_strided_slice %5 {offsets = [2, 1, 0], sizes = [16, 16, 4], strides = [1, 1, 1]} : vector<18x18x4xf32> to vector<16x16x4xf32>
    %c2_47 = arith.constant 2 : index
    %c1_48 = arith.constant 1 : index
    %c0_49 = arith.constant 0 : index
    %c0_50 = arith.constant 0 : index
    %47 = vector.load %arg2[%c2_47, %c1_48, %c0_49, %c0_50] : memref<3x3x4x8xf32, #tpu.memory_space<vmem>>, vector<1x1x4x8xf32>
    %48 = vector.shape_cast %47 : vector<1x1x4x8xf32> to vector<4x8xf32>
    %cst_51 = arith.constant dense<0.000000e+00> : vector<16x16x8xf32>
    %49 = tpu.matmul %46, %48, %cst_51 {dimension_numbers = #tpu.dot_dimension_numbers<[2], [0], [0, 1], [1], [0, 0, 0, 1, 1, 1], [], []>} : vector<16x16x4xf32>, vector<4x8xf32>, vector<16x16x8xf32> -> vector<16x16x8xf32>
    %50 = arith.addf %45, %49 : vector<16x16x8xf32>
    %51 = vector.extract_strided_slice %5 {offsets = [2, 2, 0], sizes = [16, 16, 4], strides = [1, 1, 1]} : vector<18x18x4xf32> to vector<16x16x4xf32>
    %c2_52 = arith.constant 2 : index
    %c2_53 = arith.constant 2 : index
    %c0_54 = arith.constant 0 : index
    %c0_55 = arith.constant 0 : index
    %52 = vector.load %arg2[%c2_52, %c2_53, %c0_54, %c0_55] : memref<3x3x4x8xf32, #tpu.memory_space<vmem>>, vector<1x1x4x8xf32>
    %53 = vector.shape_cast %52 : vector<1x1x4x8xf32> to vector<4x8xf32>
    %cst_56 = arith.constant dense<0.000000e+00> : vector<16x16x8xf32>
    %54 = tpu.matmul %51, %53, %cst_56 {dimension_numbers = #tpu.dot_dimension_numbers<[2], [0], [0, 1], [1], [0, 0, 0, 1, 1, 1], [], []>} : vector<16x16x4xf32>, vector<4x8xf32>, vector<16x16x8xf32> -> vector<16x16x8xf32>
    %55 = arith.addf %50, %54 : vector<16x16x8xf32>
    %cst_57 = arith.constant 0.000000e+00 : f32
    %56 = vector.broadcast %cst_57 : f32 to vector<16x16x8xf32>
    %57 = arith.maximumf %55, %56 : vector<16x16x8xf32>
    %cst_58 = arith.constant 0.000000e+00 : f32
    %58 = vector.broadcast %cst_58 : f32 to vector<18x18x8xf32>
    %c0_59 = arith.constant 0 : index
    %c0_60 = arith.constant 0 : index
    %c0_61 = arith.constant 0 : index
    %59 = vector.load %arg8[%c0_59, %c0_60, %c0_61] : memref<18x18x8xf32, #tpu.memory_space<vmem>>, vector<18x18x8xf32>
    tpu.vector_store %arg8[%c0_59, %c0_60, %c0_61], %58 {strides = array<i32>} : memref<18x18x8xf32, #tpu.memory_space<vmem>>, vector<18x18x8xf32>,
    %c1_62 = arith.constant 1 : index
    %c1_63 = arith.constant 1 : index
    %c0_64 = arith.constant 0 : index
    %60 = vector.load %arg8[%c1_62, %c1_63, %c0_64] : memref<18x18x8xf32, #tpu.memory_space<vmem>>, vector<16x16x8xf32>
    tpu.vector_store %arg8[%c1_62, %c1_63, %c0_64], %57 {strides = array<i32>} : memref<18x18x8xf32, #tpu.memory_space<vmem>>, vector<16x16x8xf32>,
    %c0_65 = arith.constant 0 : index
    %c0_66 = arith.constant 0 : index
    %c0_67 = arith.constant 0 : index
    %61 = vector.load %arg8[%c0_65, %c0_66, %c0_67] : memref<18x18x8xf32, #tpu.memory_space<vmem>>, vector<18x18x8xf32>
    %c0_68 = arith.constant 0 : index
    %c0_69 = arith.constant 0 : index
    %62 = vector.load %arg5[%c0_68, %c0_69] : memref<1x8xf32, #tpu.memory_space<vmem>>, vector<1x8xf32>
    %63 = vector.shape_cast %62 : vector<1x8xf32> to vector<8xf32>
    %64 = vector.shape_cast %63 : vector<8xf32> to vector<1x1x8xf32>
    %65 = vector.shape_cast %64 : vector<1x1x8xf32> to vector<1x1x8xf32>
    %66 = vector.broadcast %65 : vector<1x1x8xf32> to vector<16x16x8xf32>
    %67 = vector.extract_strided_slice %61 {offsets = [0, 0, 0], sizes = [16, 16, 8], strides = [1, 1, 1]} : vector<18x18x8xf32> to vector<16x16x8xf32>
    %c0_70 = arith.constant 0 : index
    %c0_71 = arith.constant 0 : index
    %c0_72 = arith.constant 0 : index
    %c0_73 = arith.constant 0 : index
    %68 = vector.load %arg4[%c0_70, %c0_71, %c0_72, %c0_73] : memref<3x3x8x8xf32, #tpu.memory_space<vmem>>, vector<1x1x8x8xf32>
    %69 = vector.shape_cast %68 : vector<1x1x8x8xf32> to vector<8x8xf32>
    %cst_74 = arith.constant dense<0.000000e+00> : vector<16x16x8xf32>
    %70 = tpu.matmul %67, %69, %cst_74 {dimension_numbers = #tpu.dot_dimension_numbers<[2], [0], [0, 1], [1], [0, 0, 0, 1, 1, 1], [], []>} : vector<16x16x8xf32>, vector<8x8xf32>, vector<16x16x8xf32> -> vector<16x16x8xf32>
    %71 = arith.addf %66, %70 : vector<16x16x8xf32>
    %72 = vector.extract_strided_slice %61 {offsets = [0, 1, 0], sizes = [16, 16, 8], strides = [1, 1, 1]} : vector<18x18x8xf32> to vector<16x16x8xf32>
    %c0_75 = arith.constant 0 : index
    %c1_76 = arith.constant 1 : index
    %c0_77 = arith.constant 0 : index
    %c0_78 = arith.constant 0 : index
    %73 = vector.load %arg4[%c0_75, %c1_76, %c0_77, %c0_78] : memref<3x3x8x8xf32, #tpu.memory_space<vmem>>, vector<1x1x8x8xf32>
    %74 = vector.shape_cast %73 : vector<1x1x8x8xf32> to vector<8x8xf32>
    %cst_79 = arith.constant dense<0.000000e+00> : vector<16x16x8xf32>
    %75 = tpu.matmul %72, %74, %cst_79 {dimension_numbers = #tpu.dot_dimension_numbers<[2], [0], [0, 1], [1], [0, 0, 0, 1, 1, 1], [], []>} : vector<16x16x8xf32>, vector<8x8xf32>, vector<16x16x8xf32> -> vector<16x16x8xf32>
    %76 = arith.addf %71, %75 : vector<16x16x8xf32>
    %77 = vector.extract_strided_slice %61 {offsets = [0, 2, 0], sizes = [16, 16, 8], strides = [1, 1, 1]} : vector<18x18x8xf32> to vector<16x16x8xf32>
    %c0_80 = arith.constant 0 : index
    %c2_81 = arith.constant 2 : index
    %c0_82 = arith.constant 0 : index
    %c0_83 = arith.constant 0 : index
    %78 = vector.load %arg4[%c0_80, %c2_81, %c0_82, %c0_83] : memref<3x3x8x8xf32, #tpu.memory_space<vmem>>, vector<1x1x8x8xf32>
    %79 = vector.shape_cast %78 : vector<1x1x8x8xf32> to vector<8x8xf32>
    %cst_84 = arith.constant dense<0.000000e+00> : vector<16x16x8xf32>
    %80 = tpu.matmul %77, %79, %cst_84 {dimension_numbers = #tpu.dot_dimension_numbers<[2], [0], [0, 1], [1], [0, 0, 0, 1, 1, 1], [], []>} : vector<16x16x8xf32>, vector<8x8xf32>, vector<16x16x8xf32> -> vector<16x16x8xf32>
    %81 = arith.addf %76, %80 : vector<16x16x8xf32>
    %82 = vector.extract_strided_slice %61 {offsets = [1, 0, 0], sizes = [16, 16, 8], strides = [1, 1, 1]} : vector<18x18x8xf32> to vector<16x16x8xf32>
    %c1_85 = arith.constant 1 : index
    %c0_86 = arith.constant 0 : index
    %c0_87 = arith.constant 0 : index
    %c0_88 = arith.constant 0 : index
    %83 = vector.load %arg4[%c1_85, %c0_86, %c0_87, %c0_88] : memref<3x3x8x8xf32, #tpu.memory_space<vmem>>, vector<1x1x8x8xf32>
    %84 = vector.shape_cast %83 : vector<1x1x8x8xf32> to vector<8x8xf32>
    %cst_89 = arith.constant dense<0.000000e+00> : vector<16x16x8xf32>
    %85 = tpu.matmul %82, %84, %cst_89 {dimension_numbers = #tpu.dot_dimension_numbers<[2], [0], [0, 1], [1], [0, 0, 0, 1, 1, 1], [], []>} : vector<16x16x8xf32>, vector<8x8xf32>, vector<16x16x8xf32> -> vector<16x16x8xf32>
    %86 = arith.addf %81, %85 : vector<16x16x8xf32>
    %87 = vector.extract_strided_slice %61 {offsets = [1, 1, 0], sizes = [16, 16, 8], strides = [1, 1, 1]} : vector<18x18x8xf32> to vector<16x16x8xf32>
    %c1_90 = arith.constant 1 : index
    %c1_91 = arith.constant 1 : index
    %c0_92 = arith.constant 0 : index
    %c0_93 = arith.constant 0 : index
    %88 = vector.load %arg4[%c1_90, %c1_91, %c0_92, %c0_93] : memref<3x3x8x8xf32, #tpu.memory_space<vmem>>, vector<1x1x8x8xf32>
    %89 = vector.shape_cast %88 : vector<1x1x8x8xf32> to vector<8x8xf32>
    %cst_94 = arith.constant dense<0.000000e+00> : vector<16x16x8xf32>
    %90 = tpu.matmul %87, %89, %cst_94 {dimension_numbers = #tpu.dot_dimension_numbers<[2], [0], [0, 1], [1], [0, 0, 0, 1, 1, 1], [], []>} : vector<16x16x8xf32>, vector<8x8xf32>, vector<16x16x8xf32> -> vector<16x16x8xf32>
    %91 = arith.addf %86, %90 : vector<16x16x8xf32>
    %92 = vector.extract_strided_slice %61 {offsets = [1, 2, 0], sizes = [16, 16, 8], strides = [1, 1, 1]} : vector<18x18x8xf32> to vector<16x16x8xf32>
    %c1_95 = arith.constant 1 : index
    %c2_96 = arith.constant 2 : index
    %c0_97 = arith.constant 0 : index
    %c0_98 = arith.constant 0 : index
    %93 = vector.load %arg4[%c1_95, %c2_96, %c0_97, %c0_98] : memref<3x3x8x8xf32, #tpu.memory_space<vmem>>, vector<1x1x8x8xf32>
    %94 = vector.shape_cast %93 : vector<1x1x8x8xf32> to vector<8x8xf32>
    %cst_99 = arith.constant dense<0.000000e+00> : vector<16x16x8xf32>
    %95 = tpu.matmul %92, %94, %cst_99 {dimension_numbers = #tpu.dot_dimension_numbers<[2], [0], [0, 1], [1], [0, 0, 0, 1, 1, 1], [], []>} : vector<16x16x8xf32>, vector<8x8xf32>, vector<16x16x8xf32> -> vector<16x16x8xf32>
    %96 = arith.addf %91, %95 : vector<16x16x8xf32>
    %97 = vector.extract_strided_slice %61 {offsets = [2, 0, 0], sizes = [16, 16, 8], strides = [1, 1, 1]} : vector<18x18x8xf32> to vector<16x16x8xf32>
    %c2_100 = arith.constant 2 : index
    %c0_101 = arith.constant 0 : index
    %c0_102 = arith.constant 0 : index
    %c0_103 = arith.constant 0 : index
    %98 = vector.load %arg4[%c2_100, %c0_101, %c0_102, %c0_103] : memref<3x3x8x8xf32, #tpu.memory_space<vmem>>, vector<1x1x8x8xf32>
    %99 = vector.shape_cast %98 : vector<1x1x8x8xf32> to vector<8x8xf32>
    %cst_104 = arith.constant dense<0.000000e+00> : vector<16x16x8xf32>
    %100 = tpu.matmul %97, %99, %cst_104 {dimension_numbers = #tpu.dot_dimension_numbers<[2], [0], [0, 1], [1], [0, 0, 0, 1, 1, 1], [], []>} : vector<16x16x8xf32>, vector<8x8xf32>, vector<16x16x8xf32> -> vector<16x16x8xf32>
    %101 = arith.addf %96, %100 : vector<16x16x8xf32>
    %102 = vector.extract_strided_slice %61 {offsets = [2, 1, 0], sizes = [16, 16, 8], strides = [1, 1, 1]} : vector<18x18x8xf32> to vector<16x16x8xf32>
    %c2_105 = arith.constant 2 : index
    %c1_106 = arith.constant 1 : index
    %c0_107 = arith.constant 0 : index
    %c0_108 = arith.constant 0 : index
    %103 = vector.load %arg4[%c2_105, %c1_106, %c0_107, %c0_108] : memref<3x3x8x8xf32, #tpu.memory_space<vmem>>, vector<1x1x8x8xf32>
    %104 = vector.shape_cast %103 : vector<1x1x8x8xf32> to vector<8x8xf32>
    %cst_109 = arith.constant dense<0.000000e+00> : vector<16x16x8xf32>
    %105 = tpu.matmul %102, %104, %cst_109 {dimension_numbers = #tpu.dot_dimension_numbers<[2], [0], [0, 1], [1], [0, 0, 0, 1, 1, 1], [], []>} : vector<16x16x8xf32>, vector<8x8xf32>, vector<16x16x8xf32> -> vector<16x16x8xf32>
    %106 = arith.addf %101, %105 : vector<16x16x8xf32>
    %107 = vector.extract_strided_slice %61 {offsets = [2, 2, 0], sizes = [16, 16, 8], strides = [1, 1, 1]} : vector<18x18x8xf32> to vector<16x16x8xf32>
    %c2_110 = arith.constant 2 : index
    %c2_111 = arith.constant 2 : index
    %c0_112 = arith.constant 0 : index
    %c0_113 = arith.constant 0 : index
    %108 = vector.load %arg4[%c2_110, %c2_111, %c0_112, %c0_113] : memref<3x3x8x8xf32, #tpu.memory_space<vmem>>, vector<1x1x8x8xf32>
    %109 = vector.shape_cast %108 : vector<1x1x8x8xf32> to vector<8x8xf32>
    %cst_114 = arith.constant dense<0.000000e+00> : vector<16x16x8xf32>
    %110 = tpu.matmul %107, %109, %cst_114 {dimension_numbers = #tpu.dot_dimension_numbers<[2], [0], [0, 1], [1], [0, 0, 0, 1, 1, 1], [], []>} : vector<16x16x8xf32>, vector<8x8xf32>, vector<16x16x8xf32> -> vector<16x16x8xf32>
    %111 = arith.addf %106, %110 : vector<16x16x8xf32>
    %cst_115 = arith.constant 0.000000e+00 : f32
    %112 = vector.broadcast %cst_115 : f32 to vector<16x16x8xf32>
    %113 = arith.maximumf %111, %112 : vector<16x16x8xf32>
    %c0_116 = arith.constant 0 : index
    %c0_117 = arith.constant 0 : index
    %c0_118 = arith.constant 0 : index
    %c0_119 = arith.constant 0 : index
    %114 = vector.load %arg6[%c0_116, %c0_117, %c0_118, %c0_119] : memref<1x16x16x8xf32, #tpu.memory_space<vmem>>, vector<1x16x16x8xf32>
    %115 = vector.shape_cast %114 : vector<1x16x16x8xf32> to vector<16x16x8xf32>
    %116 = vector.shape_cast %113 : vector<16x16x8xf32> to vector<1x16x16x8xf32>
    tpu.vector_store %arg6[%c0_116, %c0_117, %c0_118, %c0_119], %116 {strides = array<i32>} : memref<1x16x16x8xf32, #tpu.memory_space<vmem>>, vector<1x16x16x8xf32>,
    return
  }
  func.func @transform_0(%arg0: i32) -> (i32, i32, i32, i32) {
    %c0_i32 = arith.constant 0 : i32
    %c0_i32_0 = arith.constant 0 : i32
    %c0_i32_1 = arith.constant 0 : i32
    %c0_i32_2 = arith.constant 0 : i32
    return %arg0, %c0_i32, %c0_i32_0, %c0_i32_1 : i32, i32, i32, i32
  }
  func.func @transform_1(%arg0: i32) -> (i32, i32, i32, i32) {
    %c0_i32 = arith.constant 0 : i32
    %c0_i32_0 = arith.constant 0 : i32
    %c0_i32_1 = arith.constant 0 : i32
    %c0_i32_2 = arith.constant 0 : i32
    %c0_i32_3 = arith.constant 0 : i32
    return %c0_i32, %c0_i32_0, %c0_i32_1, %c0_i32_2 : i32, i32, i32, i32
  }
  func.func @transform_2(%arg0: i32) -> (i32, i32) {
    %c0_i32 = arith.constant 0 : i32
    %c0_i32_0 = arith.constant 0 : i32
    %c0_i32_1 = arith.constant 0 : i32
    return %c0_i32, %c0_i32_0 : i32, i32
  }
  func.func @transform_3(%arg0: i32) -> (i32, i32, i32, i32) {
    %c0_i32 = arith.constant 0 : i32
    %c0_i32_0 = arith.constant 0 : i32
    %c0_i32_1 = arith.constant 0 : i32
    %c0_i32_2 = arith.constant 0 : i32
    %c0_i32_3 = arith.constant 0 : i32
    return %c0_i32, %c0_i32_0, %c0_i32_1, %c0_i32_2 : i32, i32, i32, i32
  }
  func.func @transform_4(%arg0: i32) -> (i32, i32) {
    %c0_i32 = arith.constant 0 : i32
    %c0_i32_0 = arith.constant 0 : i32
    %c0_i32_1 = arith.constant 0 : i32
    return %c0_i32, %c0_i32_0 : i32, i32
  }
  func.func @transform_5(%arg0: i32) -> (i32, i32, i32, i32) {
    %c0_i32 = arith.constant 0 : i32
    %c0_i32_0 = arith.constant 0 : i32
    %c0_i32_1 = arith.constant 0 : i32
    %c0_i32_2 = arith.constant 0 : i32
    return %arg0, %c0_i32, %c0_i32_0, %c0_i32_1 : i32, i32, i32, i32
  }
}

</mosaic_0001>

<bundles_post_ra>
// kernel: double_conv_forward.1
= control target key start
LH: loop header
LB: loop body
LE: loop exit
PB: predicated region body
PF: predicated region fallthrough
CT: control target
= control target key end

     0   :  { %s9032_s18 = smov 0   ;;  %s11582_s0 = inlined_call_operand.vmem [shape: f32[2,16,16,4], index: 0, kind: input, shape index: {}]   ;;  %s11583_s1 = inlined_call_operand.vmem [shape: f32[3,3,4,8], index: 1, kind: input, shape index: {}]   ;;  %s11584_s2 = inlined_call_operand.vmem [shape: f32[1,8], index: 2, kind: input, shape index: {}]   ;;  %s11585_s3 = inlined_call_operand.vmem [shape: f32[3,3,8,8], index: 3, kind: input, shape index: {}]   ;;  %s11586_s4 = inlined_call_operand.vmem [shape: f32[1,8], index: 4, kind: input, shape index: {}]   ;;  %s11587_s5 = inlined_call_operand.vmem [shape: f32[2,16,16,8], index: 5, kind: output, shape index: {}]  }
   0x1 LB: > { %s6298_s19 = sadd.s32 4294967295, %s8999_s18   ;;  %p6302_p0 = scmp.ge.s32.totalorder %s8999_s18, 1  ;;  %s8999_s18 = sphi %s9032_s18, %s15_s18  }
   0x2   : > { %p187_p1 = scmp.lt.s32.totalorder %s8999_s18, 3 }
   0x4   : > { %p188_p2 = pnand %p6302_p0, %p187_p1 }
   0x6   : > { %191 = sbr.rel (%p188_p2) target bundleno = 1570 (0x622), region = 40 }
   0xd   : > { %v407_v0 = vld [vmem:[%s11583_s1] sm:$0xf]  ;;  %vm504_vm0 = vcmask 1043456   ;;  %vm225_vm1 = vcmask 31744   ;;  %p9045_p3 = scmp.lt.s32.totalorder %s6298_s19, 1  ;;  %v11588_v1 = vmov 0.0  }
   0xe   : > { %7508 = vmatprep.subr.msk.mxu0 %vm504_vm0, %v407_v0  ;;  %226 = vst.msk [vmem:[#allocation2] sm:$0xff] %vm225_vm1, %v11588_v1  ;;  %227 = vst.msk [vmem:[#allocation2 + $0x8] sm:$0xff] %vm225_vm1, %v11588_v1  ;;  %v6341_v2 = vld [vmem:[%s11583_s1 + $0x4] sm:$0xf]  ;;  %vm228_vm2 = vcmask 25600   ;;  %vm1190_vm3 = vcmask 1045504  }
   0xf   : > { %230 = vst.msk [vmem:[#allocation2 + $0x18] sm:$0xff] %vm225_vm1, %v11588_v1  ;;  %231 = vst.msk [vmem:[#allocation2 + $0x20] sm:$0xff] %vm225_vm1, %v11588_v1  ;;  %7509 = vmatpush3.msk.msra.mxu0 %vm504_vm0, %v407_v0  ;;  %s11944_s19 = smov (!%p9045_p3, %s6298_s19), 1  ;;  %v9204_v16 = vld [vmem:[%s11583_s1 + $0x8] sm:$0xf]  ;;  %vm783_vm4 = vcmask 1046528  }
  0x10   : > { %233 = vst.msk [vmem:[#allocation2 + $0x30] sm:$0xff] %vm225_vm1, %v11588_v1  ;;  %234 = vst.msk [vmem:[#allocation2 + $0x38] sm:$0xff] %vm225_vm1, %v11588_v1  ;;  %7558 = vmatprep.subr.msk.mxu0 %vm504_vm0, %v6341_v2  ;;  %s6912_s25 = sshll.u32 %s11944_s19, 8  ;;  %vm3249_vm5 = vcmask 64512   ;;  %vm3252_vm6 = vcmask 58368  }
  0x11   : > { %236 = vst.msk [vmem:[#allocation2 + $0x48] sm:$0xff] %vm225_vm1, %v11588_v1  ;;  %237 = vst.msk [vmem:[#allocation2 + $0x50] sm:$0xff] %vm225_vm1, %v11588_v1  ;;  %s9175_s28 = scalar_lea.vmem %s11582_s0, %s6912_s25  ;;  %s11482_s22 = scalar_lea.vmem %s11587_s5, %s6912_s25 }
  0x12   : > { %239 = vst.msk [vmem:[#allocation2 + $0x60] sm:$0xff] %vm225_vm1, %v11588_v1  ;;  %240 = vst.msk [vmem:[#allocation2 + $0x68] sm:$0xff] %vm225_vm1, %v11588_v1  ;;  %v281_v3 = vld [vmem:[%s9175_s28] sm:$0xff]  ;;  %v282_v4 = vld [vmem:[%s9175_s28 + $0x8] sm:$0xff] }
  0x13   : > { %242 = vst.msk [vmem:[#allocation2 + $0x78] sm:$0xff] %vm225_vm1, %v11588_v1  ;;  %243 = vst.msk [vmem:[#allocation2 + $0x80] sm:$0xff] %vm225_vm1, %v11588_v1  ;;  %v283_v5 = vld [vmem:[%s9175_s28 + $0x10] sm:$0xff]  ;;  %v284_v6 = vld [vmem:[%s9175_s28 + $0x18] sm:$0xff] }
  0x14   : > { %245 = vst.msk [vmem:[#allocation2 + $0x90] sm:$0xff] %vm225_vm1, %v11588_v1  ;;  %246 = vst.msk [vmem:[#allocation2 + $0x98] sm:$0xff] %vm225_vm1, %v11588_v1  ;;  %v285_v7 = vld [vmem:[%s9175_s28 + $0x20] sm:$0xff]  ;;  %v286_v8 = vld [vmem:[%s9175_s28 + $0x28] sm:$0xff] }
  0x15   : > { %248 = vst.msk [vmem:[#allocation2 + $0xa8] sm:$0xff] %vm225_vm1, %v11588_v1  ;;  %249 = vst.msk [vmem:[#allocation2 + $0xb0] sm:$0xff] %vm225_vm1, %v11588_v1  ;;  %v9186_v9 = vld [vmem:[#allocation2] sm:$0xff]  ;;  %v9188_v10 = vld [vmem:[#allocation2 + $0x8] sm:$0xff] }
  0x16   : > { %251 = vst.msk [vmem:[#allocation2 + $0xc0] sm:$0xff] %vm225_vm1, %v11588_v1  ;;  %252 = vst.msk [vmem:[#allocation2 + $0xc8] sm:$0xff] %vm225_vm1, %v11588_v1  ;;  %v287_v11 = vld [vmem:[%s9175_s28 + $0x30] sm:$0xff]  ;;  %7510 = vmatprep.mubr.msk.f32.mxu0 %vm225_vm1, %v9186_v9  ;;  %v1191_v12 = vrot.slane %v9186_v9, 2  ;;  %v1192_v13 = vrot.slane %v9188_v10, 2  ;;  %v288_v14 = vld [vmem:[%s9175_s28 + $0x38] sm:$0xff] }
  0x17   : > { %254 = vst.msk [vmem:[#allocation2 + $0xd8] sm:$0xff] %vm225_vm1, %v11588_v1  ;;  %255 = vst.msk [vmem:[#allocation2 + $0xe0] sm:$0xff] %vm225_vm1, %v11588_v1  ;;  %v289_v15 = vld [vmem:[%s9175_s28 + $0x40] sm:$0xff]  ;;  %7511 = vmatmul.mubr.msk.f32.vlgmr.msra.gmra.mrb[0].mxu0 %vm225_vm1, %v9188_v10  ;;  %v290_v17 = vld [vmem:[%s9175_s28 + $0x48] sm:$0xff] }
  0x18   : > { %257 = vst.msk [vmem:[#allocation2 + $0xf0] sm:$0xff] %vm225_vm1, %v11588_v1  ;;  %258 = vst.msk [vmem:[#allocation2 + $0xf8] sm:$0xff] %vm225_vm1, %v11588_v1  ;;  %v291_v18 = vld [vmem:[%s9175_s28 + $0x50] sm:$0xff]  ;;  %v292_v19 = vld [vmem:[%s9175_s28 + $0x58] sm:$0xff]  ;;  %7559 = vmatpush3.msk.msra.mxu0 %vm504_vm0, %v6341_v2  ;;  %v9223_v23 = vsel %vm1190_vm3, %v1191_v12, %v1192_v13 }
  0x19   : > { %260 = vst.msk [vmem:[#allocation2 + $0x108] sm:$0xff] %vm225_vm1, %v11588_v1  ;;  %261 = vst.msk [vmem:[#allocation2 + $0x110] sm:$0xff] %vm225_vm1, %v11588_v1  ;;  %v293_v20 = vld [vmem:[%s9175_s28 + $0x60] sm:$0xff]  ;;  %v294_v21 = vld [vmem:[%s9175_s28 + $0x68] sm:$0xff]  ;;  %7608 = vmatprep.subr.msk.mxu0 %vm504_vm0, %v9204_v16 }
  0x1a   : > { %263 = vst.msk [vmem:[#allocation2 + $0x120] sm:$0xff] %vm225_vm1, %v11588_v1  ;;  %264 = vst.msk [vmem:[#allocation2 + $0x128] sm:$0xff] %vm225_vm1, %v11588_v1  ;;  %v295_v22 = vld [vmem:[%s9175_s28 + $0x70] sm:$0xff]  ;;  %v296_v24 = vld [vmem:[%s9175_s28 + $0x78] sm:$0xff] }
  0x1b   : > { %266 = vst.msk [vmem:[#allocation2 + $0x138] sm:$0xff] %vm225_vm1, %v11588_v1  ;;  %267 = vst.msk [vmem:[#allocation2 + $0x140] sm:$0xff] %vm225_vm1, %v11588_v1  ;;  %v297_v25 = vld [vmem:[%s9175_s28 + $0x80] sm:$0xff]  ;;  %v298_v26 = vld [vmem:[%s9175_s28 + $0x88] sm:$0xff] }
  0x1c   : > { %269 = vst.msk [vmem:[#allocation2 + $0x150] sm:$0xff] %vm225_vm1, %v11588_v1  ;;  %270 = vst.msk [vmem:[#allocation2 + $0x158] sm:$0xff] %vm225_vm1, %v11588_v1  ;;  %v299_v27 = vld [vmem:[%s9175_s28 + $0x90] sm:$0xff]  ;;  %v300_v28 = vld [vmem:[%s9175_s28 + $0x98] sm:$0xff] }
  0x1d   : > { %272 = vst.msk [vmem:[#allocation2 + $0x168] sm:$0xff] %vm225_vm1, %v11588_v1  ;;  %273 = vst.msk [vmem:[#allocation2 + $0x170] sm:$0xff] %vm225_vm1, %v11588_v1  ;;  %v301_v29 = vld [vmem:[%s9175_s28 + $0xa0] sm:$0xff]  ;;  %v302_v33 = vld [vmem:[%s9175_s28 + $0xa8] sm:$0xff] }
  0x1e   : > { %275 = vst.msk [vmem:[#allocation2 + $0x180] sm:$0xff] %vm225_vm1, %v11588_v1  ;;  %276 = vst.msk [vmem:[#allocation2 + $0x188] sm:$0xff] %vm225_vm1, %v11588_v1  ;;  %v303_v35 = vld [vmem:[%s9175_s28 + $0xb0] sm:$0xff]  ;;  %v304_v39 = vld [vmem:[%s9175_s28 + $0xb8] sm:$0xff] }
  0x1f   : > { %278 = vst.msk [vmem:[#allocation2 + $0x198] sm:$0xff] %vm225_vm1, %v11588_v1  ;;  %279 = vst.msk [vmem:[#allocation2 + $0x1a0] sm:$0xff] %vm225_vm1, %v11588_v1  ;;  %v305_v40 = vld [vmem:[%s9175_s28 + $0xc0] sm:$0xff]  ;;  %v306_v41 = vld [vmem:[%s9175_s28 + $0xc8] sm:$0xff] }
  0x20   : > { %232 = vst.msk [vmem:[#allocation2 + $0x28] sm:$0x3] %vm228_vm2, %v11588_v1  ;;  %229 = vst.msk [vmem:[#allocation2 + $0x10] sm:$0x3] %vm228_vm2, %v11588_v1  ;;  %v307_v42 = vld [vmem:[%s9175_s28 + $0xd0] sm:$0xff]  ;;  %v308_v43 = vld [vmem:[%s9175_s28 + $0xd8] sm:$0xff] }
  0x21   : > { %235 = vst.msk [vmem:[#allocation2 + $0x40] sm:$0x3] %vm228_vm2, %v11588_v1  ;;  %238 = vst.msk [vmem:[#allocation2 + $0x58] sm:$0x3] %vm228_vm2, %v11588_v1  ;;  %v309_v44 = vld [vmem:[%s9175_s28 + $0xe0] sm:$0xff]  ;;  %v310_v45 = vld [vmem:[%s9175_s28 + $0xe8] sm:$0xff] }
  0x22   : > { %241 = vst.msk [vmem:[#allocation2 + $0x70] sm:$0x3] %vm228_vm2, %v11588_v1  ;;  %244 = vst.msk [vmem:[#allocation2 + $0x88] sm:$0x3] %vm228_vm2, %v11588_v1 }
  0x23   : > { %247 = vst.msk [vmem:[#allocation2 + $0xa0] sm:$0x3] %vm228_vm2, %v11588_v1  ;;  %250 = vst.msk [vmem:[#allocation2 + $0xb8] sm:$0x3] %vm228_vm2, %v11588_v1 }
  0x24   : > { %253 = vst.msk [vmem:[#allocation2 + $0xd0] sm:$0x3] %vm228_vm2, %v11588_v1  ;;  %256 = vst.msk [vmem:[#allocation2 + $0xe8] sm:$0x3] %vm228_vm2, %v11588_v1 }
  0x25   : > { %259 = vst.msk [vmem:[#allocation2 + $0x100] sm:$0x3] %vm228_vm2, %v11588_v1  ;;  %262 = vst.msk [vmem:[#allocation2 + $0x118] sm:$0x3] %vm228_vm2, %v11588_v1 }
  0x26   : > { %265 = vst.msk [vmem:[#allocation2 + $0x130] sm:$0x3] %vm228_vm2, %v11588_v1  ;;  %268 = vst.msk [vmem:[#allocation2 + $0x148] sm:$0x3] %vm228_vm2, %v11588_v1 }
  0x27   : > { %271 = vst.msk [vmem:[#allocation2 + $0x160] sm:$0x3] %vm228_vm2, %v11588_v1  ;;  %274 = vst.msk [vmem:[#allocation2 + $0x178] sm:$0x3] %vm228_vm2, %v11588_v1  ;;  %v348_v52 = vld [vmem:[#allocation2 + $0x10] sm:$0x3] }
  0x28   : > { %277 = vst.msk [vmem:[#allocation2 + $0x190] sm:$0x3] %vm228_vm2, %v11588_v1  ;;  %280 = vst.msk [vmem:[#allocation2 + $0x1a8] sm:$0x3] %vm228_vm2, %v11588_v1  ;;  %v1194_v54 = vrot.slane %v348_v52, 2 }
  0x29   : > { %314 = vst.msk [vmem:[#allocation2 + $0x19] sm:$0xff] %vm225_vm1, %v281_v3  ;;  %315 = vst.msk [vmem:[#allocation2 + $0x21] sm:$0xff] %vm225_vm1, %v282_v4 }
  0x2a   : > { %316 = vst.msk [vmem:[#allocation2 + $0x31] sm:$0xff] %vm225_vm1, %v283_v5  ;;  %317 = vst.msk [vmem:[#allocation2 + $0x39] sm:$0xff] %vm225_vm1, %v284_v6  ;;  %v9319_v56 = vsel %vm1190_vm3, %v1192_v13, %v1194_v54  ;;  %v787_v13 = vrot.slane %v348_v52, 1 }
  0x2b   : > { %318 = vst.msk [vmem:[#allocation2 + $0x49] sm:$0xff] %vm225_vm1, %v285_v7  ;;  %319 = vst.msk [vmem:[#allocation2 + $0x51] sm:$0xff] %vm225_vm1, %v286_v8  ;;  %v784_v7 = vrot.slane %v9186_v9, 1  ;;  %v785_v8 = vrot.slane %v9188_v10, 1 }
  0x2c   : > { %320 = vst.msk [vmem:[#allocation2 + $0x61] sm:$0xff] %vm225_vm1, %v287_v11  ;;  %321 = vst.msk [vmem:[#allocation2 + $0x69] sm:$0xff] %vm225_vm1, %v288_v14 }
  0x2d   : > { %322 = vst.msk [vmem:[#allocation2 + $0x79] sm:$0xff] %vm225_vm1, %v289_v15  ;;  %323 = vst.msk [vmem:[#allocation2 + $0x81] sm:$0xff] %vm225_vm1, %v290_v17  ;;  %v786_v9 = vsel %vm783_vm4, %v784_v7, %v785_v8  ;;  %v788_v10 = vsel %vm783_vm4, %v785_v8, %v787_v13 }
  0x2e   : > { %324 = vst.msk [vmem:[#allocation2 + $0x91] sm:$0xff] %vm225_vm1, %v291_v18  ;;  %325 = vst.msk [vmem:[#allocation2 + $0x99] sm:$0xff] %vm225_vm1, %v292_v19 }
  0x2f   : > { %326 = vst.msk [vmem:[#allocation2 + $0xa9] sm:$0xff] %vm225_vm1, %v293_v20  ;;  %327 = vst.msk [vmem:[#allocation2 + $0xb1] sm:$0xff] %vm225_vm1, %v294_v21 }
  0x30   : > { %328 = vst.msk [vmem:[#allocation2 + $0xc1] sm:$0xff] %vm225_vm1, %v295_v22  ;;  %329 = vst.msk [vmem:[#allocation2 + $0xc9] sm:$0xff] %vm225_vm1, %v296_v24  ;;  %v9239_v30 = vld [vmem:[#allocation2 + $0x18] sm:$0xff]  ;;  %v9241_v31 = vld [vmem:[#allocation2 + $0x20] sm:$0xff] }
  0x31   : > { %330 = vst.msk [vmem:[#allocation2 + $0xd9] sm:$0xff] %vm225_vm1, %v297_v25  ;;  %331 = vst.msk [vmem:[#allocation2 + $0xe1] sm:$0xff] %vm225_vm1, %v298_v26  ;;  %v9243_v32 = vld [vmem:[#allocation2 + $0x30] sm:$0xff]  ;;  %7513 = vmatprep.mubr.msk.f32.mxu0 %vm225_vm1, %v9239_v30  ;;  %v9255_v34 = vld [vmem:[#allocation2 + $0x38] sm:$0xff]  ;;  %v789_v14 = vrot.slane %v9239_v30, 1  ;;  %v790_v15 = vrot.slane %v9241_v31, 1 }
  0x32   : > { %332 = vst.msk [vmem:[#allocation2 + $0xf1] sm:$0xff] %vm225_vm1, %v299_v27  ;;  %333 = vst.msk [vmem:[#allocation2 + $0xf9] sm:$0xff] %vm225_vm1, %v300_v28  ;;  %7514 = vmatmul.mubr.msk.f32.gmra.mrb[2].mxu0 %vm225_vm1, %v9241_v31  ;;  %v9259_v36 = vld [vmem:[#allocation2 + $0x48] sm:$0xff]  ;;  %v9266_v37 = vld [vmem:[#allocation2 + $0x50] sm:$0xff]  ;;  %v794_v20 = vrot.slane %v9243_v32, 1  ;;  %v795_v21 = vrot.slane %v9255_v34, 1 }
  0x33   : > { %334 = vst.msk [vmem:[#allocation2 + $0x109] sm:$0xff] %vm225_vm1, %v301_v29  ;;  %7516 = vmatprep.mubr.msk.f32.mxu0 %vm225_vm1, %v9243_v32  ;;  %335 = vst.msk [vmem:[#allocation2 + $0x111] sm:$0xff] %vm225_vm1, %v302_v33  ;;  %v9268_v38 = vld [vmem:[#allocation2 + $0x60] sm:$0xff]  ;;  %v9287_v46 = vld [vmem:[#allocation2 + $0x68] sm:$0xff]  ;;  %v9396_v19 = vsel %vm783_vm4, %v789_v14, %v790_v15  ;;  %v799_v28 = vrot.slane %v9259_v36, 1  ;;  %v800_v29 = vrot.slane %v9266_v37, 1 }
  0x34   : > { %336 = vst.msk [vmem:[#allocation2 + $0x121] sm:$0xff] %vm225_vm1, %v303_v35  ;;  %337 = vst.msk [vmem:[#allocation2 + $0x129] sm:$0xff] %vm225_vm1, %v304_v39  ;;  %v9290_v47 = vld [vmem:[#allocation2 + $0x78] sm:$0xff]  ;;  %v9296_v48 = vld [vmem:[#allocation2 + $0x80] sm:$0xff]  ;;  %v9417_v27 = vsel %vm783_vm4, %v794_v20, %v795_v21 }
  0x35   : > { %338 = vst.msk [vmem:[#allocation2 + $0x139] sm:$0xff] %vm225_vm1, %v305_v40  ;;  %339 = vst.msk [vmem:[#allocation2 + $0x141] sm:$0xff] %vm225_vm1, %v306_v41  ;;  %v9298_v49 = vld [vmem:[#allocation2 + $0x90] sm:$0xff]  ;;  %v9304_v50 = vld [vmem:[#allocation2 + $0x98] sm:$0xff]  ;;  %v9434_v39 = vsel %vm783_vm4, %v799_v28, %v800_v29  ;;  %v804_v40 = vrot.slane %v9268_v38, 1  ;;  %v805_v41 = vrot.slane %v9287_v46, 1 }
  0x36   : > { %7517 = vmatmul.mubr.msk.f32.gmra.mrb[4].mxu0 %vm225_vm1, %v9255_v34  ;;  %340 = vst.msk [vmem:[#allocation2 + $0x151] sm:$0xff] %vm225_vm1, %v307_v42  ;;  %341 = vst.msk [vmem:[#allocation2 + $0x159] sm:$0xff] %vm225_vm1, %v308_v43  ;;  %v9306_v51 = vld [vmem:[#allocation2 + $0xa8] sm:$0xff]  ;;  %v9312_v53 = vld [vmem:[#allocation2 + $0xb0] sm:$0xff]  ;;  %v809_v52 = vrot.slane %v9290_v47, 1  ;;  %v810_v54 = vrot.slane %v9296_v48, 1 }
  0x37   : > { %7519 = vmatprep.mubr.msk.f32.mxu0 %vm225_vm1, %v9259_v36  ;;  %342 = vst.msk [vmem:[#allocation2 + $0x169] sm:$0xff] %vm225_vm1, %v309_v44  ;;  %343 = vst.msk [vmem:[#allocation2 + $0x171] sm:$0xff] %vm225_vm1, %v310_v45  ;;  %v9314_v55 = vld [vmem:[#allocation2 + $0xc0] sm:$0xff]  ;;  %v9325_v57 = vld [vmem:[#allocation2 + $0xc8] sm:$0xff]  ;;  %v9449_v45 = vsel %vm783_vm4, %v804_v40, %v805_v41  ;;  %v820_v28 = vrot.slane %v9312_v53, 1 }
  0x38   : > { %v9327_v58 = vld [vmem:[#allocation2 + $0xd8] sm:$0xff]  ;;  %v9333_v59 = vld [vmem:[#allocation2 + $0xe0] sm:$0xff]  ;;  %v9388_v17 = vld [vmem:[#allocation2 + $0x28] sm:$0x3]  ;;  %11735 = vst [vmem:[#allocation4_spill] sm:$0xff] %v9434_v39  ;;  %v9464_v14 = vsel %vm783_vm4, %v809_v52, %v810_v54  ;;  %v825_v52 = vrot.slane %v9325_v57, 1 }
  0x39   : > { %v9335_v60 = vld [vmem:[#allocation2 + $0xf0] sm:$0xff]  ;;  %v9341_v61 = vld [vmem:[#allocation2 + $0xf8] sm:$0xff]  ;;  %v792_v18 = vrot.slane %v9388_v17, 1  ;;  %v9400_v22 = vld [vmem:[#allocation2 + $0x40] sm:$0x3]  ;;  %11737 = vst [vmem:[#allocation6_spill] sm:$0xff] %v9449_v45 }
  0x3a   : > { %7520 = vmatmul.mubr.msk.f32.gmra.mrb[6].mxu0 %vm225_vm1, %v9266_v37  ;;  %v9343_v62 = vld [vmem:[#allocation2 + $0x108] sm:$0xff]  ;;  %v9349_v63 = vld [vmem:[#allocation2 + $0x110] sm:$0xff]  ;;  %v797_v26 = vrot.slane %v9400_v22, 1  ;;  %v9421_v33 = vld [vmem:[#allocation2 + $0x58] sm:$0x3]  ;;  %11739 = vst [vmem:[#allocation8_spill] sm:$0xff] %v9464_v14 }
  0x3b   : > { %7522 = vmatprep.mubr.msk.f32.mxu0 %vm225_vm1, %v9268_v38  ;;  %v9351_v0 = vld [vmem:[#allocation2 + $0x120] sm:$0xff]  ;;  %v9357_v2 = vld [vmem:[#allocation2 + $0x128] sm:$0xff]  ;;  %v9413_v25 = vsel %vm783_vm4, %v790_v15, %v792_v18  ;;  %v802_v35 = vrot.slane %v9421_v33, 1  ;;  %v9438_v42 = vld [vmem:[#allocation2 + $0x70] sm:$0x3]  ;;  %v814_v15 = vrot.slane %v9298_v49, 1 }
  0x3c   : > { %v9359_v3 = vld [vmem:[#allocation2 + $0x138] sm:$0xff]  ;;  %v9365_v4 = vld [vmem:[#allocation2 + $0x140] sm:$0xff]  ;;  %v9405_v24 = vld [vmem:[%s11583_s1 + $0xc] sm:$0xf]  ;;  %v807_v44 = vrot.slane %v9438_v42, 1 }
  0x3d   : > { %v9367_v5 = vld [vmem:[#allocation2 + $0x150] sm:$0xff]  ;;  %v9373_v6 = vld [vmem:[#allocation2 + $0x158] sm:$0xff]  ;;  %v9445_v43 = vsel %vm783_vm4, %v800_v29, %v802_v35  ;;  %v9453_v7 = vld [vmem:[#allocation2 + $0x88] sm:$0x3] }
  0x3e   : > { %7523 = vmatmul.mubr.msk.f32.gmra.mrb[8].mxu0 %vm225_vm1, %v9287_v46  ;;  %v9377_v11 = vld [vmem:[#allocation2 + $0x168] sm:$0xff]  ;;  %v9383_v12 = vld [vmem:[#allocation2 + $0x170] sm:$0xff]  ;;  %11736 = vst [vmem:[#allocation5_spill] sm:$0xff] %v9445_v43  ;;  %v9460_v8 = vsel %vm783_vm4, %v805_v41, %v807_v44  ;;  %v812_v13 = vrot.slane %v9453_v7, 1  ;;  %v9483_v29 = vld [vmem:[#allocation2 + $0xb8] sm:$0x3] }
  0x3f   : > { %7525 = vmatprep.mubr.msk.f32.mxu0 %vm225_vm1, %v9290_v47  ;;  %11738 = vst [vmem:[#allocation7_spill] sm:$0xff] %v9460_v8  ;;  %v822_v40 = vrot.slane %v9483_v29, 1  ;;  %v824_v44 = vrot.slane %v9314_v55, 1  ;;  %v9513_v1 = vld [vmem:[#allocation2 + $0xe8] sm:$0x3] }
  0x40   : > { %v9475_v18 = vsel %vm783_vm4, %v810_v54, %v812_v13  ;;  %v9498_v54 = vld [vmem:[#allocation2 + $0xd0] sm:$0x3] }
  0x41   : > { %11740 = vst [vmem:[#allocation9_spill] sm:$0xff] %v9475_v18  ;;  %v9505_v13 = vsel %vm783_vm4, %v820_v28, %v822_v40  ;;  %v832_v40 = vrot.slane %v9513_v1, 1 }
  0x42   : > { %7526 = vmatmul.mubr.msk.f32.gmra.mrb[10].mxu0 %vm225_vm1, %v9296_v48  ;;  %11744 = vst [vmem:[#allocation13_spill] sm:$0xff] %v9505_v13 }
  0x43   : > { %7528 = vmatprep.mubr.msk.f32.mxu0 %vm225_vm1, %v9298_v49 }
  0x46   : > { %7529 = vmatmul.mubr.msk.f32.gmra.mrb[12].mxu0 %vm225_vm1, %v9304_v50 }
  0x47   : > { %7531 = vmatprep.mubr.msk.f32.mxu0 %vm225_vm1, %v9306_v51 }
  0x4a   : > { %7532 = vmatmul.mubr.msk.f32.gmra.mrb[14].mxu0 %vm225_vm1, %v9312_v53 }
  0x4b   : > { %7534 = vmatprep.mubr.msk.f32.mxu0 %vm225_vm1, %v9314_v55 }
  0x4e   : > { %7535 = vmatmul.mubr.msk.f32.gmra.mrb[16].mxu0 %vm225_vm1, %v9325_v57 }
  0x4f   : > { %7537 = vmatprep.mubr.msk.f32.mxu0 %vm225_vm1, %v9327_v58 }
  0x52   : > { %7538 = vmatmul.mubr.msk.f32.gmra.mrb[18].mxu0 %vm225_vm1, %v9333_v59 }
  0x53   : > { %7540 = vmatprep.mubr.msk.f32.mxu0 %vm225_vm1, %v9335_v60 }
  0x56   : > { %7541 = vmatmul.mubr.msk.f32.gmra.mrb[20].mxu0 %vm225_vm1, %v9341_v61 }
  0x57   : > { %7543 = vmatprep.mubr.msk.f32.mxu0 %vm225_vm1, %v9343_v62 }
  0x5a   : > { %7544 = vmatmul.mubr.msk.f32.gmra.mrb[22].mxu0 %vm225_vm1, %v9349_v63 }
  0x5b   : > { %7546 = vmatprep.mubr.msk.f32.mxu0 %vm225_vm1, %v9351_v0 }
  0x5e   : > { %7547 = vmatmul.mubr.msk.f32.gmra.mrb[24].mxu0 %vm225_vm1, %v9357_v2 }
  0x5f   : > { %7549 = vmatprep.mubr.msk.f32.mxu0 %vm225_vm1, %v9359_v3 }
  0x62   : > { %7550 = vmatmul.mubr.msk.f32.gmra.mrb[26].mxu0 %vm225_vm1, %v9365_v4 }
  0x63   : > { %7552 = vmatprep.mubr.msk.f32.mxu0 %vm225_vm1, %v9367_v5 }
  0x66   : > { %7553 = vmatmul.mubr.msk.f32.gmra.mrb[28].mxu0 %vm225_vm1, %v9373_v6 }
  0x67   : > { %7555 = vmatprep.mubr.msk.f32.mxu0 %vm225_vm1, %v9377_v11 }
  0x6a   : > { %7556 = vmatmul.mubr.msk.f32.gmra.mrb[30].mxu0 %vm225_vm1, %v9383_v12 }
  0x6b   : > { %7560 = vmatprep.mubr.msk.f32.mxu0 %vm225_vm1, %v786_v9  ;;  %v815_v9 = vrot.slane %v9304_v50, 1 }
  0x6e   : > { %7561 = vmatmul.mubr.msk.f32.vlgmr.msra.gmra.mrb[0].mxu0 %vm225_vm1, %v788_v10  ;;  %v9468_v10 = vld [vmem:[#allocation2 + $0xa0] sm:$0x3] }
  0x6f   : > { %7609 = vmatpush3.msk.msra.mxu0 %vm504_vm0, %v9204_v16  ;;  %7563 = vmatprep.mubr.msk.f32.mxu0 %vm225_vm1, %v9396_v19  ;;  %v9430_v16 = vsel %vm783_vm4, %v795_v21, %v797_v26  ;;  %v817_v20 = vrot.slane %v9468_v10, 1  ;;  %v9479_v21 = vsel %vm783_vm4, %v814_v15, %v815_v9  ;;  %v819_v26 = vrot.slane %v9306_v51, 1 }
  0x70   : > { %7658 = vmatprep.subr.msk.mxu0 %vm504_vm0, %v9405_v24  ;;  %11741 = vst [vmem:[#allocation10_spill] sm:$0xff] %v9479_v21  ;;  %v827_v15 = vrot.slane %v9498_v54, 1 }
  0x71   : > { %v9490_v35 = vsel %vm783_vm4, %v815_v9, %v817_v20  ;;  %v9494_v41 = vsel %vm783_vm4, %v819_v26, %v820_v28  ;;  %v9509_v9 = vsel %vm783_vm4, %v824_v44, %v825_v52  ;;  %v829_v20 = vrot.slane %v9327_v58, 1 }
  0x72   : > { %7564 = vmatmul.mubr.msk.f32.gmra.mrb[2].mxu0 %vm225_vm1, %v9413_v25  ;;  %11742 = vst [vmem:[#allocation11_spill] sm:$0xff] %v9490_v35  ;;  %11743 = vst [vmem:[#allocation12_spill] sm:$0xff] %v9494_v41  ;;  %v830_v26 = vrot.slane %v9333_v59, 1  ;;  %v9520_v28 = vsel %vm783_vm4, %v825_v52, %v827_v15 }
  0x73   : > { %7566 = vmatprep.mubr.msk.f32.mxu0 %vm225_vm1, %v9417_v27  ;;  %11745 = vst [vmem:[#allocation14_spill] sm:$0xff] %v9509_v9  ;;  %11746 = vst [vmem:[#allocation15_spill] sm:$0xff] %v9520_v28 }
  0x74   : > { %v9524_v44 = vsel %vm783_vm4, %v829_v20, %v830_v26  ;;  %v9535_v52 = vsel %vm783_vm4, %v830_v26, %v832_v40 }
  0x75   : > { %11747 = vst [vmem:[#allocation16_spill] sm:$0xff] %v9524_v44  ;;  %11748 = vst [vmem:[#allocation17_spill] sm:$0xff] %v9535_v52 }
  0x76   : > { %7567 = vmatmul.mubr.msk.f32.gmra.mrb[4].mxu0 %vm225_vm1, %v9430_v16 }
  0x77   : > { %7569 = vmatprep.mubr.msk.f32.mxu0 %vm225_vm1, %v9434_v39  ;;  %v311_v39 = vld [vmem:[%s9175_s28 + $0xf0] sm:$0xff] }
  0x78   : > { %344 = vst.msk [vmem:[#allocation2 + $0x181] sm:$0xff] %vm225_vm1, %v311_v39 }
  0x7a   : > { %7570 = vmatmul.mubr.msk.f32.gmra.mrb[6].mxu0 %vm225_vm1, %v9445_v43  ;;  %v9603_v43 = vld [vmem:[#allocation2 + $0x178] sm:$0x3] }
  0x7b   : > { %7572 = vmatprep.mubr.msk.f32.mxu0 %vm225_vm1, %v9449_v45  ;;  %v9588_v45 = vld [vmem:[#allocation2 + $0x160] sm:$0x3] }
  0x7e   : > { %7573 = vmatmul.mubr.msk.f32.gmra.mrb[8].mxu0 %vm225_vm1, %v9460_v8  ;;  %v9573_v8 = vld [vmem:[#allocation2 + $0x148] sm:$0x3] }
  0x7f   : > { %7575 = vmatprep.mubr.msk.f32.mxu0 %vm225_vm1, %v9464_v14  ;;  %v9558_v14 = vld [vmem:[#allocation2 + $0x130] sm:$0x3] }
  0x82   : > { %7576 = vmatmul.mubr.msk.f32.gmra.mrb[10].mxu0 %vm225_vm1, %v9475_v18  ;;  %v9543_v18 = vld [vmem:[#allocation2 + $0x118] sm:$0x3] }
  0x83   : > { %7578 = vmatprep.mubr.msk.f32.mxu0 %vm225_vm1, %v9479_v21  ;;  %v9528_v21 = vld [vmem:[#allocation2 + $0x100] sm:$0x3]  ;;  %v842_v40 = vrot.slane %v9543_v18, 1 }
  0x84   : > { %v837_v15 = vrot.slane %v9528_v21, 1 }
  0x86   : > { %7579 = vmatmul.mubr.msk.f32.gmra.mrb[12].mxu0 %vm225_vm1, %v9490_v35  ;;  %v835_v35 = vrot.slane %v9341_v61, 1 }
  0x87   : > { %7581 = vmatprep.mubr.msk.f32.mxu0 %vm225_vm1, %v9494_v41  ;;  %v834_v41 = vrot.slane %v9335_v60, 1 }
  0x88   : > { %v9550_v26 = vsel %vm783_vm4, %v835_v35, %v837_v15  ;;  %v847_v15 = vrot.slane %v9558_v14, 1 }
  0x89   : > { %v9539_v20 = vsel %vm783_vm4, %v834_v41, %v835_v35  ;;  %11750 = vst [vmem:[#allocation19_spill] sm:$0xff] %v9550_v26 }
  0x8a   : > { %7582 = vmatmul.mubr.msk.f32.gmra.mrb[14].mxu0 %vm225_vm1, %v9505_v13  ;;  %11749 = vst [vmem:[#allocation18_spill] sm:$0xff] %v9539_v20  ;;  %v840_v13 = vrot.slane %v9349_v63, 1 }
  0x8b   : > { %7584 = vmatprep.mubr.msk.f32.mxu0 %vm225_vm1, %v9509_v9  ;;  %v839_v9 = vrot.slane %v9343_v62, 1 }
  0x8c   : > { %v9565_v35 = vsel %vm783_vm4, %v840_v13, %v842_v40 }
  0x8d   : > { %v9554_v41 = vsel %vm783_vm4, %v839_v9, %v840_v13  ;;  %11752 = vst [vmem:[#allocation21_spill] sm:$0xff] %v9565_v35 }
  0x8e   : > { %7585 = vmatmul.mubr.msk.f32.gmra.mrb[16].mxu0 %vm225_vm1, %v9520_v28  ;;  %11751 = vst [vmem:[#allocation20_spill] sm:$0xff] %v9554_v41  ;;  %v845_v28 = vrot.slane %v9357_v2, 1 }
  0x8f   : > { %7587 = vmatprep.mubr.msk.f32.mxu0 %vm225_vm1, %v9524_v44  ;;  %v844_v44 = vrot.slane %v9351_v0, 1 }
  0x90   : > { %v9580_v13 = vsel %vm783_vm4, %v845_v28, %v847_v15  ;;  %v857_v15 = vrot.slane %v9588_v45, 1 }
  0x91   : > { %v9569_v9 = vsel %vm783_vm4, %v844_v44, %v845_v28  ;;  %11754 = vst [vmem:[#allocation23_spill] sm:$0xff] %v9580_v13  ;;  %v852_v44 = vrot.slane %v9573_v8, 1 }
  0x92   : > { %7588 = vmatmul.mubr.msk.f32.gmra.mrb[18].mxu0 %vm225_vm1, %v9535_v52  ;;  %11753 = vst [vmem:[#allocation22_spill] sm:$0xff] %v9569_v9  ;;  %v850_v52 = vrot.slane %v9365_v4, 1 }
  0x93   : > { %7590 = vmatprep.mubr.msk.f32.mxu0 %vm225_vm1, %v9539_v20  ;;  %v849_v20 = vrot.slane %v9359_v3, 1 }
  0x94   : > { %v9595_v28 = vsel %vm783_vm4, %v850_v52, %v852_v44 }
  0x95   : > { %v9584_v40 = vsel %vm783_vm4, %v849_v20, %v850_v52 }
  0x96   : > { %7591 = vmatmul.mubr.msk.f32.gmra.mrb[20].mxu0 %vm225_vm1, %v9550_v26  ;;  %11755 = vst [vmem:[#allocation24_spill] sm:$0xff] %v9584_v40  ;;  %v855_v26 = vrot.slane %v9373_v6, 1 }
  0x97   : > { %7593 = vmatprep.mubr.msk.f32.mxu0 %vm225_vm1, %v9554_v41  ;;  %v854_v41 = vrot.slane %v9367_v5, 1 }
  0x98   : > { %v9614_v52 = vsel %vm783_vm4, %v855_v26, %v857_v15  ;;  %v1201_v15 = vrot.slane %v9243_v32, 2 }
  0x99   : > { %v9599_v20 = vsel %vm783_vm4, %v854_v41, %v855_v26  ;;  %v862_v41 = vrot.slane %v9603_v43, 1  ;;  %v1199_v26 = vrot.slane %v9388_v17, 2  ;;  %v1204_v17 = vrot.slane %v9400_v22, 2 }
  0x9a   : > { %7594 = vmatmul.mubr.msk.f32.gmra.mrb[22].mxu0 %vm225_vm1, %v9565_v35  ;;  %11756 = vst [vmem:[#allocation25_spill] sm:$0xff] %v9599_v20  ;;  %v860_v35 = vrot.slane %v9383_v12, 1  ;;  %v1209_v22 = vrot.slane %v9421_v33, 2 }
  0x9b   : > { %7596 = vmatprep.mubr.msk.f32.mxu0 %vm225_vm1, %v9569_v9  ;;  %v859_v9 = vrot.slane %v9377_v11, 1 }
  0x9c   : > { %v9625_v39 = vsel %vm783_vm4, %v860_v35, %v862_v41  ;;  %v9642_v41 = vld [vmem:[%s11583_s1 + $0x10] sm:$0xf] }
  0x9d   : > { %v9618_v44 = vsel %vm783_vm4, %v859_v9, %v860_v35  ;;  %11758 = vst [vmem:[#allocation27_spill] sm:$0xff] %v9625_v39  ;;  %v1202_v35 = vrot.slane %v9255_v34, 2 }
  0x9e   : > { %7597 = vmatmul.mubr.msk.f32.gmra.mrb[24].mxu0 %vm225_vm1, %v9580_v13  ;;  %v312_v13 = vld [vmem:[%s9175_s28 + $0xf8] sm:$0xff]  ;;  %11757 = vst [vmem:[#allocation26_spill] sm:$0xff] %v9618_v44 }
  0x9f   : > { %7599 = vmatprep.mubr.msk.f32.mxu0 %vm225_vm1, %v9584_v40  ;;  %345 = vst.msk [vmem:[#allocation2 + $0x189] sm:$0xff] %vm225_vm1, %v312_v13  ;;  %v1196_v13 = vrot.slane %v9239_v30, 2 }
  0xa2   : > { %7600 = vmatmul.mubr.msk.f32.gmra.mrb[26].mxu0 %vm225_vm1, %v9595_v28 }
  0xa3   : > { %7602 = vmatprep.mubr.msk.f32.mxu0 %vm225_vm1, %v9599_v20  ;;  %v1197_v20 = vrot.slane %v9241_v31, 2 }
  0xa5   : > { %v9635_v9 = vsel %vm1190_vm3, %v1196_v13, %v1197_v20  ;;  %v9655_v13 = vsel %vm1190_vm3, %v1201_v15, %v1202_v35 }
  0xa6   : > { %7603 = vmatmul.mubr.msk.f32.gmra.mrb[28].mxu0 %vm225_vm1, %v9614_v52 }
  0xa7   : > { %7605 = vmatprep.mubr.msk.f32.mxu0 %vm225_vm1, %v9618_v44  ;;  %v1207_v44 = vrot.slane %v9266_v37, 2 }
  0xa9   : > { %v9679_v15 = vsel %vm1190_vm3, %v1207_v44, %v1209_v22  ;;  %v1221_v22 = vrot.slane %v9298_v49, 2 }
  0xaa   : > { %7606 = vmatmul.mubr.msk.f32.gmra.mrb[30].mxu0 %vm225_vm1, %v9625_v39  ;;  %v1206_v39 = vrot.slane %v9259_v36, 2 }
  0xab   : > { %7610 = vmatprep.mubr.msk.f32.mxu0 %vm225_vm1, %v9223_v23  ;;  %v9651_v23 = vsel %vm1190_vm3, %v1197_v20, %v1199_v26  ;;  %v1211_v20 = vrot.slane %v9268_v38, 2  ;;  %v1212_v26 = vrot.slane %v9287_v46, 2 }
  0xad   : > { %v9683_v33 = vsel %vm1190_vm3, %v1211_v20, %v1212_v26  ;;  %v1222_v20 = vrot.slane %v9304_v50, 2 }
  0xae   : > { %7611 = vmatmul.mubr.msk.f32.vlgmr.msra.gmra.mrb[0].mxu0 %vm225_vm1, %v9319_v56  ;;  %v9666_v56 = vsel %vm1190_vm3, %v1202_v35, %v1204_v17  ;;  %v1214_v35 = vrot.slane %v9438_v42, 2  ;;  %11760 = vst [vmem:[#allocation29_spill] sm:$0xff] %v9683_v33  ;;  %v1217_v17 = vrot.slane %v9296_v48, 2 }
  0xaf   : > { %7659 = vmatpush3.msk.msra.mxu0 %vm504_vm0, %v9405_v24  ;;  %7613 = vmatprep.mubr.msk.f32.mxu0 %vm225_vm1, %v9635_v9  ;;  %v9670_v24 = vsel %vm1190_vm3, %v1206_v39, %v1207_v44  ;;  %v1216_v39 = vrot.slane %v9290_v47, 2  ;;  %v1219_v44 = vrot.slane %v9453_v7, 2  ;;  %v9709_v7 = vsel %vm1190_vm3, %v1221_v22, %v1222_v20 }
  0xb0   : > { %7708 = vmatprep.subr.msk.mxu0 %vm504_vm0, %v9642_v41  ;;  %11759 = vst [vmem:[#allocation28_spill] sm:$0xff] %v9670_v24  ;;  %11762 = vst [vmem:[#allocation31_spill] sm:$0xff] %v9709_v7  ;;  %v1232_v22 = vrot.slane %v9325_v57, 2 }
  0xb1   : > { %v9696_v42 = vsel %vm1190_vm3, %v1216_v39, %v1217_v17  ;;  %v1227_v39 = vrot.slane %v9312_v53, 2 }
  0xb2   : > { %7614 = vmatmul.mubr.msk.f32.gmra.mrb[2].mxu0 %vm225_vm1, %v9651_v23  ;;  %11761 = vst [vmem:[#allocation30_spill] sm:$0xff] %v9696_v42 }
  0xb3   : > { %7616 = vmatprep.mubr.msk.f32.mxu0 %vm225_vm1, %v9655_v13 }
  0xb6   : > { %7617 = vmatmul.mubr.msk.f32.gmra.mrb[4].mxu0 %vm225_vm1, %v9666_v56 }
  0xb7   : > { %7619 = vmatprep.mubr.msk.f32.mxu0 %vm225_vm1, %v9670_v24  ;;  %v9692_v24 = vsel %vm1190_vm3, %v1212_v26, %v1214_v35  ;;  %v1224_v26 = vrot.slane %v9468_v10, 2  ;;  %v1226_v35 = vrot.slane %v9306_v51, 2 }
  0xb9   : > { %v9722_v10 = vsel %vm1190_vm3, %v1226_v35, %v1227_v39  ;;  %v1237_v35 = vrot.slane %v9333_v59, 2 }
  0xba   : > { %7620 = vmatmul.mubr.msk.f32.gmra.mrb[6].mxu0 %vm225_vm1, %v9679_v15  ;;  %11763 = vst [vmem:[#allocation32_spill] sm:$0xff] %v9722_v10 }
  0xbb   : > { %7622 = vmatprep.mubr.msk.f32.mxu0 %vm225_vm1, %v9683_v33  ;;  %v9705_v33 = vsel %vm1190_vm3, %v1217_v17, %v1219_v44  ;;  %v1229_v17 = vrot.slane %v9483_v29, 2  ;;  %v1231_v44 = vrot.slane %v9314_v55, 2 }
  0xbd   : > { %v9735_v29 = vsel %vm1190_vm3, %v1231_v44, %v1232_v22  ;;  %v1242_v44 = vrot.slane %v9341_v61, 2 }
  0xbe   : > { %7623 = vmatmul.mubr.msk.f32.gmra.mrb[8].mxu0 %vm225_vm1, %v9692_v24  ;;  %11764 = vst [vmem:[#allocation33_spill] sm:$0xff] %v9735_v29 }
  0xbf   : > { %7625 = vmatprep.mubr.msk.f32.mxu0 %vm225_vm1, %v9696_v42  ;;  %v9718_v42 = vsel %vm1190_vm3, %v1222_v20, %v1224_v26  ;;  %v1234_v20 = vrot.slane %v9498_v54, 2  ;;  %v1236_v26 = vrot.slane %v9327_v58, 2 }
  0xc1   : > { %v9748_v54 = vsel %vm1190_vm3, %v1236_v26, %v1237_v35  ;;  %v1247_v26 = vrot.slane %v9349_v63, 2 }
  0xc2   : > { %7626 = vmatmul.mubr.msk.f32.gmra.mrb[10].mxu0 %vm225_vm1, %v9705_v33  ;;  %11765 = vst [vmem:[#allocation34_spill] sm:$0xff] %v9748_v54 }
  0xc3   : > { %7628 = vmatprep.mubr.msk.f32.mxu0 %vm225_vm1, %v9709_v7  ;;  %v9731_v7 = vsel %vm1190_vm3, %v1227_v39, %v1229_v17  ;;  %v1239_v39 = vrot.slane %v9513_v1, 2  ;;  %v1241_v17 = vrot.slane %v9335_v60, 2 }
  0xc5   : > { %v9761_v1 = vsel %vm1190_vm3, %v1241_v17, %v1242_v44  ;;  %v1252_v17 = vrot.slane %v9357_v2, 2 }
  0xc6   : > { %7629 = vmatmul.mubr.msk.f32.gmra.mrb[12].mxu0 %vm225_vm1, %v9718_v42  ;;  %11766 = vst [vmem:[#allocation35_spill] sm:$0xff] %v9761_v1 }
  0xc7   : > { %7631 = vmatprep.mubr.msk.f32.mxu0 %vm225_vm1, %v9722_v10  ;;  %v9744_v10 = vsel %vm1190_vm3, %v1232_v22, %v1234_v20  ;;  %v1244_v22 = vrot.slane %v9528_v21, 2  ;;  %v1246_v20 = vrot.slane %v9343_v62, 2 }
  0xc9   : > { %v9774_v21 = vsel %vm1190_vm3, %v1246_v20, %v1247_v26  ;;  %v1257_v20 = vrot.slane %v9365_v4, 2 }
  0xca   : > { %7632 = vmatmul.mubr.msk.f32.gmra.mrb[14].mxu0 %vm225_vm1, %v9731_v7  ;;  %11768 = vst [vmem:[#allocation37_spill] sm:$0xff] %v9774_v21 }
  0xcb   : > { %7634 = vmatprep.mubr.msk.f32.mxu0 %vm225_vm1, %v9735_v29  ;;  %v9757_v29 = vsel %vm1190_vm3, %v1237_v35, %v1239_v39  ;;  %v1249_v35 = vrot.slane %v9543_v18, 2  ;;  %v1251_v39 = vrot.slane %v9351_v0, 2 }
  0xcd   : > { %v9787_v18 = vsel %vm1190_vm3, %v1251_v39, %v1252_v17  ;;  %v1262_v39 = vrot.slane %v9373_v6, 2 }
  0xce   : > { %7635 = vmatmul.mubr.msk.f32.gmra.mrb[16].mxu0 %vm225_vm1, %v9744_v10  ;;  %11769 = vst [vmem:[#allocation38_spill] sm:$0xff] %v9787_v18 }
  0xcf   : > { %7637 = vmatprep.mubr.msk.f32.mxu0 %vm225_vm1, %v9748_v54  ;;  %v9770_v54 = vsel %vm1190_vm3, %v1242_v44, %v1244_v22  ;;  %v1254_v44 = vrot.slane %v9558_v14, 2  ;;  %v1256_v22 = vrot.slane %v9359_v3, 2 }
  0xd0   : > { %11767 = vst [vmem:[#allocation36_spill] sm:$0xff] %v9770_v54 }
  0xd1   : > { %v9800_v14 = vsel %vm1190_vm3, %v1256_v22, %v1257_v20  ;;  %v1267_v22 = vrot.slane %v9383_v12, 2 }
  0xd2   : > { %7638 = vmatmul.mubr.msk.f32.gmra.mrb[18].mxu0 %vm225_vm1, %v9757_v29  ;;  %11771 = vst [vmem:[#allocation40_spill] sm:$0xff] %v9800_v14 }
  0xd3   : > { %7640 = vmatprep.mubr.msk.f32.mxu0 %vm225_vm1, %v9761_v1  ;;  %v9783_v1 = vsel %vm1190_vm3, %v1247_v26, %v1249_v35  ;;  %v1259_v26 = vrot.slane %v9573_v8, 2  ;;  %v1261_v35 = vrot.slane %v9367_v5, 2 }
  0xd5   : > { %v9813_v8 = vsel %vm1190_vm3, %v1261_v35, %v1262_v39  ;;  %v11773_v35 = vld [vmem:[#allocation4_spill] sm:$0xff] }
  0xd6   : > { %7641 = vmatmul.mubr.msk.f32.gmra.mrb[20].mxu0 %vm225_vm1, %v9770_v54  ;;  %11772 = vst [vmem:[#allocation41_spill] sm:$0xff] %v9813_v8 }
  0xd7   : > { %7643 = vmatprep.mubr.msk.f32.mxu0 %vm225_vm1, %v9774_v21  ;;  %v9796_v21 = vsel %vm1190_vm3, %v1252_v17, %v1254_v44  ;;  %v1264_v17 = vrot.slane %v9588_v45, 2  ;;  %v1266_v44 = vrot.slane %v9377_v11, 2 }
  0xd8   : > { %11770 = vst [vmem:[#allocation39_spill] sm:$0xff] %v9796_v21 }
  0xd9   : > { %v9826_v45 = vsel %vm1190_vm3, %v1266_v44, %v1267_v22  ;;  %v11778_v44 = vld [vmem:[#allocation9_spill] sm:$0xff] }
  0xda   : > { %7644 = vmatmul.mubr.msk.f32.gmra.mrb[22].mxu0 %vm225_vm1, %v9783_v1 }
  0xdb   : > { %7646 = vmatprep.mubr.msk.f32.mxu0 %vm225_vm1, %v9787_v18  ;;  %v9809_v18 = vsel %vm1190_vm3, %v1257_v20, %v1259_v26  ;;  %v1269_v20 = vrot.slane %v9603_v43, 2  ;;  %v6477_v43 = vld [vmem:[%s11583_s1 + $0x14] sm:$0xf] }
  0xdd   : > { %v9833_v26 = vsel %vm1190_vm3, %v1267_v22, %v1269_v20  ;;  %v11779_v22 = vld [vmem:[#allocation10_spill] sm:$0xff]  ;;  %v11780_v20 = vld [vmem:[#allocation11_spill] sm:$0xff] }
  0xde   : > { %7647 = vmatmul.mubr.msk.f32.gmra.mrb[24].mxu0 %vm225_vm1, %v9796_v21 }
  0xdf   : > { %7649 = vmatprep.mubr.msk.f32.mxu0 %vm225_vm1, %v9800_v14  ;;  %v9822_v14 = vsel %vm1190_vm3, %v1262_v39, %v1264_v17  ;;  %v11775_v39 = vld [vmem:[#allocation6_spill] sm:$0xff]  ;;  %v11777_v17 = vld [vmem:[#allocation8_spill] sm:$0xff] }
  0xe2   : > { %7650 = vmatmul.mubr.msk.f32.gmra.mrb[26].mxu0 %vm225_vm1, %v9809_v18 }
  0xe3   : > { %7652 = vmatprep.mubr.msk.f32.mxu0 %vm225_vm1, %v9813_v8 }
  0xe6   : > { %7653 = vmatmul.mubr.msk.f32.gmra.mrb[28].mxu0 %vm225_vm1, %v9822_v14 }
  0xe7   : > { %7655 = vmatprep.mubr.msk.f32.mxu0 %vm225_vm1, %v9826_v45 }
  0xea   : > { %7656 = vmatmul.mubr.msk.f32.gmra.mrb[30].mxu0 %vm225_vm1, %v9833_v26 }
  0xeb   : > { %7660 = vmatprep.mubr.msk.f32.mxu0 %vm225_vm1, %v9239_v30  ;;  %v9901_v30 = vld [vmem:[#allocation2 + $0x180] sm:$0xff] }
  0xee   : > { %7661 = vmatmul.mubr.msk.f32.vlgmr.msra.gmra.mrb[0].mxu0 %vm225_vm1, %v9241_v31  ;;  %v9907_v31 = vld [vmem:[#allocation2 + $0x188] sm:$0xff] }
  0xef   : > { %7709 = vmatpush3.msk.msra.mxu0 %vm504_vm0, %v9642_v41  ;;  %7663 = vmatprep.mubr.msk.f32.mxu0 %vm225_vm1, %v9243_v32  ;;  %v6511_v41 = vld [vmem:[%s11583_s1 + $0x18] sm:$0xf] }
  0xf0   : > { %7758 = vmatprep.subr.msk.mxu0 %vm504_vm0, %v6477_v43 }
  0xf2   : > { %7664 = vmatmul.mubr.msk.f32.gmra.mrb[2].mxu0 %vm225_vm1, %v9255_v34 }
  0xf3   : > { %7666 = vmatprep.mubr.msk.f32.mxu0 %vm225_vm1, %v9259_v36 }
  0xf6   : > { %7667 = vmatmul.mubr.msk.f32.gmra.mrb[4].mxu0 %vm225_vm1, %v9266_v37 }
  0xf7   : > { %7669 = vmatprep.mubr.msk.f32.mxu0 %vm225_vm1, %v9268_v38 }
  0xfa   : > { %7670 = vmatmul.mubr.msk.f32.gmra.mrb[6].mxu0 %vm225_vm1, %v9287_v46 }
  0xfb   : > { %7672 = vmatprep.mubr.msk.f32.mxu0 %vm225_vm1, %v9290_v47 }
  0xfe   : > { %7673 = vmatmul.mubr.msk.f32.gmra.mrb[8].mxu0 %vm225_vm1, %v9296_v48 }
  0xff   : > { %7675 = vmatprep.mubr.msk.f32.mxu0 %vm225_vm1, %v9298_v49 }
 0x102   : > { %7676 = vmatmul.mubr.msk.f32.gmra.mrb[10].mxu0 %vm225_vm1, %v9304_v50 }
 0x103   : > { %7678 = vmatprep.mubr.msk.f32.mxu0 %vm225_vm1, %v9306_v51 }
 0x106   : > { %7679 = vmatmul.mubr.msk.f32.gmra.mrb[12].mxu0 %vm225_vm1, %v9312_v53 }
 0x107   : > { %7681 = vmatprep.mubr.msk.f32.mxu0 %vm225_vm1, %v9314_v55 }
 0x10a   : > { %7682 = vmatmul.mubr.msk.f32.gmra.mrb[14].mxu0 %vm225_vm1, %v9325_v57 }
 0x10b   : > { %7684 = vmatprep.mubr.msk.f32.mxu0 %vm225_vm1, %v9327_v58 }
 0x10e   : > { %7685 = vmatmul.mubr.msk.f32.gmra.mrb[16].mxu0 %vm225_vm1, %v9333_v59 }
 0x10f   : > { %7687 = vmatprep.mubr.msk.f32.mxu0 %vm225_vm1, %v9335_v60 }
 0x112   : > { %7688 = vmatmul.mubr.msk.f32.gmra.mrb[18].mxu0 %vm225_vm1, %v9341_v61 }
 0x113   : > { %7690 = vmatprep.mubr.msk.f32.mxu0 %vm225_vm1, %v9343_v62 }
 0x116   : > { %7691 = vmatmul.mubr.msk.f32.gmra.mrb[20].mxu0 %vm225_vm1, %v9349_v63 }
 0x117   : > { %7693 = vmatprep.mubr.msk.f32.mxu0 %vm225_vm1, %v9351_v0 }
 0x11a   : > { %7694 = vmatmul.mubr.msk.f32.gmra.mrb[22].mxu0 %vm225_vm1, %v9357_v2 }
 0x11b   : > { %7696 = vmatprep.mubr.msk.f32.mxu0 %vm225_vm1, %v9359_v3 }
 0x11e   : > { %7697 = vmatmul.mubr.msk.f32.gmra.mrb[24].mxu0 %vm225_vm1, %v9365_v4 }
 0x11f   : > { %7699 = vmatprep.mubr.msk.f32.mxu0 %vm225_vm1, %v9367_v5 }
 0x122   : > { %7700 = vmatmul.mubr.msk.f32.gmra.mrb[26].mxu0 %vm225_vm1, %v9373_v6 }
 0x123   : > { %7702 = vmatprep.mubr.msk.f32.mxu0 %vm225_vm1, %v9377_v11 }
 0x126   : > { %7703 = vmatmul.mubr.msk.f32.gmra.mrb[28].mxu0 %vm225_vm1, %v9383_v12 }
 0x127   : > { %7705 = vmatprep.mubr.msk.f32.mxu0 %vm225_vm1, %v9901_v30 }
 0x12a   : > { %7706 = vmatmul.mubr.msk.f32.gmra.mrb[30].mxu0 %vm225_vm1, %v9907_v31 }
 0x12b   : > { %7710 = vmatprep.mubr.msk.f32.mxu0 %vm225_vm1, %v9396_v19  ;;  %v11774_v19 = vld [vmem:[#allocation5_spill] sm:$0xff] }
 0x12e   : > { %7711 = vmatmul.mubr.msk.f32.vlgmr.msra.gmra.mrb[0].mxu0 %vm225_vm1, %v9413_v25  ;;  %v11776_v25 = vld [vmem:[#allocation7_spill] sm:$0xff] }
 0x12f   : > { %7759 = vmatpush3.msk.msra.mxu0 %vm504_vm0, %v6477_v43  ;;  %7713 = vmatprep.mubr.msk.f32.mxu0 %vm225_vm1, %v9417_v27  ;;  %v11781_v43 = vld [vmem:[#allocation12_spill] sm:$0xff] }
 0x130   : > { %7808 = vmatprep.subr.msk.mxu0 %vm504_vm0, %v6511_v41 }
 0x132   : > { %7714 = vmatmul.mubr.msk.f32.gmra.mrb[2].mxu0 %vm225_vm1, %v9430_v16 }
 0x133   : > { %7716 = vmatprep.mubr.msk.f32.mxu0 %vm225_vm1, %v11773_v35 }
 0x136   : > { %7717 = vmatmul.mubr.msk.f32.gmra.mrb[4].mxu0 %vm225_vm1, %v11774_v19  ;;  %v11782_v19 = vld [vmem:[#allocation13_spill] sm:$0xff] }
 0x137   : > { %7719 = vmatprep.mubr.msk.f32.mxu0 %vm225_vm1, %v11775_v39  ;;  %v11783_v39 = vld [vmem:[#allocation14_spill] sm:$0xff] }
 0x13a   : > { %7720 = vmatmul.mubr.msk.f32.gmra.mrb[6].mxu0 %vm225_vm1, %v11776_v25  ;;  %v11784_v25 = vld [vmem:[#allocation15_spill] sm:$0xff] }
 0x13b   : > { %7722 = vmatprep.mubr.msk.f32.mxu0 %vm225_vm1, %v11777_v17  ;;  %v11785_v17 = vld [vmem:[#allocation16_spill] sm:$0xff] }
 0x13e   : > { %7723 = vmatmul.mubr.msk.f32.gmra.mrb[8].mxu0 %vm225_vm1, %v11778_v44  ;;  %v11786_v44 = vld [vmem:[#allocation17_spill] sm:$0xff] }
 0x13f   : > { %7725 = vmatprep.mubr.msk.f32.mxu0 %vm225_vm1, %v11779_v22  ;;  %v11787_v22 = vld [vmem:[#allocation18_spill] sm:$0xff] }
 0x142   : > { %7726 = vmatmul.mubr.msk.f32.gmra.mrb[10].mxu0 %vm225_vm1, %v11780_v20  ;;  %v11788_v20 = vld [vmem:[#allocation19_spill] sm:$0xff] }
 0x143   : > { %7728 = vmatprep.mubr.msk.f32.mxu0 %vm225_vm1, %v11781_v43  ;;  %v11789_v43 = vld [vmem:[#allocation20_spill] sm:$0xff] }
 0x146   : > { %7729 = vmatmul.mubr.msk.f32.gmra.mrb[12].mxu0 %vm225_vm1, %v11782_v19  ;;  %v11790_v19 = vld [vmem:[#allocation21_spill] sm:$0xff] }
 0x147   : > { %7731 = vmatprep.mubr.msk.f32.mxu0 %vm225_vm1, %v11783_v39  ;;  %v11791_v39 = vld [vmem:[#allocation22_spill] sm:$0xff] }
 0x14a   : > { %7732 = vmatmul.mubr.msk.f32.gmra.mrb[14].mxu0 %vm225_vm1, %v11784_v25  ;;  %v11792_v25 = vld [vmem:[#allocation23_spill] sm:$0xff] }
 0x14b   : > { %7734 = vmatprep.mubr.msk.f32.mxu0 %vm225_vm1, %v11785_v17 }
 0x14e   : > { %7735 = vmatmul.mubr.msk.f32.gmra.mrb[16].mxu0 %vm225_vm1, %v11786_v44  ;;  %v11795_v44 = vld [vmem:[#allocation27_spill] sm:$0xff] }
 0x14f   : > { %7737 = vmatprep.mubr.msk.f32.mxu0 %vm225_vm1, %v11787_v22  ;;  %v11793_v22 = vld [vmem:[#allocation25_spill] sm:$0xff] }
 0x152   : > { %7738 = vmatmul.mubr.msk.f32.gmra.mrb[18].mxu0 %vm225_vm1, %v11788_v20  ;;  %v1867_v20 = vrot.slane %v9907_v31, 1 }
 0x153   : > { %7740 = vmatprep.mubr.msk.f32.mxu0 %vm225_vm1, %v11789_v43  ;;  %v1866_v43 = vrot.slane %v9901_v30, 1 }
 0x156   : > { %7741 = vmatmul.mubr.msk.f32.gmra.mrb[20].mxu0 %vm225_vm1, %v11790_v19  ;;  %v396_v19 = vld [vmem:[#allocation2 + $0x190] sm:$0x3] }
 0x157   : > { %7743 = vmatprep.mubr.msk.f32.mxu0 %vm225_vm1, %v11791_v39  ;;  %v11794_v39 = vld [vmem:[#allocation26_spill] sm:$0xff] }
 0x15a   : > { %7744 = vmatmul.mubr.msk.f32.gmra.mrb[22].mxu0 %vm225_vm1, %v11792_v25  ;;  %v1869_v25 = vrot.slane %v396_v19, 1 }
 0x15b   : > { %7746 = vmatprep.mubr.msk.f32.mxu0 %vm225_vm1, %v9584_v40  ;;  %v9977_v40 = vsel %vm783_vm4, %v1866_v43, %v1867_v20  ;;  %v6545_v43 = vld [vmem:[%s11583_s1 + $0x1c] sm:$0xf] }
 0x15e   : > { %7747 = vmatmul.mubr.msk.f32.gmra.mrb[24].mxu0 %vm225_vm1, %v9595_v28 }
 0x15f   : > { %7749 = vmatprep.mubr.msk.f32.mxu0 %vm225_vm1, %v11793_v22  ;;  %v9984_v22 = vsel %vm783_vm4, %v1867_v20, %v1869_v25  ;;  %v11796_v25 = vld [vmem:[#allocation28_spill] sm:$0xff] }
 0x160   : > { %v11800_v20 = vld [vmem:[#allocation32_spill] sm:$0xff] }
 0x162   : > { %7750 = vmatmul.mubr.msk.f32.gmra.mrb[26].mxu0 %vm225_vm1, %v9614_v52 }
 0x163   : > { %7752 = vmatprep.mubr.msk.f32.mxu0 %vm225_vm1, %v11794_v39 }
 0x166   : > { %7753 = vmatmul.mubr.msk.f32.gmra.mrb[28].mxu0 %vm225_vm1, %v11795_v44 }
 0x167   : > { %7755 = vmatprep.mubr.msk.f32.mxu0 %vm225_vm1, %v9977_v40 }
 0x16a   : > { %7756 = vmatmul.mubr.msk.f32.gmra.mrb[30].mxu0 %vm225_vm1, %v9984_v22 }
 0x16b   : > { %7760 = vmatprep.mubr.msk.f32.mxu0 %vm225_vm1, %v9635_v9  ;;  %v11797_v9 = vld [vmem:[#allocation29_spill] sm:$0xff] }
 0x16e   : > { %7761 = vmatmul.mubr.msk.f32.vlgmr.msra.gmra.mrb[0].mxu0 %vm225_vm1, %v9651_v23  ;;  %v11798_v23 = vld [vmem:[#allocation30_spill] sm:$0xff] }
 0x16f   : > { %7809 = vmatpush3.msk.msra.mxu0 %vm504_vm0, %v6511_v41  ;;  %7763 = vmatprep.mubr.msk.f32.mxu0 %vm225_vm1, %v9655_v13  ;;  %v11799_v41 = vld [vmem:[#allocation31_spill] sm:$0xff] }
 0x170   : > { %7858 = vmatprep.subr.msk.mxu0 %vm504_vm0, %v6545_v43 }
 0x172   : > { %7764 = vmatmul.mubr.msk.f32.gmra.mrb[2].mxu0 %vm225_vm1, %v9666_v56 }
 0x173   : > { %7766 = vmatprep.mubr.msk.f32.mxu0 %vm225_vm1, %v11796_v25 }
 0x176   : > { %7767 = vmatmul.mubr.msk.f32.gmra.mrb[4].mxu0 %vm225_vm1, %v9679_v15 }
 0x177   : > { %7769 = vmatprep.mubr.msk.f32.mxu0 %vm225_vm1, %v11797_v9  ;;  %v11801_v9 = vld [vmem:[#allocation33_spill] sm:$0xff] }
 0x17a   : > { %7770 = vmatmul.mubr.msk.f32.gmra.mrb[6].mxu0 %vm225_vm1, %v9692_v24 }
 0x17b   : > { %7772 = vmatprep.mubr.msk.f32.mxu0 %vm225_vm1, %v11798_v23  ;;  %v11802_v23 = vld [vmem:[#allocation34_spill] sm:$0xff] }
 0x17e   : > { %7773 = vmatmul.mubr.msk.f32.gmra.mrb[8].mxu0 %vm225_vm1, %v9705_v33 }
 0x17f   : > { %7775 = vmatprep.mubr.msk.f32.mxu0 %vm225_vm1, %v11799_v41  ;;  %v11803_v41 = vld [vmem:[#allocation35_spill] sm:$0xff] }
 0x182   : > { %7776 = vmatmul.mubr.msk.f32.gmra.mrb[10].mxu0 %vm225_vm1, %v9718_v42 }
 0x183   : > { %7778 = vmatprep.mubr.msk.f32.mxu0 %vm225_vm1, %v11800_v20  ;;  %v11804_v20 = vld [vmem:[#allocation37_spill] sm:$0xff] }
 0x186   : > { %7779 = vmatmul.mubr.msk.f32.gmra.mrb[12].mxu0 %vm225_vm1, %v9731_v7 }
 0x187   : > { %7781 = vmatprep.mubr.msk.f32.mxu0 %vm225_vm1, %v11801_v9  ;;  %v11805_v9 = vld [vmem:[#allocation38_spill] sm:$0xff] }
 0x18a   : > { %7782 = vmatmul.mubr.msk.f32.gmra.mrb[14].mxu0 %vm225_vm1, %v9744_v10 }
 0x18b   : > { %7784 = vmatprep.mubr.msk.f32.mxu0 %vm225_vm1, %v11802_v23  ;;  %v11806_v23 = vld [vmem:[#allocation40_spill] sm:$0xff] }
 0x18e   : > { %7785 = vmatmul.mubr.msk.f32.gmra.mrb[16].mxu0 %vm225_vm1, %v9757_v29 }
 0x18f   : > { %7787 = vmatprep.mubr.msk.f32.mxu0 %vm225_vm1, %v11803_v41 }
 0x192   : > { %7788 = vmatmul.mubr.msk.f32.gmra.mrb[18].mxu0 %vm225_vm1, %v9770_v54  ;;  %v2138_v54 = vrot.slane %v9907_v31, 2 }
 0x193   : > { %7790 = vmatprep.mubr.msk.f32.mxu0 %vm225_vm1, %v11804_v20  ;;  %v2137_v20 = vrot.slane %v9901_v30, 2 }
 0x196   : > { %7791 = vmatmul.mubr.msk.f32.gmra.mrb[20].mxu0 %vm225_vm1, %v9783_v1 }
 0x197   : > { %7793 = vmatprep.mubr.msk.f32.mxu0 %vm225_vm1, %v11805_v9  ;;  %v10054_v9 = vsel %vm1190_vm3, %v2137_v20, %v2138_v54 }
 0x19a   : > { %7794 = vmatmul.mubr.msk.f32.gmra.mrb[22].mxu0 %vm225_vm1, %v9796_v21  ;;  %v2140_v21 = vrot.slane %v396_v19, 2  ;;  %v6579_v19 = vld [vmem:[%s11583_s1 + $0x20] sm:$0xf] }
 0x19b   : > { %7796 = vmatprep.mubr.msk.f32.mxu0 %vm225_vm1, %v11806_v23 }
 0x19e   : > { %7797 = vmatmul.mubr.msk.f32.gmra.mrb[24].mxu0 %vm225_vm1, %v9809_v18 }
 0x19f   : > { %7799 = vmatprep.mubr.msk.f32.mxu0 %vm225_vm1, %v9813_v8  ;;  %v10061_v8 = vsel %vm1190_vm3, %v2138_v54, %v2140_v21  ;;  %v11838_v21 = vmov 0.0  }
 0x1a0   : > { %3255 = vst.msk [vmem:[#allocation3 + $0x20] sm:$0xff] %vm3249_vm5, %v11838_v21  ;;  %3250 = vst.msk [vmem:[#allocation3] sm:$0xff] %vm3249_vm5, %v11838_v21 }
 0x1a1   : > { %3251 = vst.msk [vmem:[#allocation3 + $0x8] sm:$0xff] %vm3249_vm5, %v11838_v21  ;;  %3254 = vst.msk [vmem:[#allocation3 + $0x18] sm:$0xff] %vm3249_vm5, %v11838_v21 }
 0x1a2   : > { %7800 = vmatmul.mubr.msk.f32.gmra.mrb[26].mxu0 %vm225_vm1, %v9822_v14  ;;  %3257 = vst.msk [vmem:[#allocation3 + $0x30] sm:$0xff] %vm3249_vm5, %v11838_v21  ;;  %3258 = vst.msk [vmem:[#allocation3 + $0x38] sm:$0xff] %vm3249_vm5, %v11838_v21 }
 0x1a3   : > { %7802 = vmatprep.mubr.msk.f32.mxu0 %vm225_vm1, %v9826_v45  ;;  %3260 = vst.msk [vmem:[#allocation3 + $0x48] sm:$0xff] %vm3249_vm5, %v11838_v21  ;;  %3261 = vst.msk [vmem:[#allocation3 + $0x50] sm:$0xff] %vm3249_vm5, %v11838_v21 }
 0x1a4   : > { %3263 = vst.msk [vmem:[#allocation3 + $0x60] sm:$0xff] %vm3249_vm5, %v11838_v21  ;;  %3264 = vst.msk [vmem:[#allocation3 + $0x68] sm:$0xff] %vm3249_vm5, %v11838_v21 }
 0x1a5   : > { %3266 = vst.msk [vmem:[#allocation3 + $0x78] sm:$0xff] %vm3249_vm5, %v11838_v21  ;;  %3267 = vst.msk [vmem:[#allocation3 + $0x80] sm:$0xff] %vm3249_vm5, %v11838_v21 }
 0x1a6   : > { %7803 = vmatmul.mubr.msk.f32.gmra.mrb[28].mxu0 %vm225_vm1, %v9833_v26  ;;  %3269 = vst.msk [vmem:[#allocation3 + $0x90] sm:$0xff] %vm3249_vm5, %v11838_v21  ;;  %3270 = vst.msk [vmem:[#allocation3 + $0x98] sm:$0xff] %vm3249_vm5, %v11838_v21 }
 0x1a7   : > { %7805 = vmatprep.mubr.msk.f32.mxu0 %vm225_vm1, %v10054_v9  ;;  %3272 = vst.msk [vmem:[#allocation3 + $0xa8] sm:$0xff] %vm3249_vm5, %v11838_v21  ;;  %3273 = vst.msk [vmem:[#allocation3 + $0xb0] sm:$0xff] %vm3249_vm5, %v11838_v21 }
 0x1a8   : > { %3275 = vst.msk [vmem:[#allocation3 + $0xc0] sm:$0xff] %vm3249_vm5, %v11838_v21  ;;  %3276 = vst.msk [vmem:[#allocation3 + $0xc8] sm:$0xff] %vm3249_vm5, %v11838_v21 }
 0x1a9   : > { %3278 = vst.msk [vmem:[#allocation3 + $0xd8] sm:$0xff] %vm3249_vm5, %v11838_v21  ;;  %3279 = vst.msk [vmem:[#allocation3 + $0xe0] sm:$0xff] %vm3249_vm5, %v11838_v21 }
 0x1aa   : > { %7806 = vmatmul.mubr.msk.f32.gmra.mrb[30].mxu0 %vm225_vm1, %v10061_v8  ;;  %3281 = vst.msk [vmem:[#allocation3 + $0xf0] sm:$0xff] %vm3249_vm5, %v11838_v21  ;;  %3282 = vst.msk [vmem:[#allocation3 + $0xf8] sm:$0xff] %vm3249_vm5, %v11838_v21 }
 0x1ab   : > { %7810 = vmatprep.mubr.msk.f32.mxu0 %vm225_vm1, %v9243_v32  ;;  %v10128_v32 = vld [vmem:[#allocation2 + $0x198] sm:$0xff]  ;;  %3284 = vst.msk [vmem:[#allocation3 + $0x108] sm:$0xff] %vm3249_vm5, %v11838_v21  ;;  %3285 = vst.msk [vmem:[#allocation3 + $0x110] sm:$0xff] %vm3249_vm5, %v11838_v21 }
 0x1ac   : > { %3287 = vst.msk [vmem:[#allocation3 + $0x120] sm:$0xff] %vm3249_vm5, %v11838_v21  ;;  %3288 = vst.msk [vmem:[#allocation3 + $0x128] sm:$0xff] %vm3249_vm5, %v11838_v21 }
 0x1ad   : > { %3290 = vst.msk [vmem:[#allocation3 + $0x138] sm:$0xff] %vm3249_vm5, %v11838_v21  ;;  %3291 = vst.msk [vmem:[#allocation3 + $0x140] sm:$0xff] %vm3249_vm5, %v11838_v21 }
 0x1ae   : > { %7811 = vmatmul.mubr.msk.f32.vlgmr.msra.gmra.mrb[0].mxu0 %vm225_vm1, %v9255_v34  ;;  %v10134_v34 = vld [vmem:[#allocation2 + $0x1a0] sm:$0xff]  ;;  %3293 = vst.msk [vmem:[#allocation3 + $0x150] sm:$0xff] %vm3249_vm5, %v11838_v21  ;;  %3294 = vst.msk [vmem:[#allocation3 + $0x158] sm:$0xff] %vm3249_vm5, %v11838_v21 }
 0x1af   : > { %7859 = vmatpush3.msk.msra.mxu0 %vm504_vm0, %v6545_v43  ;;  %7813 = vmatprep.mubr.msk.f32.mxu0 %vm225_vm1, %v9259_v36  ;;  %v11807_v36 = vld [vmem:[#allocation5_spill] sm:$0xff]  ;;  %3296 = vst.msk [vmem:[#allocation3 + $0x168] sm:$0xff] %vm3249_vm5, %v11838_v21  ;;  %3297 = vst.msk [vmem:[#allocation3 + $0x170] sm:$0xff] %vm3249_vm5, %v11838_v21 }
 0x1b0   : > { %7908 = vmatprep.subr.msk.mxu0 %vm504_vm0, %v6579_v19  ;;  %3299 = vst.msk [vmem:[#allocation3 + $0x180] sm:$0xff] %vm3249_vm5, %v11838_v21  ;;  %3300 = vst.msk [vmem:[#allocation3 + $0x188] sm:$0xff] %vm3249_vm5, %v11838_v21 }
 0x1b1   : > { %3302 = vst.msk [vmem:[#allocation3 + $0x198] sm:$0xff] %vm3249_vm5, %v11838_v21  ;;  %3303 = vst.msk [vmem:[#allocation3 + $0x1a0] sm:$0xff] %vm3249_vm5, %v11838_v21 }
 0x1b2   : > { %7814 = vmatmul.mubr.msk.f32.gmra.mrb[2].mxu0 %vm225_vm1, %v9266_v37  ;;  %v11808_v37 = vld [vmem:[#allocation6_spill] sm:$0xff]  ;;  %3256 = vst.msk [vmem:[#allocation3 + $0x28] sm:$0x3] %vm3252_vm6, %v11838_v21  ;;  %3253 = vst.msk [vmem:[#allocation3 + $0x10] sm:$0x3] %vm3252_vm6, %v11838_v21 }
 0x1b3   : > { %7816 = vmatprep.mubr.msk.f32.mxu0 %vm225_vm1, %v9268_v38  ;;  %v11809_v38 = vld [vmem:[#allocation7_spill] sm:$0xff]  ;;  %3259 = vst.msk [vmem:[#allocation3 + $0x40] sm:$0x3] %vm3252_vm6, %v11838_v21  ;;  %3262 = vst.msk [vmem:[#allocation3 + $0x58] sm:$0x3] %vm3252_vm6, %v11838_v21 }
 0x1b4   : > { %3265 = vst.msk [vmem:[#allocation3 + $0x70] sm:$0x3] %vm3252_vm6, %v11838_v21  ;;  %3268 = vst.msk [vmem:[#allocation3 + $0x88] sm:$0x3] %vm3252_vm6, %v11838_v21 }
 0x1b5   : > { %3271 = vst.msk [vmem:[#allocation3 + $0xa0] sm:$0x3] %vm3252_vm6, %v11838_v21  ;;  %3274 = vst.msk [vmem:[#allocation3 + $0xb8] sm:$0x3] %vm3252_vm6, %v11838_v21 }
 0x1b6   : > { %7817 = vmatmul.mubr.msk.f32.gmra.mrb[4].mxu0 %vm225_vm1, %v9287_v46  ;;  %v11810_v46 = vld [vmem:[#allocation8_spill] sm:$0xff]  ;;  %3277 = vst.msk [vmem:[#allocation3 + $0xd0] sm:$0x3] %vm3252_vm6, %v11838_v21  ;;  %3280 = vst.msk [vmem:[#allocation3 + $0xe8] sm:$0x3] %vm3252_vm6, %v11838_v21 }
 0x1b7   : > { %7819 = vmatprep.mubr.msk.f32.mxu0 %vm225_vm1, %v9290_v47  ;;  %v11811_v47 = vld [vmem:[#allocation9_spill] sm:$0xff]  ;;  %3283 = vst.msk [vmem:[#allocation3 + $0x100] sm:$0x3] %vm3252_vm6, %v11838_v21  ;;  %3286 = vst.msk [vmem:[#allocation3 + $0x118] sm:$0x3] %vm3252_vm6, %v11838_v21 }
 0x1b8   : > { %3289 = vst.msk [vmem:[#allocation3 + $0x130] sm:$0x3] %vm3252_vm6, %v11838_v21  ;;  %3292 = vst.msk [vmem:[#allocation3 + $0x148] sm:$0x3] %vm3252_vm6, %v11838_v21 }
 0x1b9   : > { %3295 = vst.msk [vmem:[#allocation3 + $0x160] sm:$0x3] %vm3252_vm6, %v11838_v21  ;;  %3298 = vst.msk [vmem:[#allocation3 + $0x178] sm:$0x3] %vm3252_vm6, %v11838_v21 }
 0x1ba   : > { %7820 = vmatmul.mubr.msk.f32.gmra.mrb[6].mxu0 %vm225_vm1, %v9296_v48  ;;  %v11812_v48 = vld [vmem:[#allocation10_spill] sm:$0xff]  ;;  %3301 = vst.msk [vmem:[#allocation3 + $0x190] sm:$0x3] %vm3252_vm6, %v11838_v21  ;;  %3304 = vst.msk [vmem:[#allocation3 + $0x1a8] sm:$0x3] %vm3252_vm6, %v11838_v21 }
 0x1bb   : > { %7822 = vmatprep.mubr.msk.f32.mxu0 %vm225_vm1, %v9298_v49  ;;  %v11813_v49 = vld [vmem:[#allocation11_spill] sm:$0xff] }
 0x1be   : > { %7823 = vmatmul.mubr.msk.f32.gmra.mrb[8].mxu0 %vm225_vm1, %v9304_v50  ;;  %v11814_v50 = vld [vmem:[#allocation12_spill] sm:$0xff] }
 0x1bf   : > { %7825 = vmatprep.mubr.msk.f32.mxu0 %vm225_vm1, %v9306_v51  ;;  %v11815_v51 = vld [vmem:[#allocation13_spill] sm:$0xff] }
 0x1c2   : > { %7826 = vmatmul.mubr.msk.f32.gmra.mrb[10].mxu0 %vm225_vm1, %v9312_v53  ;;  %v11816_v53 = vld [vmem:[#allocation14_spill] sm:$0xff] }
 0x1c3   : > { %7828 = vmatprep.mubr.msk.f32.mxu0 %vm225_vm1, %v9314_v55  ;;  %v11817_v55 = vld [vmem:[#allocation15_spill] sm:$0xff] }
 0x1c6   : > { %7829 = vmatmul.mubr.msk.f32.gmra.mrb[12].mxu0 %vm225_vm1, %v9325_v57  ;;  %v11818_v57 = vld [vmem:[#allocation17_spill] sm:$0xff] }
 0x1c7   : > { %7831 = vmatprep.mubr.msk.f32.mxu0 %vm225_vm1, %v9327_v58  ;;  %v11819_v58 = vld [vmem:[#allocation18_spill] sm:$0xff] }
 0x1ca   : > { %7832 = vmatmul.mubr.msk.f32.gmra.mrb[14].mxu0 %vm225_vm1, %v9333_v59  ;;  %v11820_v59 = vld [vmem:[#allocation19_spill] sm:$0xff] }
 0x1cb   : > { %7834 = vmatprep.mubr.msk.f32.mxu0 %vm225_vm1, %v9335_v60  ;;  %v11821_v60 = vld [vmem:[#allocation20_spill] sm:$0xff] }
 0x1ce   : > { %7835 = vmatmul.mubr.msk.f32.gmra.mrb[16].mxu0 %vm225_vm1, %v9341_v61  ;;  %v11822_v61 = vld [vmem:[#allocation21_spill] sm:$0xff] }
 0x1cf   : > { %7837 = vmatprep.mubr.msk.f32.mxu0 %vm225_vm1, %v9343_v62  ;;  %v11823_v62 = vld [vmem:[#allocation22_spill] sm:$0xff] }
 0x1d2   : > { %7838 = vmatmul.mubr.msk.f32.gmra.mrb[18].mxu0 %vm225_vm1, %v9349_v63  ;;  %v11824_v63 = vld [vmem:[#allocation23_spill] sm:$0xff] }
 0x1d3   : > { %7840 = vmatprep.mubr.msk.f32.mxu0 %vm225_vm1, %v9351_v0  ;;  %v11825_v0 = vld [vmem:[#allocation24_spill] sm:$0xff] }
 0x1d6   : > { %7841 = vmatmul.mubr.msk.f32.gmra.mrb[20].mxu0 %vm225_vm1, %v9357_v2  ;;  %v11826_v2 = vld [vmem:[#allocation25_spill] sm:$0xff] }
 0x1d7   : > { %7843 = vmatprep.mubr.msk.f32.mxu0 %vm225_vm1, %v9359_v3  ;;  %v2677_v3 = vrot.slane %v10128_v32, 1 }
 0x1da   : > { %7844 = vmatmul.mubr.msk.f32.gmra.mrb[22].mxu0 %vm225_vm1, %v9365_v4  ;;  %v2678_v4 = vrot.slane %v10134_v34, 1 }
 0x1db   : > { %7846 = vmatprep.mubr.msk.f32.mxu0 %vm225_vm1, %v9367_v5  ;;  %v399_v5 = vld [vmem:[#allocation2 + $0x1a8] sm:$0x3] }
 0x1de   : > { %7847 = vmatmul.mubr.msk.f32.gmra.mrb[24].mxu0 %vm225_vm1, %v9373_v6  ;;  %v2680_v6 = vrot.slane %v399_v5, 1 }
 0x1df   : > { %7849 = vmatprep.mubr.msk.f32.mxu0 %vm225_vm1, %v9377_v11  ;;  %v2679_v11 = vsel %vm783_vm4, %v2677_v3, %v2678_v4 }
 0x1e2   : > { %7850 = vmatmul.mubr.msk.f32.gmra.mrb[26].mxu0 %vm225_vm1, %v9383_v12  ;;  %v2681_v12 = vsel %vm783_vm4, %v2678_v4, %v2680_v6 }
 0x1e3   : > { %7852 = vmatprep.mubr.msk.f32.mxu0 %vm225_vm1, %v9901_v30 }
 0x1e6   : > { %7853 = vmatmul.mubr.msk.f32.gmra.mrb[28].mxu0 %vm225_vm1, %v9907_v31 }
 0x1e7   : > { %7855 = vmatprep.mubr.msk.f32.mxu0 %vm225_vm1, %v10128_v32 }
 0x1ea   : > { %7856 = vmatmul.mubr.msk.f32.gmra.mrb[30].mxu0 %vm225_vm1, %v10134_v34 }
 0x1eb   : > { %7860 = vmatprep.mubr.msk.f32.mxu0 %vm225_vm1, %v9417_v27  ;;  %v11827_v27 = vld [vmem:[#allocation29_spill] sm:$0xff] }
 0x1ee   : > { %7861 = vmatmul.mubr.msk.f32.vlgmr.msra.gmra.mrb[0].mxu0 %vm225_vm1, %v9430_v16  ;;  %v11828_v16 = vld [vmem:[#allocation30_spill] sm:$0xff] }
 0x1ef   : > { %7909 = vmatpush3.msk.msra.mxu0 %vm504_vm0, %v6579_v19  ;;  %7863 = vmatprep.mubr.msk.f32.mxu0 %vm225_vm1, %v11773_v35  ;;  %v10399_v35 = vld [vmem:[%s11585_s3 + $0x10] sm:$0xff] }
 0x1f2   : > { %7864 = vmatmul.mubr.msk.f32.gmra.mrb[2].mxu0 %vm225_vm1, %v11807_v36 }
 0x1f3   : > { %7866 = vmatprep.mubr.msk.f32.mxu0 %vm225_vm1, %v11808_v37  ;;  %v10414_v37 = vld [vmem:[#allocation3 + $0x10] sm:$0x3] }
 0x1f6   : > { %7867 = vmatmul.mubr.msk.f32.gmra.mrb[4].mxu0 %vm225_vm1, %v11809_v38 }
 0x1f7   : > { %7869 = vmatprep.mubr.msk.f32.mxu0 %vm225_vm1, %v11810_v46 }
 0x1fa   : > { %7870 = vmatmul.mubr.msk.f32.gmra.mrb[6].mxu0 %vm225_vm1, %v11811_v47 }
 0x1fb   : > { %7872 = vmatprep.mubr.msk.f32.mxu0 %vm225_vm1, %v11812_v48  ;;  %v4177_v48 = vrot.slane %v10414_v37, 2 }
 0x1fe   : > { %7873 = vmatmul.mubr.msk.f32.gmra.mrb[8].mxu0 %vm225_vm1, %v11813_v49 }
 0x1ff   : > { %7875 = vmatprep.mubr.msk.f32.mxu0 %vm225_vm1, %v11814_v50 }
 0x202   : > { %7876 = vmatmul.mubr.msk.f32.gmra.mrb[10].mxu0 %vm225_vm1, %v11815_v51 }
 0x203   : > { %7878 = vmatprep.mubr.msk.f32.mxu0 %vm225_vm1, %v11816_v53 }
 0x206   : > { %7879 = vmatmul.mubr.msk.f32.gmra.mrb[12].mxu0 %vm225_vm1, %v11817_v55 }
 0x207   : > { %7881 = vmatprep.mubr.msk.f32.mxu0 %vm225_vm1, %v11785_v17 }
 0x20a   : > { %7882 = vmatmul.mubr.msk.f32.gmra.mrb[14].mxu0 %vm225_vm1, %v11818_v57 }
 0x20b   : > { %7884 = vmatprep.mubr.msk.f32.mxu0 %vm225_vm1, %v11819_v58 }
 0x20e   : > { %7885 = vmatmul.mubr.msk.f32.gmra.mrb[16].mxu0 %vm225_vm1, %v11820_v59 }
 0x20f   : > { %7887 = vmatprep.mubr.msk.f32.mxu0 %vm225_vm1, %v11821_v60 }
 0x212   : > { %7888 = vmatmul.mubr.msk.f32.gmra.mrb[18].mxu0 %vm225_vm1, %v11822_v61 }
 0x213   : > { %7890 = vmatprep.mubr.msk.f32.mxu0 %vm225_vm1, %v11823_v62 }
 0x216   : > { %7891 = vmatmul.mubr.msk.f32.gmra.mrb[20].mxu0 %vm225_vm1, %v11824_v63 }
 0x217   : > { %7893 = vmatprep.mubr.msk.f32.mxu0 %vm225_vm1, %v11825_v0 }
 0x21a   : > { %7894 = vmatmul.mubr.msk.f32.gmra.mrb[22].mxu0 %vm225_vm1, %v9595_v28  ;;  %v11830_v28 = vld [vmem:[#allocation32_spill] sm:$0xff] }
 0x21b   : > { %7896 = vmatprep.mubr.msk.f32.mxu0 %vm225_vm1, %v11826_v2 }
 0x21e   : > { %7897 = vmatmul.mubr.msk.f32.gmra.mrb[24].mxu0 %vm225_vm1, %v9614_v52  ;;  %v11831_v52 = vld [vmem:[#allocation33_spill] sm:$0xff] }
 0x21f   : > { %7899 = vmatprep.mubr.msk.f32.mxu0 %vm225_vm1, %v11794_v39  ;;  %v10405_v39 = vld [vmem:[%s11584_s2] ss:$0 sm:$0xff] }
 0x222   : > { %7900 = vmatmul.mubr.msk.f32.gmra.mrb[26].mxu0 %vm225_vm1, %v11795_v44 }
 0x223   : > { %7902 = vmatprep.mubr.msk.f32.mxu0 %vm225_vm1, %v9977_v40  ;;  %v11829_v40 = vld [vmem:[#allocation31_spill] sm:$0xff] }
 0x226   : > { %7903 = vmatmul.mubr.msk.f32.gmra.mrb[28].mxu0 %vm225_vm1, %v9984_v22 }
 0x227   : > { %7905 = vmatprep.mubr.msk.f32.mxu0 %vm225_vm1, %v2679_v11 }
 0x22a   : > { %7906 = vmatmul.mubr.msk.f32.gmra.mrb[30].mxu0 %vm225_vm1, %v2681_v12 }
 0x22b   : > { %7910 = vmatprep.mubr.msk.f32.mxu0 %vm225_vm1, %v9655_v13  ;;  %v11832_v13 = vld [vmem:[#allocation34_spill] sm:$0xff] }
 0x22e   : > { %7911 = vmatmul.mubr.msk.f32.vlgmr.msra.gmra.mrb[0].mxu0 %vm225_vm1, %v9666_v56  ;;  %v11833_v56 = vld [vmem:[#allocation36_spill] sm:$0xff] }
 0x22f   : > { %7913 = vmatprep.mubr.msk.f32.mxu0 %vm225_vm1, %v11796_v25 }
 0x232   : > { %7914 = vmatmul.mubr.msk.f32.gmra.mrb[2].mxu0 %vm225_vm1, %v9679_v15  ;;  %v11835_v15 = vld [vmem:[#allocation38_spill] sm:$0xff] }
 0x233   : > { %7916 = vmatprep.mubr.msk.f32.mxu0 %vm225_vm1, %v11827_v27 }
 0x236   : > { %7917 = vmatmul.mubr.msk.f32.gmra.mrb[4].mxu0 %vm225_vm1, %v9692_v24  ;;  %v11834_v24 = vld [vmem:[#allocation37_spill] sm:$0xff] }
 0x237   : > { %7919 = vmatprep.mubr.msk.f32.mxu0 %vm225_vm1, %v11828_v16 }
 0x23a   : > { %7920 = vmatmul.mubr.msk.f32.gmra.mrb[6].mxu0 %vm225_vm1, %v9705_v33  ;;  %v11836_v33 = vld [vmem:[#allocation39_spill] sm:$0xff] }
 0x23b   : > { %7922 = vmatprep.mubr.msk.f32.mxu0 %vm225_vm1, %v11829_v40 }
 0x23e   : > { %7923 = vmatmul.mubr.msk.f32.gmra.mrb[8].mxu0 %vm225_vm1, %v9718_v42  ;;  %v11837_v42 = vld [vmem:[#allocation41_spill] sm:$0xff] }
 0x23f   : > { %7925 = vmatprep.mubr.msk.f32.mxu0 %vm225_vm1, %v11830_v28 }
 0x242   : > { %7926 = vmatmul.mubr.msk.f32.gmra.mrb[10].mxu0 %vm225_vm1, %v9731_v7  ;;  %v2948_v7 = vrot.slane %v10128_v32, 2 }
 0x243   : > { %7928 = vmatprep.mubr.msk.f32.mxu0 %vm225_vm1, %v11831_v52 }
 0x246   : > { %7929 = vmatmul.mubr.msk.f32.gmra.mrb[12].mxu0 %vm225_vm1, %v9744_v10  ;;  %v2949_v10 = vrot.slane %v10134_v34, 2 }
 0x247   : > { %7931 = vmatprep.mubr.msk.f32.mxu0 %vm225_vm1, %v11832_v13 }
 0x248   : > { %v2950_v54 = vsel %vm1190_vm3, %v2948_v7, %v2949_v10 }
 0x24a   : > { %7932 = vmatmul.mubr.msk.f32.gmra.mrb[14].mxu0 %vm225_vm1, %v9757_v29  ;;  %v2951_v29 = vrot.slane %v399_v5, 2 }
 0x24b   : > { %7934 = vmatprep.mubr.msk.f32.mxu0 %vm225_vm1, %v11803_v41 }
 0x24e   : > { %7935 = vmatmul.mubr.msk.f32.gmra.mrb[16].mxu0 %vm225_vm1, %v11833_v56 }
 0x24f   : > { %7937 = vmatprep.mubr.msk.f32.mxu0 %vm225_vm1, %v11834_v24 }
 0x252   : > { %7938 = vmatmul.mubr.msk.f32.gmra.mrb[18].mxu0 %vm225_vm1, %v9783_v1  ;;  %v2952_v1 = vsel %vm1190_vm3, %v2949_v10, %v2951_v29 }
 0x253   : > { %7940 = vmatprep.mubr.msk.f32.mxu0 %vm225_vm1, %v11835_v15 }
 0x256   : > { %7941 = vmatmul.mubr.msk.f32.gmra.mrb[20].mxu0 %vm225_vm1, %v11836_v33 }
 0x257   : > { %7943 = vmatprep.mubr.msk.f32.mxu0 %vm225_vm1, %v11806_v23 }
 0x25a   : > { %7944 = vmatmul.mubr.msk.f32.gmra.mrb[22].mxu0 %vm225_vm1, %v9809_v18  ;;  %v3399_v18 = vld [vmem:[%s11585_s3] sm:$0xff] }
 0x25b   : > { %7946 = vmatprep.mubr.msk.f32.mxu0 %vm225_vm1, %v11837_v42  ;;  %7958 = vmatprep.subr.mxu1 %v3399_v18 }
 0x25c   : > { %7959 = vmatpush3.msra.mxu1 %v3399_v18 }
 0x25e   : > { %7947 = vmatmul.mubr.msk.f32.gmra.mrb[24].mxu0 %vm225_vm1, %v9822_v14  ;;  %v3338_v14 = vld [vmem:[#allocation3] sm:$0xff] }
 0x25f   : > { %7949 = vmatprep.mubr.msk.f32.mxu0 %vm225_vm1, %v9826_v45  ;;  %7960 = vmatprep.mubr.msk.f32.mxu1 %vm3249_vm5, %v3338_v14  ;;  %v6646_v45 = vld [vmem:[%s11585_s3 + $0x8] sm:$0xff] }
 0x260   : > { %8008 = vmatprep.subr.mxu1 %v6646_v45 }
 0x262   : > { %7950 = vmatmul.mubr.msk.f32.gmra.mrb[26].mxu0 %vm225_vm1, %v9833_v26  ;;  %v3771_v26 = vrot.slane %v3338_v14, 1 }
 0x263   : > { %7952 = vmatprep.mubr.msk.f32.mxu0 %vm225_vm1, %v10054_v9  ;;  %v4174_v9 = vrot.slane %v3338_v14, 2 }
 0x266   : > { %7953 = vmatmul.mubr.msk.f32.gmra.mrb[28].mxu0 %vm225_vm1, %v10061_v8  ;;  %v10383_v8 = vld [vmem:[#allocation3 + $0x8] sm:$0xff] }
 0x267   : > { %7955 = vmatprep.mubr.msk.f32.mxu0 %vm225_vm1, %v2950_v54  ;;  %7961 = vmatmul.mubr.msk.f32.vlgmr.msra.gmra.mrb[0].mxu1 %vm3249_vm5, %v10383_v8  ;;  %v3772_v30 = vrot.slane %v10383_v8, 1  ;;  %v4175_v23 = vrot.slane %v10383_v8, 2 }
 0x268   : > { %8009 = vmatpush3.msra.mxu1 %v6646_v45 }
 0x269   : > { %v10394_v31 = vsel %vm783_vm4, %v3771_v26, %v3772_v30  ;;  %8058 = vmatprep.subr.mxu1 %v10399_v35  ;;  %v10417_v38 = vsel %vm1190_vm3, %v4174_v9, %v4175_v23  ;;  %v10425_v53 = vsel %vm1190_vm3, %v4175_v23, %v4177_v48 }
 0x26a   : > { %7956 = vmatmul.mubr.msk.f32.gmra.mrb[30].mxu0 %vm225_vm1, %v2952_v1 }
 0x301   : > { %v7912_v17 = vpop.f32.mrb[0].mxu0 }
 0x302   : > { %v8408_v44 = vadd.f32 %v7912_v17, %v10405_v39  ;;  %v3026_v22 = vpop.f32.mrb[1].mxu0 }
 0x303   : > { %v8409_v43 = vadd.f32 %v10405_v39, %v3026_v22 }
 0x304   : > { %v3218_v25 = vmax.f32 %v8408_v44, 0.0 }
 0x305   : > { %v3217_v41 = vmax.f32 %v8409_v43, 0.0  ;;  %v7915_v20 = vpop.f32.mrb[2].mxu0 }
 0x306   : > { %3307 = vst.msk [vmem:[#allocation3 + $0x21] sm:$0xff] %vm3249_vm5, %v3218_v25  ;;  %v8410_v19 = vadd.f32 %v7915_v20, %v10405_v39  ;;  %v3036_v32 = vpop.f32.mrb[3].mxu0 }
 0x307   : > { %3306 = vst.msk [vmem:[#allocation3 + $0x19] sm:$0xff] %vm3249_vm5, %v3217_v41  ;;  %v8411_v34 = vadd.f32 %v10405_v39, %v3036_v32 }
 0x308   : > { %v3220_v36 = vmax.f32 %v8410_v19, 0.0 }
 0x309   : > { %v3219_v46 = vmax.f32 %v8411_v34, 0.0  ;;  %v7918_v47 = vpop.f32.mrb[4].mxu0 }
 0x30a   : > { %3309 = vst.msk [vmem:[#allocation3 + $0x39] sm:$0xff] %vm3249_vm5, %v3220_v36  ;;  %v8412_v49 = vadd.f32 %v7918_v47, %v10405_v39  ;;  %v3046_v50 = vpop.f32.mrb[5].mxu0 }
 0x30b   : > { %3308 = vst.msk [vmem:[#allocation3 + $0x31] sm:$0xff] %vm3249_vm5, %v3219_v46  ;;  %v8413_v51 = vadd.f32 %v10405_v39, %v3046_v50 }
 0x30c   : > { %v3222_v55 = vmax.f32 %v8412_v49, 0.0 }
 0x30d   : > { %v3221_v57 = vmax.f32 %v8413_v51, 0.0  ;;  %v7921_v58 = vpop.f32.mrb[6].mxu0 }
 0x30e   : > { %3311 = vst.msk [vmem:[#allocation3 + $0x51] sm:$0xff] %vm3249_vm5, %v3222_v55  ;;  %v8414_v59 = vadd.f32 %v7921_v58, %v10405_v39  ;;  %v3056_v60 = vpop.f32.mrb[7].mxu0  ;;  %v10429_v61 = vld [vmem:[#allocation3 + $0x18] sm:$0xff]  ;;  %v10431_v62 = vld [vmem:[#allocation3 + $0x20] sm:$0xff] }
 0x30f   : > { %3310 = vst.msk [vmem:[#allocation3 + $0x49] sm:$0xff] %vm3249_vm5, %v3221_v57  ;;  %v8415_v63 = vadd.f32 %v10405_v39, %v3056_v60  ;;  %7963 = vmatprep.mubr.msk.f32.mxu1 %vm3249_vm5, %v10429_v61 }
 0x310   : > { %v3224_v0 = vmax.f32 %v8414_v59, 0.0  ;;  %7964 = vmatmul.mubr.msk.f32.gmra.mrb[2].mxu1 %vm3249_vm5, %v10431_v62 }
 0x311   : > { %v3223_v2 = vmax.f32 %v8415_v63, 0.0  ;;  %v7924_v3 = vpop.f32.mrb[8].mxu0 }
 0x312   : > { %3313 = vst.msk [vmem:[#allocation3 + $0x69] sm:$0xff] %vm3249_vm5, %v3224_v0  ;;  %v8416_v4 = vadd.f32 %v7924_v3, %v10405_v39  ;;  %v3066_v5 = vpop.f32.mrb[9].mxu0  ;;  %v10441_v6 = vld [vmem:[#allocation3 + $0x30] sm:$0xff]  ;;  %v10443_v11 = vld [vmem:[#allocation3 + $0x38] sm:$0xff] }
 0x313   : > { %3312 = vst.msk [vmem:[#allocation3 + $0x61] sm:$0xff] %vm3249_vm5, %v3223_v2  ;;  %v8417_v12 = vadd.f32 %v10405_v39, %v3066_v5  ;;  %7966 = vmatprep.mubr.msk.f32.mxu1 %vm3249_vm5, %v10441_v6 }
 0x314   : > { %v3226_v27 = vmax.f32 %v8416_v4, 0.0  ;;  %7967 = vmatmul.mubr.msk.f32.gmra.mrb[4].mxu1 %vm3249_vm5, %v10443_v11 }
 0x315   : > { %v3225_v16 = vmax.f32 %v8417_v12, 0.0  ;;  %v7927_v40 = vpop.f32.mrb[10].mxu0 }
 0x316   : > { %3315 = vst.msk [vmem:[#allocation3 + $0x81] sm:$0xff] %vm3249_vm5, %v3226_v27  ;;  %v8418_v28 = vadd.f32 %v7927_v40, %v10405_v39  ;;  %v3076_v52 = vpop.f32.mrb[11].mxu0  ;;  %v10453_v13 = vld [vmem:[#allocation3 + $0x48] sm:$0xff]  ;;  %v10455_v56 = vld [vmem:[#allocation3 + $0x50] sm:$0xff] }
 0x317   : > { %3314 = vst.msk [vmem:[#allocation3 + $0x79] sm:$0xff] %vm3249_vm5, %v3225_v16  ;;  %v8419_v24 = vadd.f32 %v10405_v39, %v3076_v52  ;;  %7969 = vmatprep.mubr.msk.f32.mxu1 %vm3249_vm5, %v10453_v13 }
 0x318   : > { %v3228_v15 = vmax.f32 %v8418_v28, 0.0  ;;  %7970 = vmatmul.mubr.msk.f32.gmra.mrb[6].mxu1 %vm3249_vm5, %v10455_v56 }
 0x319   : > { %v3227_v33 = vmax.f32 %v8419_v24, 0.0  ;;  %v7930_v42 = vpop.f32.mrb[12].mxu0 }
 0x31a   : > { %3317 = vst.msk [vmem:[#allocation3 + $0x99] sm:$0xff] %vm3249_vm5, %v3228_v15  ;;  %v8420_v7 = vadd.f32 %v7930_v42, %v10405_v39  ;;  %v3086_v10 = vpop.f32.mrb[13].mxu0  ;;  %v10465_v29 = vld [vmem:[#allocation3 + $0x60] sm:$0xff]  ;;  %v10467_v54 = vld [vmem:[#allocation3 + $0x68] sm:$0xff] }
 0x31b   : > { %3316 = vst.msk [vmem:[#allocation3 + $0x91] sm:$0xff] %vm3249_vm5, %v3227_v33  ;;  %v8421_v1 = vadd.f32 %v10405_v39, %v3086_v10  ;;  %7972 = vmatprep.mubr.msk.f32.mxu1 %vm3249_vm5, %v10465_v29 }
 0x31c   : > { %v3230_v21 = vmax.f32 %v8420_v7, 0.0  ;;  %7973 = vmatmul.mubr.msk.f32.gmra.mrb[8].mxu1 %vm3249_vm5, %v10467_v54 }
 0x31d   : > { %v3229_v18 = vmax.f32 %v8421_v1, 0.0  ;;  %v7933_v14 = vpop.f32.mrb[14].mxu0 }
 0x31e   : > { %3319 = vst.msk [vmem:[#allocation3 + $0xb1] sm:$0xff] %vm3249_vm5, %v3230_v21  ;;  %v8422_v45 = vadd.f32 %v7933_v14, %v10405_v39  ;;  %v3096_v26 = vpop.f32.mrb[15].mxu0  ;;  %v10477_v17 = vld [vmem:[#allocation3 + $0x78] sm:$0xff]  ;;  %v10479_v44 = vld [vmem:[#allocation3 + $0x80] sm:$0xff] }
 0x31f   : > { %3318 = vst.msk [vmem:[#allocation3 + $0xa9] sm:$0xff] %vm3249_vm5, %v3229_v18  ;;  %v8423_v22 = vadd.f32 %v10405_v39, %v3096_v26  ;;  %7975 = vmatprep.mubr.msk.f32.mxu1 %vm3249_vm5, %v10477_v17 }
 0x320   : > { %v3232_v43 = vmax.f32 %v8422_v45, 0.0  ;;  %7976 = vmatmul.mubr.msk.f32.gmra.mrb[10].mxu1 %vm3249_vm5, %v10479_v44 }
 0x321   : > { %v3231_v25 = vmax.f32 %v8423_v22, 0.0  ;;  %v7936_v9 = vpop.f32.mrb[16].mxu0 }
 0x322   : > { %3321 = vst.msk [vmem:[#allocation3 + $0xc9] sm:$0xff] %vm3249_vm5, %v3232_v43  ;;  %v8424_v23 = vadd.f32 %v7936_v9, %v10405_v39  ;;  %v3106_v41 = vpop.f32.mrb[17].mxu0  ;;  %v10489_v20 = vld [vmem:[#allocation3 + $0x90] sm:$0xff]  ;;  %v10491_v19 = vld [vmem:[#allocation3 + $0x98] sm:$0xff] }
 0x323   : > { %3320 = vst.msk [vmem:[#allocation3 + $0xc1] sm:$0xff] %vm3249_vm5, %v3231_v25  ;;  %v8425_v32 = vadd.f32 %v10405_v39, %v3106_v41  ;;  %7978 = vmatprep.mubr.msk.f32.mxu1 %vm3249_vm5, %v10489_v20 }
 0x324   : > { %v3234_v34 = vmax.f32 %v8424_v23, 0.0  ;;  %7979 = vmatmul.mubr.msk.f32.gmra.mrb[12].mxu1 %vm3249_vm5, %v10491_v19 }
 0x325   : > { %v3233_v36 = vmax.f32 %v8425_v32, 0.0  ;;  %v7939_v46 = vpop.f32.mrb[18].mxu0 }
 0x326   : > { %3323 = vst.msk [vmem:[#allocation3 + $0xe1] sm:$0xff] %vm3249_vm5, %v3234_v34  ;;  %v8426_v47 = vadd.f32 %v7939_v46, %v10405_v39  ;;  %v3116_v48 = vpop.f32.mrb[19].mxu0  ;;  %v10501_v49 = vld [vmem:[#allocation3 + $0xa8] sm:$0xff]  ;;  %v10503_v50 = vld [vmem:[#allocation3 + $0xb0] sm:$0xff] }
 0x327   : > { %3322 = vst.msk [vmem:[#allocation3 + $0xd9] sm:$0xff] %vm3249_vm5, %v3233_v36  ;;  %v8427_v51 = vadd.f32 %v10405_v39, %v3116_v48  ;;  %7981 = vmatprep.mubr.msk.f32.mxu1 %vm3249_vm5, %v10501_v49 }
 0x328   : > { %v3236_v55 = vmax.f32 %v8426_v47, 0.0  ;;  %7982 = vmatmul.mubr.msk.f32.gmra.mrb[14].mxu1 %vm3249_vm5, %v10503_v50 }
 0x329   : > { %v3235_v57 = vmax.f32 %v8427_v51, 0.0  ;;  %v7942_v58 = vpop.f32.mrb[20].mxu0 }
 0x32a   : > { %3325 = vst.msk [vmem:[#allocation3 + $0xf9] sm:$0xff] %vm3249_vm5, %v3236_v55  ;;  %v8428_v59 = vadd.f32 %v7942_v58, %v10405_v39  ;;  %v3126_v60 = vpop.f32.mrb[21].mxu0  ;;  %v10513_v63 = vld [vmem:[#allocation3 + $0xc0] sm:$0xff]  ;;  %v10515_v0 = vld [vmem:[#allocation3 + $0xc8] sm:$0xff] }
 0x32b   : > { %3324 = vst.msk [vmem:[#allocation3 + $0xf1] sm:$0xff] %vm3249_vm5, %v3235_v57  ;;  %v8429_v2 = vadd.f32 %v10405_v39, %v3126_v60  ;;  %7984 = vmatprep.mubr.msk.f32.mxu1 %vm3249_vm5, %v10513_v63 }
 0x32c   : > { %v3238_v3 = vmax.f32 %v8428_v59, 0.0  ;;  %7985 = vmatmul.mubr.msk.f32.gmra.mrb[16].mxu1 %vm3249_vm5, %v10515_v0 }
 0x32d   : > { %v3237_v4 = vmax.f32 %v8429_v2, 0.0  ;;  %v7945_v5 = vpop.f32.mrb[22].mxu0 }
 0x32e   : > { %3327 = vst.msk [vmem:[#allocation3 + $0x111] sm:$0xff] %vm3249_vm5, %v3238_v3  ;;  %v8430_v12 = vadd.f32 %v7945_v5, %v10405_v39  ;;  %v3136_v27 = vpop.f32.mrb[23].mxu0  ;;  %v10525_v16 = vld [vmem:[#allocation3 + $0xd8] sm:$0xff]  ;;  %v10527_v40 = vld [vmem:[#allocation3 + $0xe0] sm:$0xff] }
 0x32f   : > { %3326 = vst.msk [vmem:[#allocation3 + $0x109] sm:$0xff] %vm3249_vm5, %v3237_v4  ;;  %v8431_v28 = vadd.f32 %v10405_v39, %v3136_v27  ;;  %7987 = vmatprep.mubr.msk.f32.mxu1 %vm3249_vm5, %v10525_v16 }
 0x330   : > { %v3240_v52 = vmax.f32 %v8430_v12, 0.0  ;;  %7988 = vmatmul.mubr.msk.f32.gmra.mrb[18].mxu1 %vm3249_vm5, %v10527_v40 }
 0x331   : > { %v3239_v24 = vmax.f32 %v8431_v28, 0.0  ;;  %v7948_v15 = vpop.f32.mrb[24].mxu0 }
 0x332   : > { %3329 = vst.msk [vmem:[#allocation3 + $0x129] sm:$0xff] %vm3249_vm5, %v3240_v52  ;;  %v8432_v33 = vadd.f32 %v7948_v15, %v10405_v39  ;;  %v3146_v42 = vpop.f32.mrb[25].mxu0  ;;  %v10537_v7 = vld [vmem:[#allocation3 + $0xf0] sm:$0xff]  ;;  %v10539_v10 = vld [vmem:[#allocation3 + $0xf8] sm:$0xff]  ;;  %v3776_v52 = vrot.slane %v10429_v61, 1 }
 0x333   : > { %3328 = vst.msk [vmem:[#allocation3 + $0x121] sm:$0xff] %vm3249_vm5, %v3239_v24  ;;  %v8433_v1 = vadd.f32 %v10405_v39, %v3146_v42  ;;  %7990 = vmatprep.mubr.msk.f32.mxu1 %vm3249_vm5, %v10537_v7  ;;  %v3777_v24 = vrot.slane %v10431_v62, 1  ;;  %v10604_v15 = vld [vmem:[#allocation3 + $0x28] sm:$0x3] }
 0x334   : > { %v3242_v21 = vmax.f32 %v8432_v33, 0.0  ;;  %7991 = vmatmul.mubr.msk.f32.gmra.mrb[20].mxu1 %vm3249_vm5, %v10539_v10  ;;  %v3779_v33 = vrot.slane %v10604_v15, 1  ;;  %v10615_v42 = vld [vmem:[%s11585_s3 + $0x18] sm:$0xff] }
 0x335   : > { %v3241_v18 = vmax.f32 %v8433_v1, 0.0  ;;  %v7951_v14 = vpop.f32.mrb[26].mxu0  ;;  %v10619_v1 = vsel %vm783_vm4, %v3776_v52, %v3777_v24  ;;  %v3802_v52 = vrot.slane %v10491_v19, 1 }
 0x336   : > { %3331 = vst.msk [vmem:[#allocation3 + $0x141] sm:$0xff] %vm3249_vm5, %v3242_v21  ;;  %v8434_v45 = vadd.f32 %v7951_v14, %v10405_v39  ;;  %v3156_v26 = vpop.f32.mrb[27].mxu0  ;;  %v10549_v22 = vld [vmem:[#allocation3 + $0x108] sm:$0xff]  ;;  %v10551_v43 = vld [vmem:[#allocation3 + $0x110] sm:$0xff]  ;;  %v3781_v21 = vrot.slane %v10441_v6, 1  ;;  %v10630_v8 = vsel %vm783_vm4, %v3777_v24, %v3779_v33 }
 0x337   : > { %3330 = vst.msk [vmem:[#allocation3 + $0x139] sm:$0xff] %vm3249_vm5, %v3241_v18  ;;  %v8435_v25 = vadd.f32 %v10405_v39, %v3156_v26  ;;  %7993 = vmatprep.mubr.msk.f32.mxu1 %vm3249_vm5, %v10549_v22  ;;  %v10623_v18 = vld [vmem:[#allocation3 + $0x40] sm:$0x3]  ;;  %v10640_v26 = vld [vmem:[#allocation3 + $0x58] sm:$0x3] }
 0x338   : > { %v3244_v9 = vmax.f32 %v8434_v45, 0.0  ;;  %7994 = vmatmul.mubr.msk.f32.gmra.mrb[22].mxu1 %vm3249_vm5, %v10551_v43  ;;  %v3786_v45 = vrot.slane %v10453_v13, 1  ;;  %v10685_v24 = vld [vmem:[#allocation3 + $0xa0] sm:$0x3] }
 0x339   : > { %v3243_v23 = vmax.f32 %v8435_v25, 0.0  ;;  %v7954_v41 = vpop.f32.mrb[28].mxu0  ;;  %v3804_v33 = vrot.slane %v10685_v24, 1 }
 0x33a   : > { %3333 = vst.msk [vmem:[#allocation3 + $0x159] sm:$0xff] %vm3249_vm5, %v3244_v9  ;;  %v8436_v32 = vadd.f32 %v7954_v41, %v10405_v39  ;;  %v3166_v34 = vpop.f32.mrb[29].mxu0  ;;  %v10561_v36 = vld [vmem:[#allocation3 + $0x120] sm:$0xff]  ;;  %v10563_v46 = vld [vmem:[#allocation3 + $0x128] sm:$0xff]  ;;  %v3789_v9 = vrot.slane %v10640_v26, 1  ;;  %v3791_v41 = vrot.slane %v10465_v29, 1 }
 0x33b   : > { %3332 = vst.msk [vmem:[#allocation3 + $0x151] sm:$0xff] %vm3249_vm5, %v3243_v23  ;;  %v8437_v47 = vadd.f32 %v10405_v39, %v3166_v34  ;;  %7996 = vmatprep.mubr.msk.f32.mxu1 %vm3249_vm5, %v10561_v36  ;;  %v10655_v34 = vld [vmem:[#allocation3 + $0x70] sm:$0x3] }
 0x33c   : > { %v3246_v48 = vmax.f32 %v8436_v32, 0.0  ;;  %7997 = vmatmul.mubr.msk.f32.gmra.mrb[24].mxu1 %vm3249_vm5, %v10563_v46  ;;  %v3792_v32 = vrot.slane %v10467_v54, 1 }
 0x33d   : > { %v3245_v51 = vmax.f32 %v8437_v47, 0.0  ;;  %v7957_v55 = vpop.f32.mrb[30].mxu0 }
 0x33e   : > { %3335 = vst.msk [vmem:[#allocation3 + $0x171] sm:$0xff] %vm3249_vm5, %v3246_v48  ;;  %v8438_v57 = vadd.f32 %v7957_v55, %v10405_v39  ;;  %v3176_v58 = vpop.f32.mrb[31].mxu0  ;;  %v10573_v59 = vld [vmem:[#allocation3 + $0x138] sm:$0xff]  ;;  %v10575_v60 = vld [vmem:[#allocation3 + $0x140] sm:$0xff]  ;;  %v3794_v48 = vrot.slane %v10655_v34, 1  ;;  %v3796_v55 = vrot.slane %v10477_v17, 1 }
 0x33f   : > { %3334 = vst.msk [vmem:[#allocation3 + $0x169] sm:$0xff] %vm3249_vm5, %v3245_v51  ;;  %v8439_v2 = vadd.f32 %v10405_v39, %v3176_v58  ;;  %7999 = vmatprep.mubr.msk.f32.mxu1 %vm3249_vm5, %v10573_v59  ;;  %v3774_v39 = vrot.slane %v10414_v37, 1  ;;  %v10666_v51 = vsel %vm783_vm4, %v3791_v41, %v3792_v32  ;;  %v10670_v58 = vld [vmem:[#allocation3 + $0x88] sm:$0x3] }
 0x340   : > { %v3248_v3 = vmax.f32 %v8438_v57, 0.0  ;;  %8000 = vmatmul.mubr.msk.f32.gmra.mrb[26].mxu1 %vm3249_vm5, %v10575_v60  ;;  %11839 = vst [vmem:[#allocation4_spill] sm:$0xff] %v10666_v51  ;;  %v3797_v57 = vrot.slane %v10479_v44, 1 }
 0x341   : > { %v3247_v4 = vmax.f32 %v8439_v2, 0.0  ;;  %v3775_v37 = vsel %vm783_vm4, %v3772_v30, %v3774_v39  ;;  %v3784_v30 = vrot.slane %v10623_v18, 1  ;;  %v10675_v2 = vsel %vm783_vm4, %v3792_v32, %v3794_v48 }
 0x342   : > { %3337 = vst.msk [vmem:[#allocation3 + $0x189] sm:$0xff] %vm3249_vm5, %v3248_v3  ;;  %v10584_v5 = vld [vmem:[#allocation3 + $0x150] sm:$0xff]  ;;  %v10586_v12 = vld [vmem:[#allocation3 + $0x158] sm:$0xff]  ;;  %11840 = vst [vmem:[#allocation16_spill] sm:$0xff] %v10675_v2  ;;  %v3799_v3 = vrot.slane %v10670_v58, 1  ;;  %v3801_v39 = vrot.slane %v10489_v20, 1 }
 0x343   : > { %3336 = vst.msk [vmem:[#allocation3 + $0x181] sm:$0xff] %vm3249_vm5, %v3247_v4  ;;  %8002 = vmatprep.mubr.msk.f32.mxu1 %vm3249_vm5, %v10584_v5  ;;  %v10681_v4 = vsel %vm783_vm4, %v3796_v55, %v3797_v57  ;;  %v3811_v32 = vrot.slane %v10513_v63, 1  ;;  %v3812_v48 = vrot.slane %v10515_v0, 1  ;;  %v10715_v55 = vld [vmem:[#allocation3 + $0xd0] sm:$0x3] }
 0x344   : > { %8003 = vmatmul.mubr.msk.f32.gmra.mrb[28].mxu1 %vm3249_vm5, %v10586_v12  ;;  %11841 = vst [vmem:[#allocation26_spill] sm:$0xff] %v10681_v4 }
 0x346   : > { %v10594_v27 = vld [vmem:[#allocation3 + $0x168] sm:$0xff]  ;;  %v10596_v28 = vld [vmem:[#allocation3 + $0x170] sm:$0xff] }
 0x347   : > { %8005 = vmatprep.mubr.msk.f32.mxu1 %vm3249_vm5, %v10594_v27 }
 0x348   : > { %8006 = vmatmul.mubr.msk.f32.gmra.mrb[30].mxu1 %vm3249_vm5, %v10596_v28 }
 0x349   : > { %8010 = vmatprep.mubr.msk.f32.mxu1 %vm3249_vm5, %v10394_v31  ;;  %v3782_v31 = vrot.slane %v10443_v11, 1 }
 0x34b   : > { %v10636_v14 = vsel %vm783_vm4, %v3781_v21, %v3782_v31  ;;  %v10645_v25 = vsel %vm783_vm4, %v3782_v31, %v3784_v30  ;;  %v10696_v21 = vsel %vm783_vm4, %v3801_v39, %v3802_v52  ;;  %v3806_v31 = vrot.slane %v10501_v49, 1 }
 0x34c   : > { %8011 = vmatmul.mubr.msk.f32.vlgmr.msra.gmra.mrb[0].mxu1 %vm3249_vm5, %v3775_v37  ;;  %v10690_v37 = vsel %vm783_vm4, %v3797_v57, %v3799_v3  ;;  %11843 = vst [vmem:[#allocation28_spill] sm:$0xff] %v10696_v21  ;;  %v3807_v30 = vrot.slane %v10503_v50, 1  ;;  %v3814_v3 = vrot.slane %v10715_v55, 1  ;;  %v10726_v39 = vsel %vm783_vm4, %v3811_v32, %v3812_v48 }
 0x34d   : > { %8059 = vmatpush3.msra.mxu1 %v10399_v35  ;;  %8013 = vmatprep.mubr.msk.f32.mxu1 %vm3249_vm5, %v10619_v1  ;;  %v3787_v35 = vrot.slane %v10455_v56, 1  ;;  %11842 = vst [vmem:[#allocation27_spill] sm:$0xff] %v10690_v37  ;;  %11847 = vst [vmem:[#allocation6_spill] sm:$0xff] %v10726_v39 }
 0x34e   : > { %8108 = vmatprep.subr.mxu1 %v10615_v42  ;;  %v10711_v41 = vsel %vm783_vm4, %v3806_v31, %v3807_v30  ;;  %v10730_v31 = vld [vmem:[#allocation3 + $0xe8] sm:$0x3] }
 0x34f   : > { %v10651_v23 = vsel %vm783_vm4, %v3786_v45, %v3787_v35  ;;  %v10660_v47 = vsel %vm783_vm4, %v3787_v35, %v3789_v9  ;;  %v10700_v45 = vld [vmem:[#allocation3 + $0xb8] sm:$0x3]  ;;  %v10705_v35 = vsel %vm783_vm4, %v3802_v52, %v3804_v33  ;;  %11845 = vst [vmem:[#allocation40_spill] sm:$0xff] %v10711_v41  ;;  %v3816_v52 = vrot.slane %v10525_v16, 1 }
 0x350   : > { %8014 = vmatmul.mubr.msk.f32.gmra.mrb[2].mxu1 %vm3249_vm5, %v10630_v8  ;;  %11844 = vst [vmem:[#allocation35_spill] sm:$0xff] %v10705_v35  ;;  %v3809_v9 = vrot.slane %v10700_v45, 1  ;;  %v3817_v33 = vrot.slane %v10527_v40, 1 }
 0x351   : > { %8016 = vmatprep.mubr.msk.f32.mxu1 %vm3249_vm5, %v10636_v14 }
 0x352   : > { %v10720_v57 = vsel %vm783_vm4, %v3807_v30, %v3809_v9  ;;  %v10735_v30 = vsel %vm783_vm4, %v3812_v48, %v3814_v3  ;;  %v3819_v9 = vrot.slane %v10730_v31, 1  ;;  %v10741_v32 = vsel %vm783_vm4, %v3816_v52, %v3817_v33 }
 0x353   : > { %11846 = vst [vmem:[#allocation5_spill] sm:$0xff] %v10720_v57  ;;  %11848 = vst [vmem:[#allocation7_spill] sm:$0xff] %v10735_v30 }
 0x354   : > { %8017 = vmatmul.mubr.msk.f32.gmra.mrb[4].mxu1 %vm3249_vm5, %v10645_v25  ;;  %11849 = vst [vmem:[#allocation8_spill] sm:$0xff] %v10741_v32  ;;  %v10750_v48 = vsel %vm783_vm4, %v3817_v33, %v3819_v9 }
 0x355   : > { %8019 = vmatprep.mubr.msk.f32.mxu1 %vm3249_vm5, %v10651_v23  ;;  %11850 = vst [vmem:[#allocation9_spill] sm:$0xff] %v10750_v48 }
 0x358   : > { %8020 = vmatmul.mubr.msk.f32.gmra.mrb[6].mxu1 %vm3249_vm5, %v10660_v47 }
 0x359   : > { %8022 = vmatprep.mubr.msk.f32.mxu1 %vm3249_vm5, %v10666_v51  ;;  %v10820_v51 = vld [vmem:[#allocation3 + $0x178] sm:$0x3] }
 0x35c   : > { %8023 = vmatmul.mubr.msk.f32.gmra.mrb[8].mxu1 %vm3249_vm5, %v10675_v2  ;;  %v10805_v2 = vld [vmem:[#allocation3 + $0x160] sm:$0x3] }
 0x35d   : > { %8025 = vmatprep.mubr.msk.f32.mxu1 %vm3249_vm5, %v10681_v4  ;;  %v10790_v4 = vld [vmem:[#allocation3 + $0x148] sm:$0x3] }
 0x360   : > { %8026 = vmatmul.mubr.msk.f32.gmra.mrb[10].mxu1 %vm3249_vm5, %v10690_v37  ;;  %v10775_v37 = vld [vmem:[#allocation3 + $0x130] sm:$0x3] }
 0x361   : > { %8028 = vmatprep.mubr.msk.f32.mxu1 %vm3249_vm5, %v10696_v21  ;;  %v10760_v21 = vld [vmem:[#allocation3 + $0x118] sm:$0x3] }
 0x362   : > { %v3829_v9 = vrot.slane %v10760_v21, 1 }
 0x364   : > { %8029 = vmatmul.mubr.msk.f32.gmra.mrb[12].mxu1 %vm3249_vm5, %v10705_v35  ;;  %v10745_v35 = vld [vmem:[#allocation3 + $0x100] sm:$0x3] }
 0x365   : > { %8031 = vmatprep.mubr.msk.f32.mxu1 %vm3249_vm5, %v10711_v41  ;;  %v3822_v41 = vrot.slane %v10539_v10, 1  ;;  %v3824_v3 = vrot.slane %v10745_v35, 1 }
 0x367   : > { %v10765_v33 = vsel %vm783_vm4, %v3822_v41, %v3824_v3  ;;  %v3834_v3 = vrot.slane %v10775_v37, 1 }
 0x368   : > { %8032 = vmatmul.mubr.msk.f32.gmra.mrb[14].mxu1 %vm3249_vm5, %v10720_v57  ;;  %v3821_v57 = vrot.slane %v10537_v7, 1  ;;  %11852 = vst [vmem:[#allocation11_spill] sm:$0xff] %v10765_v33 }
 0x369   : > { %8034 = vmatprep.mubr.msk.f32.mxu1 %vm3249_vm5, %v10726_v39  ;;  %v3827_v39 = vrot.slane %v10551_v43, 1 }
 0x36a   : > { %v10756_v52 = vsel %vm783_vm4, %v3821_v57, %v3822_v41 }
 0x36b   : > { %11851 = vst [vmem:[#allocation10_spill] sm:$0xff] %v10756_v52  ;;  %v10780_v41 = vsel %vm783_vm4, %v3827_v39, %v3829_v9  ;;  %v3839_v9 = vrot.slane %v10790_v4, 1 }
 0x36c   : > { %8035 = vmatmul.mubr.msk.f32.gmra.mrb[16].mxu1 %vm3249_vm5, %v10735_v30  ;;  %v3826_v30 = vrot.slane %v10549_v22, 1  ;;  %11854 = vst [vmem:[#allocation13_spill] sm:$0xff] %v10780_v41 }
 0x36d   : > { %8037 = vmatprep.mubr.msk.f32.mxu1 %vm3249_vm5, %v10741_v32  ;;  %v3832_v32 = vrot.slane %v10563_v46, 1 }
 0x36e   : > { %v10771_v57 = vsel %vm783_vm4, %v3826_v30, %v3827_v39 }
 0x36f   : > { %11853 = vst [vmem:[#allocation12_spill] sm:$0xff] %v10771_v57  ;;  %v10795_v39 = vsel %vm783_vm4, %v3832_v32, %v3834_v3  ;;  %v3844_v3 = vrot.slane %v10805_v2, 1 }
 0x370   : > { %8038 = vmatmul.mubr.msk.f32.gmra.mrb[18].mxu1 %vm3249_vm5, %v10750_v48  ;;  %v3831_v48 = vrot.slane %v10561_v36, 1  ;;  %11856 = vst [vmem:[#allocation15_spill] sm:$0xff] %v10795_v39 }
 0x371   : > { %8040 = vmatprep.mubr.msk.f32.mxu1 %vm3249_vm5, %v10756_v52  ;;  %v3837_v52 = vrot.slane %v10575_v60, 1 }
 0x372   : > { %v10786_v30 = vsel %vm783_vm4, %v3831_v48, %v3832_v32 }
 0x373   : > { %11855 = vst [vmem:[#allocation14_spill] sm:$0xff] %v10786_v30  ;;  %v10810_v32 = vsel %vm783_vm4, %v3837_v52, %v3839_v9  ;;  %v3849_v9 = vrot.slane %v10820_v51, 1 }
 0x374   : > { %8041 = vmatmul.mubr.msk.f32.gmra.mrb[20].mxu1 %vm3249_vm5, %v10765_v33  ;;  %v3836_v33 = vrot.slane %v10573_v59, 1  ;;  %11858 = vst [vmem:[#allocation18_spill] sm:$0xff] %v10810_v32 }
 0x375   : > { %8043 = vmatprep.mubr.msk.f32.mxu1 %vm3249_vm5, %v10771_v57  ;;  %v3842_v57 = vrot.slane %v10586_v12, 1 }
 0x376   : > { %v10801_v48 = vsel %vm783_vm4, %v3836_v33, %v3837_v52 }
 0x377   : > { %11857 = vst [vmem:[#allocation17_spill] sm:$0xff] %v10801_v48  ;;  %v10825_v52 = vsel %vm783_vm4, %v3842_v57, %v3844_v3  ;;  %v4184_v3 = vrot.slane %v10441_v6, 2 }
 0x378   : > { %8044 = vmatmul.mubr.msk.f32.gmra.mrb[22].mxu1 %vm3249_vm5, %v10780_v41  ;;  %v3841_v41 = vrot.slane %v10584_v5, 1  ;;  %11860 = vst [vmem:[#allocation20_spill] sm:$0xff] %v10825_v52 }
 0x379   : > { %8046 = vmatprep.mubr.msk.f32.mxu1 %vm3249_vm5, %v10786_v30  ;;  %v3847_v30 = vrot.slane %v10596_v28, 1 }
 0x37a   : > { %v10816_v33 = vsel %vm783_vm4, %v3841_v41, %v3842_v57  ;;  %v4182_v57 = vrot.slane %v10604_v15, 2  ;;  %v4187_v15 = vrot.slane %v10623_v18, 2 }
 0x37b   : > { %11859 = vst [vmem:[#allocation19_spill] sm:$0xff] %v10816_v33 }
 0x37c   : > { %8047 = vmatmul.mubr.msk.f32.gmra.mrb[24].mxu1 %vm3249_vm5, %v10795_v39  ;;  %v3846_v39 = vrot.slane %v10594_v27, 1 }
 0x37d   : > { %8049 = vmatprep.mubr.msk.f32.mxu1 %vm3249_vm5, %v10801_v48  ;;  %v4179_v48 = vrot.slane %v10429_v61, 2 }
 0x37e   : > { %v10831_v41 = vsel %vm783_vm4, %v3846_v39, %v3847_v30  ;;  %v10848_v39 = vld [vmem:[%s11585_s3 + $0x20] sm:$0xff] }
 0x37f   : > { %11861 = vst [vmem:[#allocation21_spill] sm:$0xff] %v10831_v41 }
 0x380   : > { %8050 = vmatmul.mubr.msk.f32.gmra.mrb[26].mxu1 %vm3249_vm5, %v10810_v32  ;;  %v10836_v32 = vsel %vm783_vm4, %v3847_v30, %v3849_v9  ;;  %v4185_v9 = vrot.slane %v10443_v11, 2 }
 0x381   : > { %8052 = vmatprep.mubr.msk.f32.mxu1 %vm3249_vm5, %v10816_v33  ;;  %v4180_v33 = vrot.slane %v10431_v62, 2 }
 0x383   : > { %v10853_v30 = vsel %vm1190_vm3, %v4179_v48, %v4180_v33  ;;  %v4189_v48 = vrot.slane %v10453_v13, 2 }
 0x384   : > { %8053 = vmatmul.mubr.msk.f32.gmra.mrb[28].mxu1 %vm3249_vm5, %v10825_v52  ;;  %11862 = vst [vmem:[#allocation22_spill] sm:$0xff] %v10853_v30 }
 0x385   : > { %8055 = vmatprep.mubr.msk.f32.mxu1 %vm3249_vm5, %v10831_v41 }
 0x388   : > { %8056 = vmatmul.mubr.msk.f32.gmra.mrb[30].mxu1 %vm3249_vm5, %v10836_v32 }
 0x389   : > { %8060 = vmatprep.mubr.msk.f32.mxu1 %vm3249_vm5, %v10417_v38  ;;  %v10862_v38 = vsel %vm1190_vm3, %v4180_v33, %v4182_v57  ;;  %v4192_v33 = vrot.slane %v10640_v26, 2  ;;  %v4194_v57 = vrot.slane %v10465_v29, 2 }
 0x38c   : > { %8061 = vmatmul.mubr.msk.f32.vlgmr.msra.gmra.mrb[0].mxu1 %vm3249_vm5, %v10425_v53  ;;  %v10868_v53 = vsel %vm1190_vm3, %v4184_v3, %v4185_v9  ;;  %v4195_v3 = vrot.slane %v10467_v54, 2 }
 0x38d   : > { %8109 = vmatpush3.msra.mxu1 %v10615_v42  ;;  %8063 = vmatprep.mubr.msk.f32.mxu1 %vm3249_vm5, %v10853_v30  ;;  %11863 = vst [vmem:[#allocation23_spill] sm:$0xff] %v10868_v53  ;;  %v4190_v42 = vrot.slane %v10455_v56, 2  ;;  %v10875_v30 = vsel %vm1190_vm3, %v4185_v9, %v4187_v15  ;;  %v4197_v9 = vrot.slane %v10655_v34, 2  ;;  %v4199_v15 = vrot.slane %v10477_v17, 2 }
 0x38e   : > { %8158 = vmatprep.subr.mxu1 %v10848_v39  ;;  %v10894_v26 = vsel %vm1190_vm3, %v4194_v57, %v4195_v3  ;;  %v4205_v57 = vrot.slane %v10491_v19, 2 }
 0x38f   : > { %v10881_v18 = vsel %vm1190_vm3, %v4189_v48, %v4190_v42  ;;  %11865 = vst [vmem:[#allocation25_spill] sm:$0xff] %v10894_v26  ;;  %v4200_v48 = vrot.slane %v10479_v44, 2 }
 0x390   : > { %8064 = vmatmul.mubr.msk.f32.gmra.mrb[2].mxu1 %vm3249_vm5, %v10862_v38  ;;  %11864 = vst [vmem:[#allocation24_spill] sm:$0xff] %v10881_v18 }
 0x391   : > { %8066 = vmatprep.mubr.msk.f32.mxu1 %vm3249_vm5, %v10868_v53  ;;  %v10888_v53 = vsel %vm1190_vm3, %v4190_v42, %v4192_v33  ;;  %v4202_v42 = vrot.slane %v10670_v58, 2  ;;  %v10907_v34 = vsel %vm1190_vm3, %v4199_v15, %v4200_v48  ;;  %v4204_v33 = vrot.slane %v10489_v20, 2 }
 0x392   : > { %11866 = vst [vmem:[#allocation29_spill] sm:$0xff] %v10907_v34  ;;  %v4210_v15 = vrot.slane %v10503_v50, 2 }
 0x393   : > { %v10920_v58 = vsel %vm1190_vm3, %v4204_v33, %v4205_v57  ;;  %v4215_v33 = vrot.slane %v10515_v0, 2 }
 0x394   : > { %8067 = vmatmul.mubr.msk.f32.gmra.mrb[4].mxu1 %vm3249_vm5, %v10875_v30  ;;  %11867 = vst [vmem:[#allocation30_spill] sm:$0xff] %v10920_v58 }
 0x395   : > { %8069 = vmatprep.mubr.msk.f32.mxu1 %vm3249_vm5, %v10881_v18  ;;  %v10901_v18 = vsel %vm1190_vm3, %v4195_v3, %v4197_v9  ;;  %v4207_v3 = vrot.slane %v10685_v24, 2  ;;  %v4209_v9 = vrot.slane %v10501_v49, 2 }
 0x397   : > { %v10933_v24 = vsel %vm1190_vm3, %v4209_v9, %v4210_v15  ;;  %v4220_v9 = vrot.slane %v10527_v40, 2 }
 0x398   : > { %8070 = vmatmul.mubr.msk.f32.gmra.mrb[6].mxu1 %vm3249_vm5, %v10888_v53  ;;  %11868 = vst [vmem:[#allocation31_spill] sm:$0xff] %v10933_v24 }
 0x399   : > { %8072 = vmatprep.mubr.msk.f32.mxu1 %vm3249_vm5, %v10894_v26  ;;  %v10914_v26 = vsel %vm1190_vm3, %v4200_v48, %v4202_v42  ;;  %v4212_v48 = vrot.slane %v10700_v45, 2  ;;  %v4214_v42 = vrot.slane %v10513_v63, 2 }
 0x39b   : > { %v10946_v45 = vsel %vm1190_vm3, %v4214_v42, %v4215_v33  ;;  %v4225_v42 = vrot.slane %v10539_v10, 2 }
 0x39c   : > { %8073 = vmatmul.mubr.msk.f32.gmra.mrb[8].mxu1 %vm3249_vm5, %v10901_v18  ;;  %11869 = vst [vmem:[#allocation32_spill] sm:$0xff] %v10946_v45 }
 0x39d   : > { %8075 = vmatprep.mubr.msk.f32.mxu1 %vm3249_vm5, %v10907_v34  ;;  %v10927_v34 = vsel %vm1190_vm3, %v4205_v57, %v4207_v3  ;;  %v4217_v57 = vrot.slane %v10715_v55, 2  ;;  %v4219_v3 = vrot.slane %v10525_v16, 2 }
 0x39f   : > { %v10959_v55 = vsel %vm1190_vm3, %v4219_v3, %v4220_v9  ;;  %v4230_v3 = vrot.slane %v10551_v43, 2 }
 0x3a0   : > { %8076 = vmatmul.mubr.msk.f32.gmra.mrb[10].mxu1 %vm3249_vm5, %v10914_v26  ;;  %11870 = vst [vmem:[#allocation33_spill] sm:$0xff] %v10959_v55 }
 0x3a1   : > { %8078 = vmatprep.mubr.msk.f32.mxu1 %vm3249_vm5, %v10920_v58  ;;  %v10940_v58 = vsel %vm1190_vm3, %v4210_v15, %v4212_v48  ;;  %v4222_v15 = vrot.slane %v10730_v31, 2  ;;  %v4224_v48 = vrot.slane %v10537_v7, 2 }
 0x3a3   : > { %v10972_v31 = vsel %vm1190_vm3, %v4224_v48, %v4225_v42  ;;  %v4235_v48 = vrot.slane %v10563_v46, 2 }
 0x3a4   : > { %8079 = vmatmul.mubr.msk.f32.gmra.mrb[12].mxu1 %vm3249_vm5, %v10927_v34  ;;  %11871 = vst [vmem:[#allocation34_spill] sm:$0xff] %v10972_v31 }
 0x3a5   : > { %8081 = vmatprep.mubr.msk.f32.mxu1 %vm3249_vm5, %v10933_v24  ;;  %v10953_v24 = vsel %vm1190_vm3, %v4215_v33, %v4217_v57  ;;  %v4227_v33 = vrot.slane %v10745_v35, 2  ;;  %v4229_v57 = vrot.slane %v10549_v22, 2 }
 0x3a7   : > { %v10985_v35 = vsel %vm1190_vm3, %v4229_v57, %v4230_v3  ;;  %v4240_v57 = vrot.slane %v10575_v60, 2 }
 0x3a8   : > { %8082 = vmatmul.mubr.msk.f32.gmra.mrb[14].mxu1 %vm3249_vm5, %v10940_v58  ;;  %11873 = vst [vmem:[#allocation37_spill] sm:$0xff] %v10985_v35 }
 0x3a9   : > { %8084 = vmatprep.mubr.msk.f32.mxu1 %vm3249_vm5, %v10946_v45  ;;  %v10966_v45 = vsel %vm1190_vm3, %v4220_v9, %v4222_v15  ;;  %v4232_v9 = vrot.slane %v10760_v21, 2  ;;  %v4234_v15 = vrot.slane %v10561_v36, 2 }
 0x3ab   : > { %v10998_v21 = vsel %vm1190_vm3, %v4234_v15, %v4235_v48  ;;  %v4245_v15 = vrot.slane %v10586_v12, 2 }
 0x3ac   : > { %8085 = vmatmul.mubr.msk.f32.gmra.mrb[16].mxu1 %vm3249_vm5, %v10953_v24  ;;  %11874 = vst [vmem:[#allocation38_spill] sm:$0xff] %v10998_v21 }
 0x3ad   : > { %8087 = vmatprep.mubr.msk.f32.mxu1 %vm3249_vm5, %v10959_v55  ;;  %v10979_v55 = vsel %vm1190_vm3, %v4225_v42, %v4227_v33  ;;  %v4237_v42 = vrot.slane %v10775_v37, 2  ;;  %v4239_v33 = vrot.slane %v10573_v59, 2 }
 0x3ae   : > { %11872 = vst [vmem:[#allocation36_spill] sm:$0xff] %v10979_v55 }
 0x3af   : > { %v11011_v37 = vsel %vm1190_vm3, %v4239_v33, %v4240_v57  ;;  %v4250_v33 = vrot.slane %v10596_v28, 2 }
 0x3b0   : > { %8088 = vmatmul.mubr.msk.f32.gmra.mrb[18].mxu1 %vm3249_vm5, %v10966_v45  ;;  %11876 = vst [vmem:[#allocation41_spill] sm:$0xff] %v11011_v37 }
 0x3b1   : > { %8090 = vmatprep.mubr.msk.f32.mxu1 %vm3249_vm5, %v10972_v31  ;;  %v10992_v31 = vsel %vm1190_vm3, %v4230_v3, %v4232_v9  ;;  %v4242_v3 = vrot.slane %v10790_v4, 2  ;;  %v4244_v9 = vrot.slane %v10584_v5, 2 }
 0x3b3   : > { %v11024_v4 = vsel %vm1190_vm3, %v4244_v9, %v4245_v15  ;;  %v11879_v9 = vld [vmem:[#allocation16_spill] sm:$0xff] }
 0x3b4   : > { %8091 = vmatmul.mubr.msk.f32.gmra.mrb[20].mxu1 %vm3249_vm5, %v10979_v55  ;;  %11877 = vst [vmem:[#allocation42_spill] sm:$0xff] %v11024_v4 }
 0x3b5   : > { %8093 = vmatprep.mubr.msk.f32.mxu1 %vm3249_vm5, %v10985_v35  ;;  %v11005_v35 = vsel %vm1190_vm3, %v4235_v48, %v4237_v42  ;;  %v4247_v48 = vrot.slane %v10805_v2, 2  ;;  %v4249_v42 = vrot.slane %v10594_v27, 2 }
 0x3b6   : > { %11875 = vst [vmem:[#allocation39_spill] sm:$0xff] %v11005_v35 }
 0x3b7   : > { %v11037_v2 = vsel %vm1190_vm3, %v4249_v42, %v4250_v33  ;;  %v11883_v42 = vld [vmem:[#allocation35_spill] sm:$0xff] }
 0x3b8   : > { %8094 = vmatmul.mubr.msk.f32.gmra.mrb[22].mxu1 %vm3249_vm5, %v10992_v31 }
 0x3b9   : > { %8096 = vmatprep.mubr.msk.f32.mxu1 %vm3249_vm5, %v10998_v21  ;;  %v11018_v21 = vsel %vm1190_vm3, %v4240_v57, %v4242_v3  ;;  %v4252_v57 = vrot.slane %v10820_v51, 2  ;;  %v6778_v51 = vld [vmem:[%s11585_s3 + $0x28] sm:$0xff] }
 0x3bb   : > { %v11042_v3 = vsel %vm1190_vm3, %v4250_v33, %v4252_v57  ;;  %v11884_v33 = vld [vmem:[#allocation40_spill] sm:$0xff]  ;;  %v11885_v57 = vld [vmem:[#allocation5_spill] sm:$0xff] }
 0x3bc   : > { %8097 = vmatmul.mubr.msk.f32.gmra.mrb[24].mxu1 %vm3249_vm5, %v11005_v35 }
 0x3bd   : > { %8099 = vmatprep.mubr.msk.f32.mxu1 %vm3249_vm5, %v11011_v37  ;;  %v11031_v37 = vsel %vm1190_vm3, %v4245_v15, %v4247_v48  ;;  %v11881_v15 = vld [vmem:[#allocation27_spill] sm:$0xff]  ;;  %v11882_v48 = vld [vmem:[#allocation28_spill] sm:$0xff] }
 0x3c0   : > { %8100 = vmatmul.mubr.msk.f32.gmra.mrb[26].mxu1 %vm3249_vm5, %v11018_v21 }
 0x3c1   : > { %8102 = vmatprep.mubr.msk.f32.mxu1 %vm3249_vm5, %v11024_v4 }
 0x3c4   : > { %8103 = vmatmul.mubr.msk.f32.gmra.mrb[28].mxu1 %vm3249_vm5, %v11031_v37 }
 0x3c5   : > { %8105 = vmatprep.mubr.msk.f32.mxu1 %vm3249_vm5, %v11037_v2 }
 0x3c8   : > { %8106 = vmatmul.mubr.msk.f32.gmra.mrb[30].mxu1 %vm3249_vm5, %v11042_v3 }
 0x3c9   : > { %8110 = vmatprep.mubr.msk.f32.mxu1 %vm3249_vm5, %v10429_v61  ;;  %v11110_v61 = vld [vmem:[#allocation3 + $0x180] sm:$0xff] }
 0x3cc   : > { %8111 = vmatmul.mubr.msk.f32.vlgmr.msra.gmra.mrb[0].mxu1 %vm3249_vm5, %v10431_v62  ;;  %v11114_v62 = vld [vmem:[#allocation3 + $0x188] sm:$0xff] }
 0x3cd   : > { %8159 = vmatpush3.msra.mxu1 %v10848_v39  ;;  %8113 = vmatprep.mubr.msk.f32.mxu1 %vm3249_vm5, %v10441_v6  ;;  %v6811_v39 = vld [vmem:[%s11585_s3 + $0x30] sm:$0xff] }
 0x3ce   : > { %8208 = vmatprep.subr.mxu1 %v6778_v51 }
 0x3d0   : > { %8114 = vmatmul.mubr.msk.f32.gmra.mrb[2].mxu1 %vm3249_vm5, %v10443_v11 }
 0x3d1   : > { %8116 = vmatprep.mubr.msk.f32.mxu1 %vm3249_vm5, %v10453_v13 }
 0x3d4   : > { %8117 = vmatmul.mubr.msk.f32.gmra.mrb[4].mxu1 %vm3249_vm5, %v10455_v56 }
 0x3d5   : > { %8119 = vmatprep.mubr.msk.f32.mxu1 %vm3249_vm5, %v10465_v29 }
 0x3d8   : > { %8120 = vmatmul.mubr.msk.f32.gmra.mrb[6].mxu1 %vm3249_vm5, %v10467_v54 }
 0x3d9   : > { %8122 = vmatprep.mubr.msk.f32.mxu1 %vm3249_vm5, %v10477_v17 }
 0x3dc   : > { %8123 = vmatmul.mubr.msk.f32.gmra.mrb[8].mxu1 %vm3249_vm5, %v10479_v44 }
 0x3dd   : > { %8125 = vmatprep.mubr.msk.f32.mxu1 %vm3249_vm5, %v10489_v20 }
 0x3e0   : > { %8126 = vmatmul.mubr.msk.f32.gmra.mrb[10].mxu1 %vm3249_vm5, %v10491_v19 }
 0x3e1   : > { %8128 = vmatprep.mubr.msk.f32.mxu1 %vm3249_vm5, %v10501_v49 }
 0x3e4   : > { %8129 = vmatmul.mubr.msk.f32.gmra.mrb[12].mxu1 %vm3249_vm5, %v10503_v50 }
 0x3e5   : > { %8131 = vmatprep.mubr.msk.f32.mxu1 %vm3249_vm5, %v10513_v63 }
 0x3e8   : > { %8132 = vmatmul.mubr.msk.f32.gmra.mrb[14].mxu1 %vm3249_vm5, %v10515_v0 }
 0x3e9   : > { %8134 = vmatprep.mubr.msk.f32.mxu1 %vm3249_vm5, %v10525_v16 }
 0x3ec   : > { %8135 = vmatmul.mubr.msk.f32.gmra.mrb[16].mxu1 %vm3249_vm5, %v10527_v40 }
 0x3ed   : > { %8137 = vmatprep.mubr.msk.f32.mxu1 %vm3249_vm5, %v10537_v7 }
 0x3f0   : > { %8138 = vmatmul.mubr.msk.f32.gmra.mrb[18].mxu1 %vm3249_vm5, %v10539_v10 }
 0x3f1   : > { %8140 = vmatprep.mubr.msk.f32.mxu1 %vm3249_vm5, %v10549_v22 }
 0x3f4   : > { %8141 = vmatmul.mubr.msk.f32.gmra.mrb[20].mxu1 %vm3249_vm5, %v10551_v43 }
 0x3f5   : > { %8143 = vmatprep.mubr.msk.f32.mxu1 %vm3249_vm5, %v10561_v36 }
 0x3f8   : > { %8144 = vmatmul.mubr.msk.f32.gmra.mrb[22].mxu1 %vm3249_vm5, %v10563_v46 }
 0x3f9   : > { %8146 = vmatprep.mubr.msk.f32.mxu1 %vm3249_vm5, %v10573_v59 }
 0x3fc   : > { %8147 = vmatmul.mubr.msk.f32.gmra.mrb[24].mxu1 %vm3249_vm5, %v10575_v60 }
 0x3fd   : > { %8149 = vmatprep.mubr.msk.f32.mxu1 %vm3249_vm5, %v10584_v5 }
 0x400   : > { %8150 = vmatmul.mubr.msk.f32.gmra.mrb[26].mxu1 %vm3249_vm5, %v10586_v12 }
 0x401   : > { %8152 = vmatprep.mubr.msk.f32.mxu1 %vm3249_vm5, %v10594_v27 }
 0x404   : > { %8153 = vmatmul.mubr.msk.f32.gmra.mrb[28].mxu1 %vm3249_vm5, %v10596_v28 }
 0x405   : > { %8155 = vmatprep.mubr.msk.f32.mxu1 %vm3249_vm5, %v11110_v61 }
 0x408   : > { %8156 = vmatmul.mubr.msk.f32.gmra.mrb[30].mxu1 %vm3249_vm5, %v11114_v62 }
 0x409   : > { %8160 = vmatprep.mubr.msk.f32.mxu1 %vm3249_vm5, %v10619_v1  ;;  %v11878_v1 = vld [vmem:[#allocation4_spill] sm:$0xff] }
 0x40c   : > { %8161 = vmatmul.mubr.msk.f32.vlgmr.msra.gmra.mrb[0].mxu1 %vm3249_vm5, %v10630_v8  ;;  %v11880_v8 = vld [vmem:[#allocation26_spill] sm:$0xff] }
 0x40d   : > { %8209 = vmatpush3.msra.mxu1 %v6778_v51  ;;  %8163 = vmatprep.mubr.msk.f32.mxu1 %vm3249_vm5, %v10636_v14  ;;  %v11886_v51 = vld [vmem:[#allocation6_spill] sm:$0xff] }
 0x40e   : > { %8258 = vmatprep.subr.mxu1 %v6811_v39 }
 0x410   : > { %8164 = vmatmul.mubr.msk.f32.gmra.mrb[2].mxu1 %vm3249_vm5, %v10645_v25 }
 0x411   : > { %8166 = vmatprep.mubr.msk.f32.mxu1 %vm3249_vm5, %v10651_v23 }
 0x414   : > { %8167 = vmatmul.mubr.msk.f32.gmra.mrb[4].mxu1 %vm3249_vm5, %v10660_v47 }
 0x415   : > { %8169 = vmatprep.mubr.msk.f32.mxu1 %vm3249_vm5, %v11878_v1 }
 0x418   : > { %8170 = vmatmul.mubr.msk.f32.gmra.mrb[6].mxu1 %vm3249_vm5, %v11879_v9  ;;  %v11887_v9 = vld [vmem:[#allocation7_spill] sm:$0xff] }
 0x419   : > { %8172 = vmatprep.mubr.msk.f32.mxu1 %vm3249_vm5, %v11880_v8  ;;  %v11888_v8 = vld [vmem:[#allocation8_spill] sm:$0xff] }
 0x41c   : > { %8173 = vmatmul.mubr.msk.f32.gmra.mrb[8].mxu1 %vm3249_vm5, %v11881_v15  ;;  %v11889_v15 = vld [vmem:[#allocation9_spill] sm:$0xff] }
 0x41d   : > { %8175 = vmatprep.mubr.msk.f32.mxu1 %vm3249_vm5, %v11882_v48  ;;  %v11890_v48 = vld [vmem:[#allocation10_spill] sm:$0xff] }
 0x420   : > { %8176 = vmatmul.mubr.msk.f32.gmra.mrb[10].mxu1 %vm3249_vm5, %v11883_v42  ;;  %v11891_v42 = vld [vmem:[#allocation11_spill] sm:$0xff] }
 0x421   : > { %8178 = vmatprep.mubr.msk.f32.mxu1 %vm3249_vm5, %v11884_v33  ;;  %v11892_v33 = vld [vmem:[#allocation12_spill] sm:$0xff] }
 0x424   : > { %8179 = vmatmul.mubr.msk.f32.gmra.mrb[12].mxu1 %vm3249_vm5, %v11885_v57  ;;  %v11893_v57 = vld [vmem:[#allocation13_spill] sm:$0xff] }
 0x425   : > { %8181 = vmatprep.mubr.msk.f32.mxu1 %vm3249_vm5, %v11886_v51  ;;  %v11894_v51 = vld [vmem:[#allocation14_spill] sm:$0xff] }
 0x428   : > { %8182 = vmatmul.mubr.msk.f32.gmra.mrb[14].mxu1 %vm3249_vm5, %v11887_v9  ;;  %v11895_v9 = vld [vmem:[#allocation15_spill] sm:$0xff] }
 0x429   : > { %8184 = vmatprep.mubr.msk.f32.mxu1 %vm3249_vm5, %v11888_v8  ;;  %v11896_v8 = vld [vmem:[#allocation17_spill] sm:$0xff] }
 0x42c   : > { %8185 = vmatmul.mubr.msk.f32.gmra.mrb[16].mxu1 %vm3249_vm5, %v11889_v15  ;;  %v11897_v15 = vld [vmem:[#allocation18_spill] sm:$0xff] }
 0x42d   : > { %8187 = vmatprep.mubr.msk.f32.mxu1 %vm3249_vm5, %v11890_v48  ;;  %v11898_v48 = vld [vmem:[#allocation19_spill] sm:$0xff] }
 0x430   : > { %8188 = vmatmul.mubr.msk.f32.gmra.mrb[18].mxu1 %vm3249_vm5, %v11891_v42  ;;  %v4844_v42 = vrot.slane %v11114_v62, 1 }
 0x431   : > { %8190 = vmatprep.mubr.msk.f32.mxu1 %vm3249_vm5, %v11892_v33  ;;  %v4843_v33 = vrot.slane %v11110_v61, 1 }
 0x434   : > { %8191 = vmatmul.mubr.msk.f32.gmra.mrb[20].mxu1 %vm3249_vm5, %v11893_v57 }
 0x435   : > { %8193 = vmatprep.mubr.msk.f32.mxu1 %vm3249_vm5, %v11894_v51  ;;  %v3388_v51 = vld [vmem:[#allocation3 + $0x190] sm:$0x3] }
 0x438   : > { %8194 = vmatmul.mubr.msk.f32.gmra.mrb[22].mxu1 %vm3249_vm5, %v11895_v9  ;;  %v4846_v9 = vrot.slane %v3388_v51, 1 }
 0x439   : > { %8196 = vmatprep.mubr.msk.f32.mxu1 %vm3249_vm5, %v11896_v8 }
 0x43c   : > { %8197 = vmatmul.mubr.msk.f32.gmra.mrb[24].mxu1 %vm3249_vm5, %v11897_v15  ;;  %v11184_v15 = vsel %vm783_vm4, %v4843_v33, %v4844_v42  ;;  %v11900_v33 = vld [vmem:[#allocation23_spill] sm:$0xff] }
 0x43d   : > { %8199 = vmatprep.mubr.msk.f32.mxu1 %vm3249_vm5, %v11898_v48  ;;  %v11189_v48 = vsel %vm783_vm4, %v4844_v42, %v4846_v9  ;;  %v11901_v9 = vld [vmem:[#allocation24_spill] sm:$0xff]  ;;  %v11905_v42 = vld [vmem:[#allocation31_spill] sm:$0xff] }
 0x440   : > { %8200 = vmatmul.mubr.msk.f32.gmra.mrb[26].mxu1 %vm3249_vm5, %v10825_v52  ;;  %v11899_v52 = vld [vmem:[#allocation22_spill] sm:$0xff] }
 0x441   : > { %8202 = vmatprep.mubr.msk.f32.mxu1 %vm3249_vm5, %v10831_v41  ;;  %v6844_v41 = vld [vmem:[%s11585_s3 + $0x38] sm:$0xff] }
 0x444   : > { %8203 = vmatmul.mubr.msk.f32.gmra.mrb[28].mxu1 %vm3249_vm5, %v10836_v32 }
 0x445   : > { %8205 = vmatprep.mubr.msk.f32.mxu1 %vm3249_vm5, %v11184_v15 }
 0x448   : > { %8206 = vmatmul.mubr.msk.f32.gmra.mrb[30].mxu1 %vm3249_vm5, %v11189_v48 }
 0x449   : > { %8210 = vmatprep.mubr.msk.f32.mxu1 %vm3249_vm5, %v11899_v52  ;;  %v11902_v52 = vld [vmem:[#allocation25_spill] sm:$0xff] }
 0x44c   : > { %8211 = vmatmul.mubr.msk.f32.vlgmr.msra.gmra.mrb[0].mxu1 %vm3249_vm5, %v10862_v38  ;;  %v11903_v38 = vld [vmem:[#allocation29_spill] sm:$0xff] }
 0x44d   : > { %8259 = vmatpush3.msra.mxu1 %v6811_v39  ;;  %8213 = vmatprep.mubr.msk.f32.mxu1 %vm3249_vm5, %v11900_v33  ;;  %v11904_v39 = vld [vmem:[#allocation30_spill] sm:$0xff] }
 0x44e   : > { %8308 = vmatprep.subr.mxu1 %v6844_v41 }
 0x450   : > { %8214 = vmatmul.mubr.msk.f32.gmra.mrb[2].mxu1 %vm3249_vm5, %v10875_v30 }
 0x451   : > { %8216 = vmatprep.mubr.msk.f32.mxu1 %vm3249_vm5, %v11901_v9 }
 0x454   : > { %8217 = vmatmul.mubr.msk.f32.gmra.mrb[4].mxu1 %vm3249_vm5, %v10888_v53 }
 0x455   : > { %8219 = vmatprep.mubr.msk.f32.mxu1 %vm3249_vm5, %v11902_v52  ;;  %v11906_v52 = vld [vmem:[#allocation32_spill] sm:$0xff] }
 0x458   : > { %8220 = vmatmul.mubr.msk.f32.gmra.mrb[6].mxu1 %vm3249_vm5, %v10901_v18 }
 0x459   : > { %8222 = vmatprep.mubr.msk.f32.mxu1 %vm3249_vm5, %v11903_v38  ;;  %v11907_v38 = vld [vmem:[#allocation33_spill] sm:$0xff] }
 0x45c   : > { %8223 = vmatmul.mubr.msk.f32.gmra.mrb[8].mxu1 %vm3249_vm5, %v10914_v26 }
 0x45d   : > { %8225 = vmatprep.mubr.msk.f32.mxu1 %vm3249_vm5, %v11904_v39  ;;  %v11908_v39 = vld [vmem:[#allocation34_spill] sm:$0xff] }
 0x460   : > { %8226 = vmatmul.mubr.msk.f32.gmra.mrb[10].mxu1 %vm3249_vm5, %v10927_v34 }
 0x461   : > { %8228 = vmatprep.mubr.msk.f32.mxu1 %vm3249_vm5, %v11905_v42  ;;  %v11909_v42 = vld [vmem:[#allocation37_spill] sm:$0xff] }
 0x464   : > { %8229 = vmatmul.mubr.msk.f32.gmra.mrb[12].mxu1 %vm3249_vm5, %v10940_v58 }
 0x465   : > { %8231 = vmatprep.mubr.msk.f32.mxu1 %vm3249_vm5, %v11906_v52  ;;  %v11910_v52 = vld [vmem:[#allocation38_spill] sm:$0xff] }
 0x468   : > { %8232 = vmatmul.mubr.msk.f32.gmra.mrb[14].mxu1 %vm3249_vm5, %v10953_v24 }
 0x469   : > { %8234 = vmatprep.mubr.msk.f32.mxu1 %vm3249_vm5, %v11907_v38  ;;  %v11911_v38 = vld [vmem:[#allocation41_spill] sm:$0xff] }
 0x46c   : > { %8235 = vmatmul.mubr.msk.f32.gmra.mrb[16].mxu1 %vm3249_vm5, %v10966_v45 }
 0x46d   : > { %8237 = vmatprep.mubr.msk.f32.mxu1 %vm3249_vm5, %v11908_v39 }
 0x470   : > { %8238 = vmatmul.mubr.msk.f32.gmra.mrb[18].mxu1 %vm3249_vm5, %v10979_v55  ;;  %v5112_v55 = vrot.slane %v11114_v62, 2 }
 0x471   : > { %8240 = vmatprep.mubr.msk.f32.mxu1 %vm3249_vm5, %v11909_v42  ;;  %v5111_v42 = vrot.slane %v11110_v61, 2 }
 0x474   : > { %8241 = vmatmul.mubr.msk.f32.gmra.mrb[20].mxu1 %vm3249_vm5, %v10992_v31 }
 0x475   : > { %8243 = vmatprep.mubr.msk.f32.mxu1 %vm3249_vm5, %v11910_v52 }
 0x478   : > { %8244 = vmatmul.mubr.msk.f32.gmra.mrb[22].mxu1 %vm3249_vm5, %v11005_v35  ;;  %v5114_v35 = vrot.slane %v3388_v51, 2  ;;  %v6877_v51 = vld [vmem:[%s11585_s3 + $0x40] sm:$0xff] }
 0x479   : > { %8246 = vmatprep.mubr.msk.f32.mxu1 %vm3249_vm5, %v11911_v38  ;;  %v11259_v38 = vsel %vm1190_vm3, %v5111_v42, %v5112_v55 }
 0x47c   : > { %8247 = vmatmul.mubr.msk.f32.gmra.mrb[24].mxu1 %vm3249_vm5, %v11018_v21 }
 0x47d   : > { %8249 = vmatprep.mubr.msk.f32.mxu1 %vm3249_vm5, %v11024_v4  ;;  %v11264_v4 = vsel %vm1190_vm3, %v5112_v55, %v5114_v35  ;;  %v11474_v35 = vld [vmem:[%s11586_s4] ss:$0 sm:$0xff] }
 0x480   : > { %8250 = vmatmul.mubr.msk.f32.gmra.mrb[26].mxu1 %vm3249_vm5, %v11031_v37 }
 0x481   : > { %8252 = vmatprep.mubr.msk.f32.mxu1 %vm3249_vm5, %v11037_v2 }
 0x484   : > { %8253 = vmatmul.mubr.msk.f32.gmra.mrb[28].mxu1 %vm3249_vm5, %v11042_v3 }
 0x485   : > { %8255 = vmatprep.mubr.msk.f32.mxu1 %vm3249_vm5, %v11259_v38 }
 0x488   : > { %8256 = vmatmul.mubr.msk.f32.gmra.mrb[30].mxu1 %vm3249_vm5, %v11264_v4 }
 0x489   : > { %8260 = vmatprep.mubr.msk.f32.mxu1 %vm3249_vm5, %v10441_v6  ;;  %v11329_v6 = vld [vmem:[#allocation3 + $0x198] sm:$0xff] }
 0x48c   : > { %8261 = vmatmul.mubr.msk.f32.vlgmr.msra.gmra.mrb[0].mxu1 %vm3249_vm5, %v10443_v11  ;;  %v11335_v11 = vld [vmem:[#allocation3 + $0x1a0] sm:$0xff] }
 0x48d   : > { %8309 = vmatpush3.msra.mxu1 %v6844_v41  ;;  %8263 = vmatprep.mubr.msk.f32.mxu1 %vm3249_vm5, %v10453_v13  ;;  %v11912_v13 = vld [vmem:[#allocation16_spill] sm:$0xff]  ;;  %v11937_v41 = vld [vmem:[#allocation33_spill] sm:$0xff] }
 0x48e   : > { %8358 = vmatprep.subr.mxu1 %v6877_v51 }
 0x490   : > { %8264 = vmatmul.mubr.msk.f32.gmra.mrb[2].mxu1 %vm3249_vm5, %v10455_v56  ;;  %v11913_v56 = vld [vmem:[#allocation26_spill] sm:$0xff] }
 0x491   : > { %8266 = vmatprep.mubr.msk.f32.mxu1 %vm3249_vm5, %v10465_v29  ;;  %v11914_v29 = vld [vmem:[#allocation27_spill] sm:$0xff] }
 0x494   : > { %8267 = vmatmul.mubr.msk.f32.gmra.mrb[4].mxu1 %vm3249_vm5, %v10467_v54  ;;  %v11915_v54 = vld [vmem:[#allocation28_spill] sm:$0xff] }
 0x495   : > { %8269 = vmatprep.mubr.msk.f32.mxu1 %vm3249_vm5, %v10477_v17  ;;  %v11916_v17 = vld [vmem:[#allocation35_spill] sm:$0xff] }
 0x498   : > { %8270 = vmatmul.mubr.msk.f32.gmra.mrb[6].mxu1 %vm3249_vm5, %v10479_v44  ;;  %v11917_v44 = vld [vmem:[#allocation40_spill] sm:$0xff] }
 0x499   : > { %8272 = vmatprep.mubr.msk.f32.mxu1 %vm3249_vm5, %v10489_v20  ;;  %v11918_v20 = vld [vmem:[#allocation5_spill] sm:$0xff] }
 0x49c   : > { %8273 = vmatmul.mubr.msk.f32.gmra.mrb[8].mxu1 %vm3249_vm5, %v10491_v19  ;;  %v11919_v19 = vld [vmem:[#allocation6_spill] sm:$0xff] }
 0x49d   : > { %8275 = vmatprep.mubr.msk.f32.mxu1 %vm3249_vm5, %v10501_v49  ;;  %v11920_v49 = vld [vmem:[#allocation7_spill] sm:$0xff] }
 0x4a0   : > { %8276 = vmatmul.mubr.msk.f32.gmra.mrb[10].mxu1 %vm3249_vm5, %v10503_v50  ;;  %v11921_v50 = vld [vmem:[#allocation8_spill] sm:$0xff] }
 0x4a1   : > { %8278 = vmatprep.mubr.msk.f32.mxu1 %vm3249_vm5, %v10513_v63  ;;  %v11922_v63 = vld [vmem:[#allocation9_spill] sm:$0xff] }
 0x4a4   : > { %8279 = vmatmul.mubr.msk.f32.gmra.mrb[12].mxu1 %vm3249_vm5, %v10515_v0  ;;  %v11923_v0 = vld [vmem:[#allocation10_spill] sm:$0xff] }
 0x4a5   : > { %8281 = vmatprep.mubr.msk.f32.mxu1 %vm3249_vm5, %v10525_v16  ;;  %v11924_v16 = vld [vmem:[#allocation11_spill] sm:$0xff] }
 0x4a8   : > { %8282 = vmatmul.mubr.msk.f32.gmra.mrb[14].mxu1 %vm3249_vm5, %v10527_v40  ;;  %v11925_v40 = vld [vmem:[#allocation12_spill] sm:$0xff] }
 0x4a9   : > { %8284 = vmatprep.mubr.msk.f32.mxu1 %vm3249_vm5, %v10537_v7  ;;  %v11926_v7 = vld [vmem:[#allocation14_spill] sm:$0xff] }
 0x4ac   : > { %8285 = vmatmul.mubr.msk.f32.gmra.mrb[16].mxu1 %vm3249_vm5, %v10539_v10  ;;  %v11927_v10 = vld [vmem:[#allocation15_spill] sm:$0xff] }
 0x4ad   : > { %8287 = vmatprep.mubr.msk.f32.mxu1 %vm3249_vm5, %v10549_v22  ;;  %v11928_v22 = vld [vmem:[#allocation18_spill] sm:$0xff] }
 0x4b0   : > { %8288 = vmatmul.mubr.msk.f32.gmra.mrb[18].mxu1 %vm3249_vm5, %v10551_v43  ;;  %v11929_v43 = vld [vmem:[#allocation19_spill] sm:$0xff] }
 0x4b1   : > { %8290 = vmatprep.mubr.msk.f32.mxu1 %vm3249_vm5, %v10561_v36  ;;  %v11930_v36 = vld [vmem:[#allocation20_spill] sm:$0xff] }
 0x4b4   : > { %8291 = vmatmul.mubr.msk.f32.gmra.mrb[20].mxu1 %vm3249_vm5, %v10563_v46  ;;  %v11931_v46 = vld [vmem:[#allocation21_spill] sm:$0xff] }
 0x4b5   : > { %8293 = vmatprep.mubr.msk.f32.mxu1 %vm3249_vm5, %v10573_v59  ;;  %v5645_v59 = vrot.slane %v11329_v6, 1 }
 0x4b8   : > { %8294 = vmatmul.mubr.msk.f32.gmra.mrb[22].mxu1 %vm3249_vm5, %v10575_v60  ;;  %v5646_v60 = vrot.slane %v11335_v11, 1 }
 0x4b9   : > { %8296 = vmatprep.mubr.msk.f32.mxu1 %vm3249_vm5, %v10584_v5  ;;  %v3391_v5 = vld [vmem:[#allocation3 + $0x1a8] sm:$0x3] }
 0x4bc   : > { %8297 = vmatmul.mubr.msk.f32.gmra.mrb[24].mxu1 %vm3249_vm5, %v10586_v12  ;;  %v5648_v12 = vrot.slane %v3391_v5, 1 }
 0x4bd   : > { %8299 = vmatprep.mubr.msk.f32.mxu1 %vm3249_vm5, %v10594_v27  ;;  %v5647_v27 = vsel %vm783_vm4, %v5645_v59, %v5646_v60 }
 0x4c0   : > { %8300 = vmatmul.mubr.msk.f32.gmra.mrb[26].mxu1 %vm3249_vm5, %v10596_v28  ;;  %v5649_v28 = vsel %vm783_vm4, %v5646_v60, %v5648_v12 }
 0x4c1   : > { %8302 = vmatprep.mubr.msk.f32.mxu1 %vm3249_vm5, %v11110_v61 }
 0x4c4   : > { %8303 = vmatmul.mubr.msk.f32.gmra.mrb[28].mxu1 %vm3249_vm5, %v11114_v62 }
 0x4c5   : > { %8305 = vmatprep.mubr.msk.f32.mxu1 %vm3249_vm5, %v11329_v6 }
 0x4c8   : > { %8306 = vmatmul.mubr.msk.f32.gmra.mrb[30].mxu1 %vm3249_vm5, %v11335_v11 }
 0x4c9   : > { %8310 = vmatprep.mubr.msk.f32.mxu1 %vm3249_vm5, %v10636_v14  ;;  %v11932_v14 = vld [vmem:[#allocation25_spill] sm:$0xff] }
 0x4cc   : > { %8311 = vmatmul.mubr.msk.f32.vlgmr.msra.gmra.mrb[0].mxu1 %vm3249_vm5, %v10645_v25  ;;  %v11933_v25 = vld [vmem:[#allocation29_spill] sm:$0xff] }
 0x4cd   : > { %8359 = vmatpush3.msra.mxu1 %v6877_v51  ;;  %8313 = vmatprep.mubr.msk.f32.mxu1 %vm3249_vm5, %v10651_v23  ;;  %v11934_v23 = vld [vmem:[#allocation30_spill] sm:$0xff] }
 0x4d0   : > { %8314 = vmatmul.mubr.msk.f32.gmra.mrb[2].mxu1 %vm3249_vm5, %v10660_v47  ;;  %v11935_v47 = vld [vmem:[#allocation31_spill] sm:$0xff] }
 0x4d1   : > { %8316 = vmatprep.mubr.msk.f32.mxu1 %vm3249_vm5, %v11878_v1 }
 0x4d4   : > { %8317 = vmatmul.mubr.msk.f32.gmra.mrb[4].mxu1 %vm3249_vm5, %v11912_v13 }
 0x4d5   : > { %8319 = vmatprep.mubr.msk.f32.mxu1 %vm3249_vm5, %v11913_v56 }
 0x4d8   : > { %8320 = vmatmul.mubr.msk.f32.gmra.mrb[6].mxu1 %vm3249_vm5, %v11914_v29 }
 0x4d9   : > { %8322 = vmatprep.mubr.msk.f32.mxu1 %vm3249_vm5, %v11915_v54 }
 0x4dc   : > { %8323 = vmatmul.mubr.msk.f32.gmra.mrb[8].mxu1 %vm3249_vm5, %v11916_v17 }
 0x4dd   : > { %8325 = vmatprep.mubr.msk.f32.mxu1 %vm3249_vm5, %v11917_v44 }
 0x4e0   : > { %8326 = vmatmul.mubr.msk.f32.gmra.mrb[10].mxu1 %vm3249_vm5, %v11918_v20 }
 0x4e1   : > { %8328 = vmatprep.mubr.msk.f32.mxu1 %vm3249_vm5, %v11919_v19 }
 0x4e4   : > { %8329 = vmatmul.mubr.msk.f32.gmra.mrb[12].mxu1 %vm3249_vm5, %v11920_v49 }
 0x4e5   : > { %8331 = vmatprep.mubr.msk.f32.mxu1 %vm3249_vm5, %v11921_v50 }
 0x4e8   : > { %8332 = vmatmul.mubr.msk.f32.gmra.mrb[14].mxu1 %vm3249_vm5, %v11922_v63 }
 0x4e9   : > { %8334 = vmatprep.mubr.msk.f32.mxu1 %vm3249_vm5, %v11923_v0 }
 0x4ec   : > { %8335 = vmatmul.mubr.msk.f32.gmra.mrb[16].mxu1 %vm3249_vm5, %v11924_v16 }
 0x4ed   : > { %8337 = vmatprep.mubr.msk.f32.mxu1 %vm3249_vm5, %v11925_v40 }
 0x4f0   : > { %8338 = vmatmul.mubr.msk.f32.gmra.mrb[18].mxu1 %vm3249_vm5, %v11893_v57 }
 0x4f1   : > { %8340 = vmatprep.mubr.msk.f32.mxu1 %vm3249_vm5, %v11926_v7 }
 0x4f4   : > { %8341 = vmatmul.mubr.msk.f32.gmra.mrb[20].mxu1 %vm3249_vm5, %v11927_v10 }
 0x4f5   : > { %8343 = vmatprep.mubr.msk.f32.mxu1 %vm3249_vm5, %v11896_v8 }
 0x4f8   : > { %8344 = vmatmul.mubr.msk.f32.gmra.mrb[22].mxu1 %vm3249_vm5, %v11928_v22 }
 0x4f9   : > { %8346 = vmatprep.mubr.msk.f32.mxu1 %vm3249_vm5, %v11929_v43 }
 0x4fc   : > { %8347 = vmatmul.mubr.msk.f32.gmra.mrb[24].mxu1 %vm3249_vm5, %v11930_v36 }
 0x4fd   : > { %8349 = vmatprep.mubr.msk.f32.mxu1 %vm3249_vm5, %v11931_v46 }
 0x500   : > { %8350 = vmatmul.mubr.msk.f32.gmra.mrb[26].mxu1 %vm3249_vm5, %v10836_v32  ;;  %v11936_v32 = vld [vmem:[#allocation32_spill] sm:$0xff] }
 0x501   : > { %8352 = vmatprep.mubr.msk.f32.mxu1 %vm3249_vm5, %v11184_v15 }
 0x504   : > { %8353 = vmatmul.mubr.msk.f32.gmra.mrb[28].mxu1 %vm3249_vm5, %v11189_v48 }
 0x505   : > { %8355 = vmatprep.mubr.msk.f32.mxu1 %vm3249_vm5, %v5647_v27 }
 0x508   : > { %8356 = vmatmul.mubr.msk.f32.gmra.mrb[30].mxu1 %vm3249_vm5, %v5649_v28 }
 0x509   : > { %8360 = vmatprep.mubr.msk.f32.mxu1 %vm3249_vm5, %v11900_v33 }
 0x50c   : > { %8361 = vmatmul.mubr.msk.f32.vlgmr.msra.gmra.mrb[0].mxu1 %vm3249_vm5, %v10875_v30  ;;  %v11938_v30 = vld [vmem:[#allocation36_spill] sm:$0xff] }
 0x50d   : > { %8363 = vmatprep.mubr.msk.f32.mxu1 %vm3249_vm5, %v11901_v9 }
 0x510   : > { %8364 = vmatmul.mubr.msk.f32.gmra.mrb[2].mxu1 %vm3249_vm5, %v10888_v53  ;;  %v11939_v53 = vld [vmem:[#allocation37_spill] sm:$0xff] }
 0x511   : > { %8366 = vmatprep.mubr.msk.f32.mxu1 %vm3249_vm5, %v11932_v14 }
 0x514   : > { %8367 = vmatmul.mubr.msk.f32.gmra.mrb[4].mxu1 %vm3249_vm5, %v10901_v18  ;;  %v11940_v18 = vld [vmem:[#allocation39_spill] sm:$0xff] }
 0x515   : > { %8369 = vmatprep.mubr.msk.f32.mxu1 %vm3249_vm5, %v11933_v25 }
 0x518   : > { %8370 = vmatmul.mubr.msk.f32.gmra.mrb[6].mxu1 %vm3249_vm5, %v10914_v26  ;;  %v11941_v26 = vld [vmem:[#allocation41_spill] sm:$0xff] }
 0x519   : > { %8372 = vmatprep.mubr.msk.f32.mxu1 %vm3249_vm5, %v11934_v23 }
 0x51c   : > { %8373 = vmatmul.mubr.msk.f32.gmra.mrb[8].mxu1 %vm3249_vm5, %v10927_v34  ;;  %v11942_v34 = vld [vmem:[#allocation42_spill] sm:$0xff] }
 0x51d   : > { %8375 = vmatprep.mubr.msk.f32.mxu1 %vm3249_vm5, %v11935_v47 }
 0x520   : > { %8376 = vmatmul.mubr.msk.f32.gmra.mrb[10].mxu1 %vm3249_vm5, %v10940_v58  ;;  %v5913_v58 = vrot.slane %v11329_v6, 2 }
 0x521   : > { %8378 = vmatprep.mubr.msk.f32.mxu1 %vm3249_vm5, %v11936_v32 }
 0x524   : > { %8379 = vmatmul.mubr.msk.f32.gmra.mrb[12].mxu1 %vm3249_vm5, %v10953_v24  ;;  %v5914_v24 = vrot.slane %v11335_v11, 2 }
 0x525   : > { %8381 = vmatprep.mubr.msk.f32.mxu1 %vm3249_vm5, %v11937_v41 }
 0x526   : > { %v5915_v55 = vsel %vm1190_vm3, %v5913_v58, %v5914_v24 }
 0x528   : > { %8382 = vmatmul.mubr.msk.f32.gmra.mrb[14].mxu1 %vm3249_vm5, %v10966_v45  ;;  %v5916_v45 = vrot.slane %v3391_v5, 2 }
 0x529   : > { %8384 = vmatprep.mubr.msk.f32.mxu1 %vm3249_vm5, %v11908_v39 }
 0x52c   : > { %8385 = vmatmul.mubr.msk.f32.gmra.mrb[16].mxu1 %vm3249_vm5, %v11938_v30 }
 0x52d   : > { %8387 = vmatprep.mubr.msk.f32.mxu1 %vm3249_vm5, %v11939_v53 }
 0x530   : > { %8388 = vmatmul.mubr.msk.f32.gmra.mrb[18].mxu1 %vm3249_vm5, %v10992_v31  ;;  %v5917_v31 = vsel %vm1190_vm3, %v5914_v24, %v5916_v45 }
 0x531   : > { %8390 = vmatprep.mubr.msk.f32.mxu1 %vm3249_vm5, %v11910_v52 }
 0x534   : > { %8391 = vmatmul.mubr.msk.f32.gmra.mrb[20].mxu1 %vm3249_vm5, %v11940_v18 }
 0x535   : > { %8393 = vmatprep.mubr.msk.f32.mxu1 %vm3249_vm5, %v11941_v26 }
 0x538   : > { %8394 = vmatmul.mubr.msk.f32.gmra.mrb[22].mxu1 %vm3249_vm5, %v11018_v21 }
 0x539   : > { %8396 = vmatprep.mubr.msk.f32.mxu1 %vm3249_vm5, %v11942_v34 }
 0x53c   : > { %8397 = vmatmul.mubr.msk.f32.gmra.mrb[24].mxu1 %vm3249_vm5, %v11031_v37 }
 0x53d   : > { %8399 = vmatprep.mubr.msk.f32.mxu1 %vm3249_vm5, %v11037_v2 }
 0x540   : > { %8400 = vmatmul.mubr.msk.f32.gmra.mrb[26].mxu1 %vm3249_vm5, %v11042_v3 }
 0x541   : > { %8402 = vmatprep.mubr.msk.f32.mxu1 %vm3249_vm5, %v11259_v38 }
 0x544   : > { %8403 = vmatmul.mubr.msk.f32.gmra.mrb[28].mxu1 %vm3249_vm5, %v11264_v4 }
 0x545   : > { %8405 = vmatprep.mubr.msk.f32.mxu1 %vm3249_vm5, %v5915_v55 }
 0x548   : > { %8406 = vmatmul.mubr.msk.f32.gmra.mrb[30].mxu1 %vm3249_vm5, %v5917_v31 }
 0x5df   : > { %v8362_v21 = vpop.f32.mrb[0].mxu1 }
 0x5e0   : > { %v8440_v37 = vadd.f32 %v8362_v21, %v11474_v35  ;;  %v5988_v2 = vpop.f32.mrb[1].mxu1 }
 0x5e1   : > { %v8441_v4 = vadd.f32 %v11474_v35, %v5988_v2 }
 0x5e2   : > { %v6180_v3 = vmax.f32 %v8440_v37, 0.0 }
 0x5e3   : > { %v6179_v61 = vmax.f32 %v8441_v4, 0.0  ;;  %v8365_v62 = vpop.f32.mrb[2].mxu1 }
 0x5e4   : > { %6212 = vst.msk [vmem:[%s11482_s22 + $0x8] sm:$0xff] %vm3249_vm5, %v6180_v3  ;;  %v8442_v1 = vadd.f32 %v8365_v62, %v11474_v35  ;;  %v5998_v8 = vpop.f32.mrb[3].mxu1 }
 0x5e5   : > { %6211 = vst.msk [vmem:[%s11482_s22] sm:$0xff] %vm3249_vm5, %v6179_v61  ;;  %v8443_v15 = vadd.f32 %v11474_v35, %v5998_v8 }
 0x5e6   : > { %v6182_v48 = vmax.f32 %v8442_v1, 0.0 }
 0x5e7   : > { %v6181_v57 = vmax.f32 %v8443_v15, 0.0  ;;  %v8368_v33 = vpop.f32.mrb[4].mxu1 }
 0x5e8   : > { %6214 = vst.msk [vmem:[%s11482_s22 + $0x18] sm:$0xff] %vm3249_vm5, %v6182_v48  ;;  %v8444_v9 = vadd.f32 %v8368_v33, %v11474_v35  ;;  %v6008_v52 = vpop.f32.mrb[5].mxu1 }
 0x5e9   : > { %6213 = vst.msk [vmem:[%s11482_s22 + $0x10] sm:$0xff] %vm3249_vm5, %v6181_v57  ;;  %v8445_v38 = vadd.f32 %v11474_v35, %v6008_v52 }
 0x5ea   : > { %v6184_v39 = vmax.f32 %v8444_v9, 0.0 }
 0x5eb   : > { %v6183_v42 = vmax.f32 %v8445_v38, 0.0  ;;  %v8371_v51 = vpop.f32.mrb[6].mxu1 }
 0x5ec   : > { %6216 = vst.msk [vmem:[%s11482_s22 + $0x28] sm:$0xff] %vm3249_vm5, %v6184_v39  ;;  %v8446_v6 = vadd.f32 %v8371_v51, %v11474_v35  ;;  %v6018_v11 = vpop.f32.mrb[7].mxu1 }
 0x5ed   : > { %6215 = vst.msk [vmem:[%s11482_s22 + $0x20] sm:$0xff] %vm3249_vm5, %v6183_v42  ;;  %v8447_v13 = vadd.f32 %v11474_v35, %v6018_v11 }
 0x5ee   : > { %v6186_v56 = vmax.f32 %v8446_v6, 0.0 }
 0x5ef   : > { %v6185_v29 = vmax.f32 %v8447_v13, 0.0  ;;  %v8374_v54 = vpop.f32.mrb[8].mxu1 }
 0x5f0   : > { %6218 = vst.msk [vmem:[%s11482_s22 + $0x38] sm:$0xff] %vm3249_vm5, %v6186_v56  ;;  %v8448_v17 = vadd.f32 %v8374_v54, %v11474_v35  ;;  %v6028_v44 = vpop.f32.mrb[9].mxu1 }
 0x5f1   : > { %6217 = vst.msk [vmem:[%s11482_s22 + $0x30] sm:$0xff] %vm3249_vm5, %v6185_v29  ;;  %v8449_v20 = vadd.f32 %v11474_v35, %v6028_v44 }
 0x5f2   : > { %v6188_v19 = vmax.f32 %v8448_v17, 0.0 }
 0x5f3   : > { %v6187_v49 = vmax.f32 %v8449_v20, 0.0  ;;  %v8377_v50 = vpop.f32.mrb[10].mxu1 }
 0x5f4   : > { %6220 = vst.msk [vmem:[%s11482_s22 + $0x48] sm:$0xff] %vm3249_vm5, %v6188_v19  ;;  %v8450_v63 = vadd.f32 %v8377_v50, %v11474_v35  ;;  %v6038_v0 = vpop.f32.mrb[11].mxu1 }
 0x5f5   : > { %6219 = vst.msk [vmem:[%s11482_s22 + $0x40] sm:$0xff] %vm3249_vm5, %v6187_v49  ;;  %v8451_v16 = vadd.f32 %v11474_v35, %v6038_v0 }
 0x5f6   : > { %v6190_v40 = vmax.f32 %v8450_v63, 0.0 }
 0x5f7   : > { %v6189_v7 = vmax.f32 %v8451_v16, 0.0  ;;  %v8380_v10 = vpop.f32.mrb[12].mxu1 }
 0x5f8   : > { %6222 = vst.msk [vmem:[%s11482_s22 + $0x58] sm:$0xff] %vm3249_vm5, %v6190_v40  ;;  %v8452_v22 = vadd.f32 %v8380_v10, %v11474_v35  ;;  %v6048_v43 = vpop.f32.mrb[13].mxu1 }
 0x5f9   : > { %6221 = vst.msk [vmem:[%s11482_s22 + $0x50] sm:$0xff] %vm3249_vm5, %v6189_v7  ;;  %v8453_v36 = vadd.f32 %v11474_v35, %v6048_v43 }
 0x5fa   : > { %v6192_v46 = vmax.f32 %v8452_v22, 0.0 }
 0x5fb   : > { %v6191_v59 = vmax.f32 %v8453_v36, 0.0  ;;  %v8383_v60 = vpop.f32.mrb[14].mxu1 }
 0x5fc   : > { %6224 = vst.msk [vmem:[%s11482_s22 + $0x68] sm:$0xff] %vm3249_vm5, %v6192_v46  ;;  %v8454_v5 = vadd.f32 %v8383_v60, %v11474_v35  ;;  %v6058_v12 = vpop.f32.mrb[15].mxu1 }
 0x5fd   : > { %6223 = vst.msk [vmem:[%s11482_s22 + $0x60] sm:$0xff] %vm3249_vm5, %v6191_v59  ;;  %v8455_v27 = vadd.f32 %v11474_v35, %v6058_v12 }
 0x5fe   : > { %v6194_v28 = vmax.f32 %v8454_v5, 0.0 }
 0x5ff   : > { %v6193_v14 = vmax.f32 %v8455_v27, 0.0  ;;  %v8386_v25 = vpop.f32.mrb[16].mxu1 }
 0x600   : > { %6226 = vst.msk [vmem:[%s11482_s22 + $0x78] sm:$0xff] %vm3249_vm5, %v6194_v28  ;;  %v8456_v23 = vadd.f32 %v8386_v25, %v11474_v35  ;;  %v6068_v47 = vpop.f32.mrb[17].mxu1 }
 0x601   : > { %6225 = vst.msk [vmem:[%s11482_s22 + $0x70] sm:$0xff] %vm3249_vm5, %v6193_v14  ;;  %v8457_v32 = vadd.f32 %v11474_v35, %v6068_v47 }
 0x602   : > { %v6196_v41 = vmax.f32 %v8456_v23, 0.0 }
 0x603   : > { %v6195_v30 = vmax.f32 %v8457_v32, 0.0  ;;  %v8389_v53 = vpop.f32.mrb[18].mxu1 }
 0x604   : > { %6228 = vst.msk [vmem:[%s11482_s22 + $0x88] sm:$0xff] %vm3249_vm5, %v6196_v41  ;;  %v8458_v18 = vadd.f32 %v8389_v53, %v11474_v35  ;;  %v6078_v26 = vpop.f32.mrb[19].mxu1 }
 0x605   : > { %6227 = vst.msk [vmem:[%s11482_s22 + $0x80] sm:$0xff] %vm3249_vm5, %v6195_v30  ;;  %v8459_v34 = vadd.f32 %v11474_v35, %v6078_v26 }
 0x606   : > { %v6198_v58 = vmax.f32 %v8458_v18, 0.0 }
 0x607   : > { %v6197_v24 = vmax.f32 %v8459_v34, 0.0  ;;  %v8392_v45 = vpop.f32.mrb[20].mxu1 }
 0x608   : > { %6230 = vst.msk [vmem:[%s11482_s22 + $0x98] sm:$0xff] %vm3249_vm5, %v6198_v58  ;;  %v8460_v55 = vadd.f32 %v8392_v45, %v11474_v35  ;;  %v6088_v31 = vpop.f32.mrb[21].mxu1 }
 0x609   : > { %6229 = vst.msk [vmem:[%s11482_s22 + $0x90] sm:$0xff] %vm3249_vm5, %v6197_v24  ;;  %v8461_v21 = vadd.f32 %v11474_v35, %v6088_v31 }
 0x60a   : > { %v6200_v37 = vmax.f32 %v8460_v55, 0.0 }
 0x60b   : > { %v6199_v2 = vmax.f32 %v8461_v21, 0.0  ;;  %v8395_v4 = vpop.f32.mrb[22].mxu1 }
 0x60c   : > { %6232 = vst.msk [vmem:[%s11482_s22 + $0xa8] sm:$0xff] %vm3249_vm5, %v6200_v37  ;;  %v8462_v3 = vadd.f32 %v8395_v4, %v11474_v35  ;;  %v6098_v61 = vpop.f32.mrb[23].mxu1 }
 0x60d   : > { %6231 = vst.msk [vmem:[%s11482_s22 + $0xa0] sm:$0xff] %vm3249_vm5, %v6199_v2  ;;  %v8463_v62 = vadd.f32 %v11474_v35, %v6098_v61 }
 0x60e   : > { %v6202_v1 = vmax.f32 %v8462_v3, 0.0 }
 0x60f   : > { %v6201_v8 = vmax.f32 %v8463_v62, 0.0  ;;  %v8398_v15 = vpop.f32.mrb[24].mxu1 }
 0x610   : > { %6234 = vst.msk [vmem:[%s11482_s22 + $0xb8] sm:$0xff] %vm3249_vm5, %v6202_v1  ;;  %v8464_v48 = vadd.f32 %v8398_v15, %v11474_v35  ;;  %v6108_v57 = vpop.f32.mrb[25].mxu1 }
 0x611   : > { %6233 = vst.msk [vmem:[%s11482_s22 + $0xb0] sm:$0xff] %vm3249_vm5, %v6201_v8  ;;  %v8465_v33 = vadd.f32 %v11474_v35, %v6108_v57 }
 0x612   : > { %v6204_v9 = vmax.f32 %v8464_v48, 0.0 }
 0x613   : > { %v6203_v52 = vmax.f32 %v8465_v33, 0.0  ;;  %v8401_v38 = vpop.f32.mrb[26].mxu1 }
 0x614   : > { %6236 = vst.msk [vmem:[%s11482_s22 + $0xc8] sm:$0xff] %vm3249_vm5, %v6204_v9  ;;  %v8466_v39 = vadd.f32 %v8401_v38, %v11474_v35  ;;  %v6118_v42 = vpop.f32.mrb[27].mxu1 }
 0x615   : > { %6235 = vst.msk [vmem:[%s11482_s22 + $0xc0] sm:$0xff] %vm3249_vm5, %v6203_v52  ;;  %v8467_v51 = vadd.f32 %v11474_v35, %v6118_v42 }
 0x616   : > { %v6206_v6 = vmax.f32 %v8466_v39, 0.0 }
 0x617   : > { %v6205_v11 = vmax.f32 %v8467_v51, 0.0  ;;  %v8404_v13 = vpop.f32.mrb[28].mxu1 }
 0x618   : > { %6238 = vst.msk [vmem:[%s11482_s22 + $0xd8] sm:$0xff] %vm3249_vm5, %v6206_v6  ;;  %v8468_v56 = vadd.f32 %v8404_v13, %v11474_v35  ;;  %v6128_v29 = vpop.f32.mrb[29].mxu1 }
 0x619   : > { %6237 = vst.msk [vmem:[%s11482_s22 + $0xd0] sm:$0xff] %vm3249_vm5, %v6205_v11  ;;  %v8469_v54 = vadd.f32 %v11474_v35, %v6128_v29 }
 0x61a   : > { %v6208_v17 = vmax.f32 %v8468_v56, 0.0 }
 0x61b   : > { %v6207_v44 = vmax.f32 %v8469_v54, 0.0  ;;  %v8407_v20 = vpop.f32.mrb[30].mxu1 }
 0x61c   : > { %6240 = vst.msk [vmem:[%s11482_s22 + $0xe8] sm:$0xff] %vm3249_vm5, %v6208_v17  ;;  %v8470_v19 = vadd.f32 %v8407_v20, %v11474_v35  ;;  %v6138_v49 = vpop.f32.mrb[31].mxu1 }
 0x61d   : > { %6239 = vst.msk [vmem:[%s11482_s22 + $0xe0] sm:$0xff] %vm3249_vm5, %v6207_v44  ;;  %v8471_v50 = vadd.f32 %v11474_v35, %v6138_v49 }
 0x61e   : > { %v6210_v63 = vmax.f32 %v8470_v19, 0.0 }
 0x61f   : > { %v6209_v0 = vmax.f32 %v8471_v50, 0.0 }
 0x620   : > { %6242 = vst.msk [vmem:[%s11482_s22 + $0xf8] sm:$0xff] %vm3249_vm5, %v6210_v63 }
 0x621   : > { %6241 = vst.msk [vmem:[%s11482_s22 + $0xf0] sm:$0xff] %vm3249_vm5, %v6209_v0 }
 0x622 PF: > { %s15_s18 = sadd.s32 1, %s8999_s18  }
 0x623   : > { %p12_p4 = scmp.ge.s32.totalorder %s15_s18, 4  }
 0x625   :  { %14 = sbr.rel (!%p12_p4) target bundleno = 1 (0x1), region = 88 }

</bundles_post_ra>
